<compile_context>
chip_gen: v7x
topology: tpu7x:2x2x1
jax: 0.10.0
libtpu: 0.0.40
codegen_flags: <defaults>
</compile_context>

<pallas_src>
import functools

import numpy as np
import jax
import jax.numpy as jnp
from jax.experimental import pallas as pl
from jax.experimental.pallas import tpu as pltpu


# ------------------------------ fused kernel ---------------------------------

def _net_kernel(x4_ref, w1_ref, b1_ref, w2_ref, b2_ref, w3_ref, b3_ref,
                w4_ref, b4_ref, o_ref, a1_ref, a2_ref, fc_ref, *, tb):
    """Whole network for a batch tile of `tb` images.

    x4_ref : (4, 7, tb, 28)   input rows pre-split by (h % 4); lanes = w
    w1_ref : (140, 240)       banded conv1 weights, out lanes = (ow%2, ow//2, c)
    w2_ref : (600, 160)       banded conv2 weights, out lanes = (ow2%2, ow2//2, c)
    w3_ref : (320, 50)        fc1 weights, rows permuted to (h2, w2, c) order
    w4_ref : (50, 10)         fc2 weights
    o_ref  : (tb, 10)
    a1_ref : (24*tb, 140)     conv1 row-im2col scratch, rows = (p, s, t, b)
    a2_ref : (8*tb, 600)      conv2 row-im2col scratch, rows = (p2, u, b)
    fc_ref : (tb, 320)        flattened (h2, w2, c) features
    """
    # ---- conv1: build row-im2col A.  Row (p, s, t, b) <-> output row
    # oh = 4t + 2s + p (p = pool-pair parity, q = 2t + s = pooled row index);
    # lanes = kh*28 + w.  Every copied slab is a contiguous (6*tb, 28) block.
    for p in range(2):
        for s in range(2):
            row0 = (p * 2 + s) * 6 * tb
            for kh in range(5):
                c = 2 * s + p + kh          # source image row = 4t + c
                r, a = c % 4, c // 4
                v = x4_ref[r, a:a + 6, :, :].reshape(6 * tb, 28)
                a1_ref[row0:row0 + 6 * tb, kh * 28:(kh + 1) * 28] = v

    # conv1 as one MXU matmul: (24*tb, 140) x (140, 240)
    y1 = jnp.dot(a1_ref[...], w1_ref[...], preferred_element_type=jnp.float32)
    # 2x2 max pool: row pairs = p-halves of the M axis, col pairs = lane halves.
    y1 = jnp.maximum(y1[:12 * tb, :], y1[12 * tb:, :])     # pool over oh pair
    y1 = jnp.maximum(y1[:, :120], y1[:, 120:])             # pool over ow pair
    p1 = jnp.maximum(y1 + b1_ref[...], 0.0)                # (12*tb, 120) = act1
    # p1 rows = (s, t, b) with pooled h1 = 2t + s; lanes = w1*10 + ci.

    # ---- conv2: build row-im2col A2.  Row (p2, u, b) <-> output row
    # oh2 = 2u + p2 (u = pooled row index); lanes = kh2*120 + w1*10 + ci.
    for p2 in range(2):
        row0 = p2 * 4 * tb
        for kh2 in range(5):
            c2 = p2 + kh2                   # source act1 row h1 = 2u + c2
            sp, m = c2 % 2, c2 // 2
            src0 = (sp * 6 + m) * tb
            a2_ref[row0:row0 + 4 * tb, kh2 * 120:(kh2 + 1) * 120] = (
                p1[src0:src0 + 4 * tb, :])

    # conv2 as one MXU matmul: (8*tb, 600) x (600, 160)
    y2 = jnp.dot(a2_ref[...], w2_ref[...], preferred_element_type=jnp.float32)
    y2 = jnp.maximum(y2[:4 * tb, :], y2[4 * tb:, :])       # pool over oh2 pair
    y2 = jnp.maximum(y2[:, :80], y2[:, 80:])               # pool over ow2 pair
    act2 = jnp.maximum(y2 + b2_ref[...], 0.0)              # (4*tb, 80), rows (u, b)

    # ---- flatten to lane order (h2, w2, c) = 320 lanes, then fc1+ReLU+fc2 ----
    for u in range(4):
        fc_ref[:, u * 80:(u + 1) * 80] = act2[u * tb:(u + 1) * tb, :]
    h = jnp.dot(fc_ref[...], w3_ref[...], preferred_element_type=jnp.float32)
    h = jnp.maximum(h + b3_ref[...], 0.0)
    out = jnp.dot(h, w4_ref[...], preferred_element_type=jnp.float32) + b4_ref[...]
    o_ref[...] = out.astype(o_ref.dtype)


# -------------------------------- wrapper -------------------------------------

def _round_up(x, m):
    return ((x + m - 1) // m) * m


def _net_pallas(x4, kp, n_pad, *, tb):
    kernel = functools.partial(_net_kernel, tb=tb)
    return pl.pallas_call(
        kernel,
        out_shape=jax.ShapeDtypeStruct((n_pad, 10), jnp.float32),
        grid=(n_pad // tb,),
        in_specs=[
            pl.BlockSpec((4, 7, tb, 28), lambda i: (0, 0, i, 0)),
            pl.BlockSpec((140, 240), lambda i: (0, 0)),
            pl.BlockSpec((1, 120), lambda i: (0, 0)),
            pl.BlockSpec((600, 160), lambda i: (0, 0)),
            pl.BlockSpec((1, 80), lambda i: (0, 0)),
            pl.BlockSpec((320, 50), lambda i: (0, 0)),
            pl.BlockSpec((1, 50), lambda i: (0, 0)),
            pl.BlockSpec((50, 10), lambda i: (0, 0)),
            pl.BlockSpec((1, 10), lambda i: (0, 0)),
        ],
        out_specs=pl.BlockSpec((tb, 10), lambda i: (i, 0)),
        scratch_shapes=[
            pltpu.VMEM((24 * tb, 140), jnp.float32),   # conv1 row-im2col
            pltpu.VMEM((8 * tb, 600), jnp.float32),    # conv2 row-im2col
            pltpu.VMEM((tb, 320), jnp.float32),        # flattened fc input
        ],
        compiler_params=pltpu.CompilerParams(
            dimension_semantics=("parallel",),
            vmem_limit_bytes=48 * 1024 * 1024,
        ),
    )(x4, kp["w1b"], kp["b1"], kp["w2b"], kp["b2"],
      kp["fc1_w"], kp["fc1_b"], kp["fc2_w"], kp["fc2_b"])


@functools.partial(jax.jit, static_argnames=("batch_tile",))
def net_forward(x_nchw, kp, batch_tile=64):
    """Forward pass equivalent to Net.forward.  Input (N, 1, 28, 28)."""
    n, cin, hh, ww = x_nchw.shape
    assert (cin, hh, ww) == (1, 28, 28), "Net requires (N, 1, 28, 28) input"
    # Batch tile: multiple of 8, big enough to amortize per-step overhead; pick
    # it < n/2 for large n so the 'parallel' grid shards across v7x's 2 TCs.
    tb = min(batch_tile, _round_up(n, 8))
    n_pad = _round_up(n, tb)

    x = x_nchw.reshape(n, 28, 28)
    if n_pad != n:
        x = jnp.pad(x, ((0, n_pad - n), (0, 0), (0, 0)))
    # Layout prep (tiny, host/XLA side): rows become (h, b) so every in-kernel
    # row-window copy is contiguous; pre-split rows by h % 4 so the interleaved
    # (pool-parity) row orderings need no strided access inside the kernel.
    xh = jnp.transpose(x, (1, 0, 2))                                  # (28, n_pad, 28)
    x4 = jnp.transpose(xh.reshape(7, 4, n_pad, 28), (1, 0, 2, 3))     # (4, 7, n_pad, 28)

    out = _net_pallas(x4, kp, n_pad, tb=tb)
    return out[:n]


# ---------------------- parameter repack (one-time, host) ---------------------

def prepare_params(p):
    """Repack PyTorch-layout params into the kernel's banded / permuted layouts."""
    w1 = np.asarray(p["conv1_w"], np.float32)          # (10, 1, 5, 5)
    w2 = np.asarray(p["conv2_w"], np.float32)          # (20, 10, 5, 5)

    # conv1 banded matrix: rows = kh*28 + w, cols = (ow%2)*120 + (ow//2)*10 + co
    w1b = np.zeros((140, 240), np.float32)
    for kh in range(5):
        for kw in range(5):
            for ow in range(24):
                col0 = (ow % 2) * 120 + (ow // 2) * 10
                w1b[kh * 28 + ow + kw, col0:col0 + 10] = w1[:, 0, kh, kw]

    # conv2 banded matrix: rows = kh2*120 + w1*10 + ci,
    #                      cols = (ow2%2)*80 + (ow2//2)*20 + co
    w2b = np.zeros((600, 160), np.float32)
    for kh in range(5):
        for kw in range(5):
            for ow in range(8):
                col0 = (ow % 2) * 80 + (ow // 2) * 20
                r0 = kh * 120 + (ow + kw) * 10
                w2b[r0:r0 + 10, col0:col0 + 20] = w2[:, :, kh, kw].T   # (ci, co)

    # fc1: torch flattens NCHW as (c, h, w); kernel flattens as (h, w, c).
    f1 = np.asarray(p["fc1_w"], np.float32)            # (50, 320)
    f1_hwc = f1.reshape(50, 20, 4, 4).transpose(2, 3, 1, 0).reshape(320, 50)

    return {
        "w1b": jnp.asarray(w1b),
        "b1": jnp.asarray(np.tile(np.asarray(p["conv1_b"], np.float32), 12).reshape(1, 120)),
        "w2b": jnp.asarray(w2b),
        "b2": jnp.asarray(np.tile(np.asarray(p["conv2_b"], np.float32), 4).reshape(1, 80)),
        "fc1_w": jnp.asarray(f1_hwc),
        "fc1_b": jnp.asarray(np.asarray(p["fc1_b"], np.float32).reshape(1, 50)),
        "fc2_w": jnp.asarray(np.asarray(p["fc2_w"], np.float32).T),
        "fc2_b": jnp.asarray(np.asarray(p["fc2_b"], np.float32).reshape(1, 10)),
    }


# --------------------------- params & reference -------------------------------

def init_params(key):
    ks = jax.random.split(key, 8)

    def u(k, shape, fan_in):
        bound = 1.0 / jnp.sqrt(jnp.float32(fan_in))
        return jax.random.uniform(k, shape, jnp.float32, -bound, bound)

    return {
        "conv1_w": u(ks[0], (10, 1, 5, 5), 25),
        "conv1_b": u(ks[1], (10,), 25),
        "conv2_w": u(ks[2], (20, 10, 5, 5), 250),
        "conv2_b": u(ks[3], (20,), 250),
        "fc1_w": u(ks[4], (50, 320), 320),
        "fc1_b": u(ks[5], (50,), 320),
        "fc2_w": u(ks[6], (10, 50), 50),
        "fc2_b": u(ks[7], (10,), 50),
    }


def net_forward_ref(x, p):
    """Pure-JAX reference (no Pallas), used only for a correctness check."""
    def conv(x, w, b):
        y = jax.lax.conv_general_dilated(
            x, w, (1, 1), "VALID", dimension_numbers=("NCHW", "OIHW", "NCHW"))
        return y + b.reshape(1, -1, 1, 1)

    def pool(x):
        return jax.lax.reduce_window(
            x, -jnp.inf, jax.lax.max, (1, 1, 2, 2), (1, 1, 2, 2), "VALID")

    x = pool(jax.nn.relu(conv(x, p["conv1_w"], p["conv1_b"])))
    x = pool(jax.nn.relu(conv(x, p["conv2_w"], p["conv2_b"])))
    x = x.reshape(x.shape[0], 320)
    x = jax.nn.relu(x @ p["fc1_w"].T + p["fc1_b"])
    return x @ p["fc2_w"].T + p["fc2_b"]


if __name__ == "__main__":
    key = jax.random.PRNGKey(0)
    k_x, k_p = jax.random.split(key)
    params = init_params(k_p)
    kparams = prepare_params(params)

    # Input shape is forced by the x.view(-1, 320) flatten: (N, 1, 28, 28).
    x = jax.random.normal(k_x, (2, 1, 28, 28), dtype=jnp.float32)
    out = jax.block_until_ready(net_forward(x, kparams))
    assert out.shape == (2, 10), out.shape
    ref = jax.block_until_ready(net_forward_ref(x, params))
    assert jnp.allclose(out, ref, atol=1e-3, rtol=1e-3), (
        f"mismatch: max abs err = {jnp.max(jnp.abs(out - ref))}")

    # Exercise the multi-step grid + batch-padding path (tb=8, grid=3).
    x2 = jax.random.normal(k_x, (19, 1, 28, 28), dtype=jnp.float32)
    out2 = jax.block_until_ready(net_forward(x2, kparams, batch_tile=8))
    ref2 = jax.block_until_ready(net_forward_ref(x2, params))
    assert jnp.allclose(out2, ref2, atol=1e-3, rtol=1e-3), (
        f"mismatch: max abs err = {jnp.max(jnp.abs(out2 - ref2))}")

    print("KERNEL_OK")
</pallas_src>

<mosaic_0001>
module attributes {stable_mosaic.version = 11 : i64} {
  func.func @_net_kernel(%arg0: i32, %arg1: memref<4x7x8x28xf32, #tpu.memory_space<vmem>>, %arg2: memref<140x240xf32, #tpu.memory_space<vmem>>, %arg3: memref<1x120xf32, #tpu.memory_space<vmem>>, %arg4: memref<600x160xf32, #tpu.memory_space<vmem>>, %arg5: memref<1x80xf32, #tpu.memory_space<vmem>>, %arg6: memref<320x50xf32, #tpu.memory_space<vmem>>, %arg7: memref<1x50xf32, #tpu.memory_space<vmem>>, %arg8: memref<50x10xf32, #tpu.memory_space<vmem>>, %arg9: memref<1x10xf32, #tpu.memory_space<vmem>>, %arg10: memref<8x10xf32, #tpu.memory_space<vmem>>, %arg11: memref<192x140xf32, #tpu.memory_space<vmem>>, %arg12: memref<64x600xf32, #tpu.memory_space<vmem>>, %arg13: memref<8x320xf32, #tpu.memory_space<vmem>>) attributes {dimension_semantics = [#tpu.dimension_semantics<parallel>], iteration_bounds = array<i64: 1>, scalar_prefetch = 0 : i64, scratch_operands = 3 : i64, tpu.core_type = #tpu.core_type<tc>, window_params = [{transform_indices = @transform_0, window_bounds = array<i64: 4, 7, 8, 28>}, {pipeline_mode = #tpu.pipeline_mode<synchronous>, transform_indices = @transform_1, window_bounds = array<i64: 140, 240>}, {pipeline_mode = #tpu.pipeline_mode<synchronous>, transform_indices = @transform_2, window_bounds = array<i64: 1, 120>}, {pipeline_mode = #tpu.pipeline_mode<synchronous>, transform_indices = @transform_3, window_bounds = array<i64: 600, 160>}, {pipeline_mode = #tpu.pipeline_mode<synchronous>, transform_indices = @transform_4, window_bounds = array<i64: 1, 80>}, {pipeline_mode = #tpu.pipeline_mode<synchronous>, transform_indices = @transform_5, window_bounds = array<i64: 320, 50>}, {pipeline_mode = #tpu.pipeline_mode<synchronous>, transform_indices = @transform_6, window_bounds = array<i64: 1, 50>}, {pipeline_mode = #tpu.pipeline_mode<synchronous>, transform_indices = @transform_7, window_bounds = array<i64: 50, 10>}, {pipeline_mode = #tpu.pipeline_mode<synchronous>, transform_indices = @transform_8, window_bounds = array<i64: 1, 10>}, {transform_indices = @transform_9, window_bounds = array<i64: 8, 10>}]} {
    %c0 = arith.constant 0 : index
    %c0_0 = arith.constant 0 : index
    %c0_1 = arith.constant 0 : index
    %c0_2 = arith.constant 0 : index
    %0 = vector.load %arg1[%c0, %c0_0, %c0_1, %c0_2] : memref<4x7x8x28xf32, #tpu.memory_space<vmem>>, vector<1x6x8x28xf32>
    %1 = vector.shape_cast %0 : vector<1x6x8x28xf32> to vector<6x8x28xf32>
    %2 = vector.shape_cast %1 : vector<6x8x28xf32> to vector<48x28xf32>
    %c0_3 = arith.constant 0 : index
    %c0_4 = arith.constant 0 : index
    %3 = vector.load %arg11[%c0_3, %c0_4] : memref<192x140xf32, #tpu.memory_space<vmem>>, vector<48x28xf32>
    tpu.vector_store %arg11[%c0_3, %c0_4], %2 {strides = array<i32>} : memref<192x140xf32, #tpu.memory_space<vmem>>, vector<48x28xf32>,
    %c1 = arith.constant 1 : index
    %c0_5 = arith.constant 0 : index
    %c0_6 = arith.constant 0 : index
    %c0_7 = arith.constant 0 : index
    %4 = vector.load %arg1[%c1, %c0_5, %c0_6, %c0_7] : memref<4x7x8x28xf32, #tpu.memory_space<vmem>>, vector<1x6x8x28xf32>
    %5 = vector.shape_cast %4 : vector<1x6x8x28xf32> to vector<6x8x28xf32>
    %6 = vector.shape_cast %5 : vector<6x8x28xf32> to vector<48x28xf32>
    %c0_8 = arith.constant 0 : index
    %c28 = arith.constant 28 : index
    %7 = vector.load %arg11[%c0_8, %c28] : memref<192x140xf32, #tpu.memory_space<vmem>>, vector<48x28xf32>
    tpu.vector_store %arg11[%c0_8, %c28], %6 {strides = array<i32>} : memref<192x140xf32, #tpu.memory_space<vmem>>, vector<48x28xf32>,
    %c2 = arith.constant 2 : index
    %c0_9 = arith.constant 0 : index
    %c0_10 = arith.constant 0 : index
    %c0_11 = arith.constant 0 : index
    %8 = vector.load %arg1[%c2, %c0_9, %c0_10, %c0_11] : memref<4x7x8x28xf32, #tpu.memory_space<vmem>>, vector<1x6x8x28xf32>
    %9 = vector.shape_cast %8 : vector<1x6x8x28xf32> to vector<6x8x28xf32>
    %10 = vector.shape_cast %9 : vector<6x8x28xf32> to vector<48x28xf32>
    %c0_12 = arith.constant 0 : index
    %c56 = arith.constant 56 : index
    %11 = vector.load %arg11[%c0_12, %c56] : memref<192x140xf32, #tpu.memory_space<vmem>>, vector<48x28xf32>
    tpu.vector_store %arg11[%c0_12, %c56], %10 {strides = array<i32>} : memref<192x140xf32, #tpu.memory_space<vmem>>, vector<48x28xf32>,
    %c3 = arith.constant 3 : index
    %c0_13 = arith.constant 0 : index
    %c0_14 = arith.constant 0 : index
    %c0_15 = arith.constant 0 : index
    %12 = vector.load %arg1[%c3, %c0_13, %c0_14, %c0_15] : memref<4x7x8x28xf32, #tpu.memory_space<vmem>>, vector<1x6x8x28xf32>
    %13 = vector.shape_cast %12 : vector<1x6x8x28xf32> to vector<6x8x28xf32>
    %14 = vector.shape_cast %13 : vector<6x8x28xf32> to vector<48x28xf32>
    %c0_16 = arith.constant 0 : index
    %c84 = arith.constant 84 : index
    %15 = vector.load %arg11[%c0_16, %c84] : memref<192x140xf32, #tpu.memory_space<vmem>>, vector<48x28xf32>
    tpu.vector_store %arg11[%c0_16, %c84], %14 {strides = array<i32>} : memref<192x140xf32, #tpu.memory_space<vmem>>, vector<48x28xf32>,
    %c0_17 = arith.constant 0 : index
    %c1_18 = arith.constant 1 : index
    %c0_19 = arith.constant 0 : index
    %c0_20 = arith.constant 0 : index
    %16 = vector.load %arg1[%c0_17, %c1_18, %c0_19, %c0_20] : memref<4x7x8x28xf32, #tpu.memory_space<vmem>>, vector<1x6x8x28xf32>
    %17 = vector.shape_cast %16 : vector<1x6x8x28xf32> to vector<6x8x28xf32>
    %18 = vector.shape_cast %17 : vector<6x8x28xf32> to vector<48x28xf32>
    %c0_21 = arith.constant 0 : index
    %c112 = arith.constant 112 : index
    %19 = vector.load %arg11[%c0_21, %c112] : memref<192x140xf32, #tpu.memory_space<vmem>>, vector<48x28xf32>
    tpu.vector_store %arg11[%c0_21, %c112], %18 {strides = array<i32>} : memref<192x140xf32, #tpu.memory_space<vmem>>, vector<48x28xf32>,
    %c2_22 = arith.constant 2 : index
    %c0_23 = arith.constant 0 : index
    %c0_24 = arith.constant 0 : index
    %c0_25 = arith.constant 0 : index
    %20 = vector.load %arg1[%c2_22, %c0_23, %c0_24, %c0_25] : memref<4x7x8x28xf32, #tpu.memory_space<vmem>>, vector<1x6x8x28xf32>
    %21 = vector.shape_cast %20 : vector<1x6x8x28xf32> to vector<6x8x28xf32>
    %22 = vector.shape_cast %21 : vector<6x8x28xf32> to vector<48x28xf32>
    %c48 = arith.constant 48 : index
    %c0_26 = arith.constant 0 : index
    %23 = vector.load %arg11[%c48, %c0_26] : memref<192x140xf32, #tpu.memory_space<vmem>>, vector<48x28xf32>
    tpu.vector_store %arg11[%c48, %c0_26], %22 {strides = array<i32>} : memref<192x140xf32, #tpu.memory_space<vmem>>, vector<48x28xf32>,
    %c3_27 = arith.constant 3 : index
    %c0_28 = arith.constant 0 : index
    %c0_29 = arith.constant 0 : index
    %c0_30 = arith.constant 0 : index
    %24 = vector.load %arg1[%c3_27, %c0_28, %c0_29, %c0_30] : memref<4x7x8x28xf32, #tpu.memory_space<vmem>>, vector<1x6x8x28xf32>
    %25 = vector.shape_cast %24 : vector<1x6x8x28xf32> to vector<6x8x28xf32>
    %26 = vector.shape_cast %25 : vector<6x8x28xf32> to vector<48x28xf32>
    %c48_31 = arith.constant 48 : index
    %c28_32 = arith.constant 28 : index
    %27 = vector.load %arg11[%c48_31, %c28_32] : memref<192x140xf32, #tpu.memory_space<vmem>>, vector<48x28xf32>
    tpu.vector_store %arg11[%c48_31, %c28_32], %26 {strides = array<i32>} : memref<192x140xf32, #tpu.memory_space<vmem>>, vector<48x28xf32>,
    %c0_33 = arith.constant 0 : index
    %c1_34 = arith.constant 1 : index
    %c0_35 = arith.constant 0 : index
    %c0_36 = arith.constant 0 : index
    %28 = vector.load %arg1[%c0_33, %c1_34, %c0_35, %c0_36] : memref<4x7x8x28xf32, #tpu.memory_space<vmem>>, vector<1x6x8x28xf32>
    %29 = vector.shape_cast %28 : vector<1x6x8x28xf32> to vector<6x8x28xf32>
    %30 = vector.shape_cast %29 : vector<6x8x28xf32> to vector<48x28xf32>
    %c48_37 = arith.constant 48 : index
    %c56_38 = arith.constant 56 : index
    %31 = vector.load %arg11[%c48_37, %c56_38] : memref<192x140xf32, #tpu.memory_space<vmem>>, vector<48x28xf32>
    tpu.vector_store %arg11[%c48_37, %c56_38], %30 {strides = array<i32>} : memref<192x140xf32, #tpu.memory_space<vmem>>, vector<48x28xf32>,
    %c1_39 = arith.constant 1 : index
    %c1_40 = arith.constant 1 : index
    %c0_41 = arith.constant 0 : index
    %c0_42 = arith.constant 0 : index
    %32 = vector.load %arg1[%c1_39, %c1_40, %c0_41, %c0_42] : memref<4x7x8x28xf32, #tpu.memory_space<vmem>>, vector<1x6x8x28xf32>
    %33 = vector.shape_cast %32 : vector<1x6x8x28xf32> to vector<6x8x28xf32>
    %34 = vector.shape_cast %33 : vector<6x8x28xf32> to vector<48x28xf32>
    %c48_43 = arith.constant 48 : index
    %c84_44 = arith.constant 84 : index
    %35 = vector.load %arg11[%c48_43, %c84_44] : memref<192x140xf32, #tpu.memory_space<vmem>>, vector<48x28xf32>
    tpu.vector_store %arg11[%c48_43, %c84_44], %34 {strides = array<i32>} : memref<192x140xf32, #tpu.memory_space<vmem>>, vector<48x28xf32>,
    %c2_45 = arith.constant 2 : index
    %c1_46 = arith.constant 1 : index
    %c0_47 = arith.constant 0 : index
    %c0_48 = arith.constant 0 : index
    %36 = vector.load %arg1[%c2_45, %c1_46, %c0_47, %c0_48] : memref<4x7x8x28xf32, #tpu.memory_space<vmem>>, vector<1x6x8x28xf32>
    %37 = vector.shape_cast %36 : vector<1x6x8x28xf32> to vector<6x8x28xf32>
    %38 = vector.shape_cast %37 : vector<6x8x28xf32> to vector<48x28xf32>
    %c48_49 = arith.constant 48 : index
    %c112_50 = arith.constant 112 : index
    %39 = vector.load %arg11[%c48_49, %c112_50] : memref<192x140xf32, #tpu.memory_space<vmem>>, vector<48x28xf32>
    tpu.vector_store %arg11[%c48_49, %c112_50], %38 {strides = array<i32>} : memref<192x140xf32, #tpu.memory_space<vmem>>, vector<48x28xf32>,
    %c1_51 = arith.constant 1 : index
    %c0_52 = arith.constant 0 : index
    %c0_53 = arith.constant 0 : index
    %c0_54 = arith.constant 0 : index
    %40 = vector.load %arg1[%c1_51, %c0_52, %c0_53, %c0_54] : memref<4x7x8x28xf32, #tpu.memory_space<vmem>>, vector<1x6x8x28xf32>
    %41 = vector.shape_cast %40 : vector<1x6x8x28xf32> to vector<6x8x28xf32>
    %42 = vector.shape_cast %41 : vector<6x8x28xf32> to vector<48x28xf32>
    %c96 = arith.constant 96 : index
    %c0_55 = arith.constant 0 : index
    %43 = vector.load %arg11[%c96, %c0_55] : memref<192x140xf32, #tpu.memory_space<vmem>>, vector<48x28xf32>
    tpu.vector_store %arg11[%c96, %c0_55], %42 {strides = array<i32>} : memref<192x140xf32, #tpu.memory_space<vmem>>, vector<48x28xf32>,
    %c2_56 = arith.constant 2 : index
    %c0_57 = arith.constant 0 : index
    %c0_58 = arith.constant 0 : index
    %c0_59 = arith.constant 0 : index
    %44 = vector.load %arg1[%c2_56, %c0_57, %c0_58, %c0_59] : memref<4x7x8x28xf32, #tpu.memory_space<vmem>>, vector<1x6x8x28xf32>
    %45 = vector.shape_cast %44 : vector<1x6x8x28xf32> to vector<6x8x28xf32>
    %46 = vector.shape_cast %45 : vector<6x8x28xf32> to vector<48x28xf32>
    %c96_60 = arith.constant 96 : index
    %c28_61 = arith.constant 28 : index
    %47 = vector.load %arg11[%c96_60, %c28_61] : memref<192x140xf32, #tpu.memory_space<vmem>>, vector<48x28xf32>
    tpu.vector_store %arg11[%c96_60, %c28_61], %46 {strides = array<i32>} : memref<192x140xf32, #tpu.memory_space<vmem>>, vector<48x28xf32>,
    %c3_62 = arith.constant 3 : index
    %c0_63 = arith.constant 0 : index
    %c0_64 = arith.constant 0 : index
    %c0_65 = arith.constant 0 : index
    %48 = vector.load %arg1[%c3_62, %c0_63, %c0_64, %c0_65] : memref<4x7x8x28xf32, #tpu.memory_space<vmem>>, vector<1x6x8x28xf32>
    %49 = vector.shape_cast %48 : vector<1x6x8x28xf32> to vector<6x8x28xf32>
    %50 = vector.shape_cast %49 : vector<6x8x28xf32> to vector<48x28xf32>
    %c96_66 = arith.constant 96 : index
    %c56_67 = arith.constant 56 : index
    %51 = vector.load %arg11[%c96_66, %c56_67] : memref<192x140xf32, #tpu.memory_space<vmem>>, vector<48x28xf32>
    tpu.vector_store %arg11[%c96_66, %c56_67], %50 {strides = array<i32>} : memref<192x140xf32, #tpu.memory_space<vmem>>, vector<48x28xf32>,
    %c0_68 = arith.constant 0 : index
    %c1_69 = arith.constant 1 : index
    %c0_70 = arith.constant 0 : index
    %c0_71 = arith.constant 0 : index
    %52 = vector.load %arg1[%c0_68, %c1_69, %c0_70, %c0_71] : memref<4x7x8x28xf32, #tpu.memory_space<vmem>>, vector<1x6x8x28xf32>
    %53 = vector.shape_cast %52 : vector<1x6x8x28xf32> to vector<6x8x28xf32>
    %54 = vector.shape_cast %53 : vector<6x8x28xf32> to vector<48x28xf32>
    %c96_72 = arith.constant 96 : index
    %c84_73 = arith.constant 84 : index
    %55 = vector.load %arg11[%c96_72, %c84_73] : memref<192x140xf32, #tpu.memory_space<vmem>>, vector<48x28xf32>
    tpu.vector_store %arg11[%c96_72, %c84_73], %54 {strides = array<i32>} : memref<192x140xf32, #tpu.memory_space<vmem>>, vector<48x28xf32>,
    %c1_74 = arith.constant 1 : index
    %c1_75 = arith.constant 1 : index
    %c0_76 = arith.constant 0 : index
    %c0_77 = arith.constant 0 : index
    %56 = vector.load %arg1[%c1_74, %c1_75, %c0_76, %c0_77] : memref<4x7x8x28xf32, #tpu.memory_space<vmem>>, vector<1x6x8x28xf32>
    %57 = vector.shape_cast %56 : vector<1x6x8x28xf32> to vector<6x8x28xf32>
    %58 = vector.shape_cast %57 : vector<6x8x28xf32> to vector<48x28xf32>
    %c96_78 = arith.constant 96 : index
    %c112_79 = arith.constant 112 : index
    %59 = vector.load %arg11[%c96_78, %c112_79] : memref<192x140xf32, #tpu.memory_space<vmem>>, vector<48x28xf32>
    tpu.vector_store %arg11[%c96_78, %c112_79], %58 {strides = array<i32>} : memref<192x140xf32, #tpu.memory_space<vmem>>, vector<48x28xf32>,
    %c3_80 = arith.constant 3 : index
    %c0_81 = arith.constant 0 : index
    %c0_82 = arith.constant 0 : index
    %c0_83 = arith.constant 0 : index
    %60 = vector.load %arg1[%c3_80, %c0_81, %c0_82, %c0_83] : memref<4x7x8x28xf32, #tpu.memory_space<vmem>>, vector<1x6x8x28xf32>
    %61 = vector.shape_cast %60 : vector<1x6x8x28xf32> to vector<6x8x28xf32>
    %62 = vector.shape_cast %61 : vector<6x8x28xf32> to vector<48x28xf32>
    %c144 = arith.constant 144 : index
    %c0_84 = arith.constant 0 : index
    %63 = vector.load %arg11[%c144, %c0_84] : memref<192x140xf32, #tpu.memory_space<vmem>>, vector<48x28xf32>
    tpu.vector_store %arg11[%c144, %c0_84], %62 {strides = array<i32>} : memref<192x140xf32, #tpu.memory_space<vmem>>, vector<48x28xf32>,
    %c0_85 = arith.constant 0 : index
    %c1_86 = arith.constant 1 : index
    %c0_87 = arith.constant 0 : index
    %c0_88 = arith.constant 0 : index
    %64 = vector.load %arg1[%c0_85, %c1_86, %c0_87, %c0_88] : memref<4x7x8x28xf32, #tpu.memory_space<vmem>>, vector<1x6x8x28xf32>
    %65 = vector.shape_cast %64 : vector<1x6x8x28xf32> to vector<6x8x28xf32>
    %66 = vector.shape_cast %65 : vector<6x8x28xf32> to vector<48x28xf32>
    %c144_89 = arith.constant 144 : index
    %c28_90 = arith.constant 28 : index
    %67 = vector.load %arg11[%c144_89, %c28_90] : memref<192x140xf32, #tpu.memory_space<vmem>>, vector<48x28xf32>
    tpu.vector_store %arg11[%c144_89, %c28_90], %66 {strides = array<i32>} : memref<192x140xf32, #tpu.memory_space<vmem>>, vector<48x28xf32>,
    %c1_91 = arith.constant 1 : index
    %c1_92 = arith.constant 1 : index
    %c0_93 = arith.constant 0 : index
    %c0_94 = arith.constant 0 : index
    %68 = vector.load %arg1[%c1_91, %c1_92, %c0_93, %c0_94] : memref<4x7x8x28xf32, #tpu.memory_space<vmem>>, vector<1x6x8x28xf32>
    %69 = vector.shape_cast %68 : vector<1x6x8x28xf32> to vector<6x8x28xf32>
    %70 = vector.shape_cast %69 : vector<6x8x28xf32> to vector<48x28xf32>
    %c144_95 = arith.constant 144 : index
    %c56_96 = arith.constant 56 : index
    %71 = vector.load %arg11[%c144_95, %c56_96] : memref<192x140xf32, #tpu.memory_space<vmem>>, vector<48x28xf32>
    tpu.vector_store %arg11[%c144_95, %c56_96], %70 {strides = array<i32>} : memref<192x140xf32, #tpu.memory_space<vmem>>, vector<48x28xf32>,
    %c2_97 = arith.constant 2 : index
    %c1_98 = arith.constant 1 : index
    %c0_99 = arith.constant 0 : index
    %c0_100 = arith.constant 0 : index
    %72 = vector.load %arg1[%c2_97, %c1_98, %c0_99, %c0_100] : memref<4x7x8x28xf32, #tpu.memory_space<vmem>>, vector<1x6x8x28xf32>
    %73 = vector.shape_cast %72 : vector<1x6x8x28xf32> to vector<6x8x28xf32>
    %74 = vector.shape_cast %73 : vector<6x8x28xf32> to vector<48x28xf32>
    %c144_101 = arith.constant 144 : index
    %c84_102 = arith.constant 84 : index
    %75 = vector.load %arg11[%c144_101, %c84_102] : memref<192x140xf32, #tpu.memory_space<vmem>>, vector<48x28xf32>
    tpu.vector_store %arg11[%c144_101, %c84_102], %74 {strides = array<i32>} : memref<192x140xf32, #tpu.memory_space<vmem>>, vector<48x28xf32>,
    %c3_103 = arith.constant 3 : index
    %c1_104 = arith.constant 1 : index
    %c0_105 = arith.constant 0 : index
    %c0_106 = arith.constant 0 : index
    %76 = vector.load %arg1[%c3_103, %c1_104, %c0_105, %c0_106] : memref<4x7x8x28xf32, #tpu.memory_space<vmem>>, vector<1x6x8x28xf32>
    %77 = vector.shape_cast %76 : vector<1x6x8x28xf32> to vector<6x8x28xf32>
    %78 = vector.shape_cast %77 : vector<6x8x28xf32> to vector<48x28xf32>
    %c144_107 = arith.constant 144 : index
    %c112_108 = arith.constant 112 : index
    %79 = vector.load %arg11[%c144_107, %c112_108] : memref<192x140xf32, #tpu.memory_space<vmem>>, vector<48x28xf32>
    tpu.vector_store %arg11[%c144_107, %c112_108], %78 {strides = array<i32>} : memref<192x140xf32, #tpu.memory_space<vmem>>, vector<48x28xf32>,
    %c0_109 = arith.constant 0 : index
    %c0_110 = arith.constant 0 : index
    %80 = vector.load %arg11[%c0_109, %c0_110] : memref<192x140xf32, #tpu.memory_space<vmem>>, vector<192x140xf32>
    %c0_111 = arith.constant 0 : index
    %c0_112 = arith.constant 0 : index
    %81 = vector.load %arg2[%c0_111, %c0_112] : memref<140x240xf32, #tpu.memory_space<vmem>>, vector<140x240xf32>
    %cst = arith.constant dense<0.000000e+00> : vector<192x240xf32>
    %82 = tpu.matmul %80, %81, %cst {dimension_numbers = #tpu.dot_dimension_numbers<[1], [0], [0], [1], [0, 0, 1, 1], [], []>} : vector<192x140xf32>, vector<140x240xf32>, vector<192x240xf32> -> vector<192x240xf32>
    %83 = vector.extract_strided_slice %82 {offsets = [0, 0], sizes = [96, 240], strides = [1, 1]} : vector<192x240xf32> to vector<96x240xf32>
    %84 = vector.extract_strided_slice %82 {offsets = [96, 0], sizes = [96, 240], strides = [1, 1]} : vector<192x240xf32> to vector<96x240xf32>
    %85 = arith.maximumf %83, %84 : vector<96x240xf32>
    %86 = vector.extract_strided_slice %85 {offsets = [0, 0], sizes = [96, 120], strides = [1, 1]} : vector<96x240xf32> to vector<96x120xf32>
    %87 = vector.extract_strided_slice %85 {offsets = [0, 120], sizes = [96, 120], strides = [1, 1]} : vector<96x240xf32> to vector<96x120xf32>
    %88 = arith.maximumf %86, %87 : vector<96x120xf32>
    %c0_113 = arith.constant 0 : index
    %c0_114 = arith.constant 0 : index
    %89 = vector.load %arg3[%c0_113, %c0_114] : memref<1x120xf32, #tpu.memory_space<vmem>>, vector<1x120xf32>
    %90 = vector.broadcast %89 : vector<1x120xf32> to vector<96x120xf32>
    %91 = arith.addf %88, %90 : vector<96x120xf32>
    %cst_115 = arith.constant 0.000000e+00 : f32
    %92 = vector.broadcast %cst_115 : f32 to vector<96x120xf32>
    %93 = arith.maximumf %91, %92 : vector<96x120xf32>
    %94 = vector.extract_strided_slice %93 {offsets = [0, 0], sizes = [32, 120], strides = [1, 1]} : vector<96x120xf32> to vector<32x120xf32>
    %c0_116 = arith.constant 0 : index
    %c0_117 = arith.constant 0 : index
    %95 = vector.load %arg12[%c0_116, %c0_117] : memref<64x600xf32, #tpu.memory_space<vmem>>, vector<32x120xf32>
    tpu.vector_store %arg12[%c0_116, %c0_117], %94 {strides = array<i32>} : memref<64x600xf32, #tpu.memory_space<vmem>>, vector<32x120xf32>,
    %96 = vector.extract_strided_slice %93 {offsets = [48, 0], sizes = [32, 120], strides = [1, 1]} : vector<96x120xf32> to vector<32x120xf32>
    %c0_118 = arith.constant 0 : index
    %c120 = arith.constant 120 : index
    %97 = vector.load %arg12[%c0_118, %c120] : memref<64x600xf32, #tpu.memory_space<vmem>>, vector<32x120xf32>
    tpu.vector_store %arg12[%c0_118, %c120], %96 {strides = array<i32>} : memref<64x600xf32, #tpu.memory_space<vmem>>, vector<32x120xf32>,
    %98 = vector.extract_strided_slice %93 {offsets = [8, 0], sizes = [32, 120], strides = [1, 1]} : vector<96x120xf32> to vector<32x120xf32>
    %c0_119 = arith.constant 0 : index
    %c240 = arith.constant 240 : index
    %99 = vector.load %arg12[%c0_119, %c240] : memref<64x600xf32, #tpu.memory_space<vmem>>, vector<32x120xf32>
    tpu.vector_store %arg12[%c0_119, %c240], %98 {strides = array<i32>} : memref<64x600xf32, #tpu.memory_space<vmem>>, vector<32x120xf32>,
    %100 = vector.extract_strided_slice %93 {offsets = [56, 0], sizes = [32, 120], strides = [1, 1]} : vector<96x120xf32> to vector<32x120xf32>
    %c0_120 = arith.constant 0 : index
    %c360 = arith.constant 360 : index
    %101 = vector.load %arg12[%c0_120, %c360] : memref<64x600xf32, #tpu.memory_space<vmem>>, vector<32x120xf32>
    tpu.vector_store %arg12[%c0_120, %c360], %100 {strides = array<i32>} : memref<64x600xf32, #tpu.memory_space<vmem>>, vector<32x120xf32>,
    %102 = vector.extract_strided_slice %93 {offsets = [16, 0], sizes = [32, 120], strides = [1, 1]} : vector<96x120xf32> to vector<32x120xf32>
    %c0_121 = arith.constant 0 : index
    %c480 = arith.constant 480 : index
    %103 = vector.load %arg12[%c0_121, %c480] : memref<64x600xf32, #tpu.memory_space<vmem>>, vector<32x120xf32>
    tpu.vector_store %arg12[%c0_121, %c480], %102 {strides = array<i32>} : memref<64x600xf32, #tpu.memory_space<vmem>>, vector<32x120xf32>,
    %104 = vector.extract_strided_slice %93 {offsets = [48, 0], sizes = [32, 120], strides = [1, 1]} : vector<96x120xf32> to vector<32x120xf32>
    %c32 = arith.constant 32 : index
    %c0_122 = arith.constant 0 : index
    %105 = vector.load %arg12[%c32, %c0_122] : memref<64x600xf32, #tpu.memory_space<vmem>>, vector<32x120xf32>
    tpu.vector_store %arg12[%c32, %c0_122], %104 {strides = array<i32>} : memref<64x600xf32, #tpu.memory_space<vmem>>, vector<32x120xf32>,
    %106 = vector.extract_strided_slice %93 {offsets = [8, 0], sizes = [32, 120], strides = [1, 1]} : vector<96x120xf32> to vector<32x120xf32>
    %c32_123 = arith.constant 32 : index
    %c120_124 = arith.constant 120 : index
    %107 = vector.load %arg12[%c32_123, %c120_124] : memref<64x600xf32, #tpu.memory_space<vmem>>, vector<32x120xf32>
    tpu.vector_store %arg12[%c32_123, %c120_124], %106 {strides = array<i32>} : memref<64x600xf32, #tpu.memory_space<vmem>>, vector<32x120xf32>,
    %108 = vector.extract_strided_slice %93 {offsets = [56, 0], sizes = [32, 120], strides = [1, 1]} : vector<96x120xf32> to vector<32x120xf32>
    %c32_125 = arith.constant 32 : index
    %c240_126 = arith.constant 240 : index
    %109 = vector.load %arg12[%c32_125, %c240_126] : memref<64x600xf32, #tpu.memory_space<vmem>>, vector<32x120xf32>
    tpu.vector_store %arg12[%c32_125, %c240_126], %108 {strides = array<i32>} : memref<64x600xf32, #tpu.memory_space<vmem>>, vector<32x120xf32>,
    %110 = vector.extract_strided_slice %93 {offsets = [16, 0], sizes = [32, 120], strides = [1, 1]} : vector<96x120xf32> to vector<32x120xf32>
    %c32_127 = arith.constant 32 : index
    %c360_128 = arith.constant 360 : index
    %111 = vector.load %arg12[%c32_127, %c360_128] : memref<64x600xf32, #tpu.memory_space<vmem>>, vector<32x120xf32>
    tpu.vector_store %arg12[%c32_127, %c360_128], %110 {strides = array<i32>} : memref<64x600xf32, #tpu.memory_space<vmem>>, vector<32x120xf32>,
    %112 = vector.extract_strided_slice %93 {offsets = [64, 0], sizes = [32, 120], strides = [1, 1]} : vector<96x120xf32> to vector<32x120xf32>
    %c32_129 = arith.constant 32 : index
    %c480_130 = arith.constant 480 : index
    %113 = vector.load %arg12[%c32_129, %c480_130] : memref<64x600xf32, #tpu.memory_space<vmem>>, vector<32x120xf32>
    tpu.vector_store %arg12[%c32_129, %c480_130], %112 {strides = array<i32>} : memref<64x600xf32, #tpu.memory_space<vmem>>, vector<32x120xf32>,
    %c0_131 = arith.constant 0 : index
    %c0_132 = arith.constant 0 : index
    %114 = vector.load %arg12[%c0_131, %c0_132] : memref<64x600xf32, #tpu.memory_space<vmem>>, vector<64x600xf32>
    %c0_133 = arith.constant 0 : index
    %c0_134 = arith.constant 0 : index
    %115 = vector.load %arg4[%c0_133, %c0_134] : memref<600x160xf32, #tpu.memory_space<vmem>>, vector<600x160xf32>
    %cst_135 = arith.constant dense<0.000000e+00> : vector<64x160xf32>
    %116 = tpu.matmul %114, %115, %cst_135 {dimension_numbers = #tpu.dot_dimension_numbers<[1], [0], [0], [1], [0, 0, 1, 1], [], []>} : vector<64x600xf32>, vector<600x160xf32>, vector<64x160xf32> -> vector<64x160xf32>
    %117 = vector.extract_strided_slice %116 {offsets = [0, 0], sizes = [32, 160], strides = [1, 1]} : vector<64x160xf32> to vector<32x160xf32>
    %118 = vector.extract_strided_slice %116 {offsets = [32, 0], sizes = [32, 160], strides = [1, 1]} : vector<64x160xf32> to vector<32x160xf32>
    %119 = arith.maximumf %117, %118 : vector<32x160xf32>
    %120 = vector.extract_strided_slice %119 {offsets = [0, 0], sizes = [32, 80], strides = [1, 1]} : vector<32x160xf32> to vector<32x80xf32>
    %121 = vector.extract_strided_slice %119 {offsets = [0, 80], sizes = [32, 80], strides = [1, 1]} : vector<32x160xf32> to vector<32x80xf32>
    %122 = arith.maximumf %120, %121 : vector<32x80xf32>
    %c0_136 = arith.constant 0 : index
    %c0_137 = arith.constant 0 : index
    %123 = vector.load %arg5[%c0_136, %c0_137] : memref<1x80xf32, #tpu.memory_space<vmem>>, vector<1x80xf32>
    %124 = vector.broadcast %123 : vector<1x80xf32> to vector<32x80xf32>
    %125 = arith.addf %122, %124 : vector<32x80xf32>
    %cst_138 = arith.constant 0.000000e+00 : f32
    %126 = vector.broadcast %cst_138 : f32 to vector<32x80xf32>
    %127 = arith.maximumf %125, %126 : vector<32x80xf32>
    %128 = vector.extract_strided_slice %127 {offsets = [0, 0], sizes = [8, 80], strides = [1, 1]} : vector<32x80xf32> to vector<8x80xf32>
    %c0_139 = arith.constant 0 : index
    %c0_140 = arith.constant 0 : index
    %129 = vector.load %arg13[%c0_139, %c0_140] : memref<8x320xf32, #tpu.memory_space<vmem>>, vector<8x80xf32>
    tpu.vector_store %arg13[%c0_139, %c0_140], %128 {strides = array<i32>} : memref<8x320xf32, #tpu.memory_space<vmem>>, vector<8x80xf32>,
    %130 = vector.extract_strided_slice %127 {offsets = [8, 0], sizes = [8, 80], strides = [1, 1]} : vector<32x80xf32> to vector<8x80xf32>
    %c0_141 = arith.constant 0 : index
    %c80 = arith.constant 80 : index
    %131 = vector.load %arg13[%c0_141, %c80] : memref<8x320xf32, #tpu.memory_space<vmem>>, vector<8x80xf32>
    tpu.vector_store %arg13[%c0_141, %c80], %130 {strides = array<i32>} : memref<8x320xf32, #tpu.memory_space<vmem>>, vector<8x80xf32>,
    %132 = vector.extract_strided_slice %127 {offsets = [16, 0], sizes = [8, 80], strides = [1, 1]} : vector<32x80xf32> to vector<8x80xf32>
    %c0_142 = arith.constant 0 : index
    %c160 = arith.constant 160 : index
    %133 = vector.load %arg13[%c0_142, %c160] : memref<8x320xf32, #tpu.memory_space<vmem>>, vector<8x80xf32>
    tpu.vector_store %arg13[%c0_142, %c160], %132 {strides = array<i32>} : memref<8x320xf32, #tpu.memory_space<vmem>>, vector<8x80xf32>,
    %134 = vector.extract_strided_slice %127 {offsets = [24, 0], sizes = [8, 80], strides = [1, 1]} : vector<32x80xf32> to vector<8x80xf32>
    %c0_143 = arith.constant 0 : index
    %c240_144 = arith.constant 240 : index
    %135 = vector.load %arg13[%c0_143, %c240_144] : memref<8x320xf32, #tpu.memory_space<vmem>>, vector<8x80xf32>
    tpu.vector_store %arg13[%c0_143, %c240_144], %134 {strides = array<i32>} : memref<8x320xf32, #tpu.memory_space<vmem>>, vector<8x80xf32>,
    %c0_145 = arith.constant 0 : index
    %c0_146 = arith.constant 0 : index
    %136 = vector.load %arg13[%c0_145, %c0_146] : memref<8x320xf32, #tpu.memory_space<vmem>>, vector<8x320xf32>
    %c0_147 = arith.constant 0 : index
    %c0_148 = arith.constant 0 : index
    %137 = vector.load %arg6[%c0_147, %c0_148] : memref<320x50xf32, #tpu.memory_space<vmem>>, vector<320x50xf32>
    %cst_149 = arith.constant dense<0.000000e+00> : vector<8x50xf32>
    %138 = tpu.matmul %136, %137, %cst_149 {dimension_numbers = #tpu.dot_dimension_numbers<[1], [0], [0], [1], [0, 0, 1, 1], [], []>} : vector<8x320xf32>, vector<320x50xf32>, vector<8x50xf32> -> vector<8x50xf32>
    %c0_150 = arith.constant 0 : index
    %c0_151 = arith.constant 0 : index
    %139 = vector.load %arg7[%c0_150, %c0_151] : memref<1x50xf32, #tpu.memory_space<vmem>>, vector<1x50xf32>
    %140 = vector.broadcast %139 : vector<1x50xf32> to vector<8x50xf32>
    %141 = arith.addf %138, %140 : vector<8x50xf32>
    %cst_152 = arith.constant 0.000000e+00 : f32
    %142 = vector.broadcast %cst_152 : f32 to vector<8x50xf32>
    %143 = arith.maximumf %141, %142 : vector<8x50xf32>
    %c0_153 = arith.constant 0 : index
    %c0_154 = arith.constant 0 : index
    %144 = vector.load %arg8[%c0_153, %c0_154] : memref<50x10xf32, #tpu.memory_space<vmem>>, vector<50x10xf32>
    %cst_155 = arith.constant dense<0.000000e+00> : vector<8x10xf32>
    %145 = tpu.matmul %143, %144, %cst_155 {dimension_numbers = #tpu.dot_dimension_numbers<[1], [0], [0], [1], [0, 0, 1, 1], [], []>} : vector<8x50xf32>, vector<50x10xf32>, vector<8x10xf32> -> vector<8x10xf32>
    %c0_156 = arith.constant 0 : index
    %c0_157 = arith.constant 0 : index
    %146 = vector.load %arg9[%c0_156, %c0_157] : memref<1x10xf32, #tpu.memory_space<vmem>>, vector<1x10xf32>
    %147 = vector.broadcast %146 : vector<1x10xf32> to vector<8x10xf32>
    %148 = arith.addf %145, %147 : vector<8x10xf32>
    %c0_158 = arith.constant 0 : index
    %c0_159 = arith.constant 0 : index
    %149 = vector.load %arg10[%c0_158, %c0_159] : memref<8x10xf32, #tpu.memory_space<vmem>>, vector<8x10xf32>
    tpu.vector_store %arg10[%c0_158, %c0_159], %148 {strides = array<i32>} : memref<8x10xf32, #tpu.memory_space<vmem>>, vector<8x10xf32>,
    return
  }
  func.func @transform_0(%arg0: i32) -> (i32, i32, i32, i32) {
    %c0_i32 = arith.constant 0 : i32
    %c0_i32_0 = arith.constant 0 : i32
    %c0_i32_1 = arith.constant 0 : i32
    %c0_i32_2 = arith.constant 0 : i32
    return %c0_i32, %c0_i32_0, %arg0, %c0_i32_1 : i32, i32, i32, i32
  }
  func.func @transform_1(%arg0: i32) -> (i32, i32) {
    %c0_i32 = arith.constant 0 : i32
    %c0_i32_0 = arith.constant 0 : i32
    %c0_i32_1 = arith.constant 0 : i32
    return %c0_i32, %c0_i32_0 : i32, i32
  }
  func.func @transform_2(%arg0: i32) -> (i32, i32) {
    %c0_i32 = arith.constant 0 : i32
    %c0_i32_0 = arith.constant 0 : i32
    %c0_i32_1 = arith.constant 0 : i32
    return %c0_i32, %c0_i32_0 : i32, i32
  }
  func.func @transform_3(%arg0: i32) -> (i32, i32) {
    %c0_i32 = arith.constant 0 : i32
    %c0_i32_0 = arith.constant 0 : i32
    %c0_i32_1 = arith.constant 0 : i32
    return %c0_i32, %c0_i32_0 : i32, i32
  }
  func.func @transform_4(%arg0: i32) -> (i32, i32) {
    %c0_i32 = arith.constant 0 : i32
    %c0_i32_0 = arith.constant 0 : i32
    %c0_i32_1 = arith.constant 0 : i32
    return %c0_i32, %c0_i32_0 : i32, i32
  }
  func.func @transform_5(%arg0: i32) -> (i32, i32) {
    %c0_i32 = arith.constant 0 : i32
    %c0_i32_0 = arith.constant 0 : i32
    %c0_i32_1 = arith.constant 0 : i32
    return %c0_i32, %c0_i32_0 : i32, i32
  }
  func.func @transform_6(%arg0: i32) -> (i32, i32) {
    %c0_i32 = arith.constant 0 : i32
    %c0_i32_0 = arith.constant 0 : i32
    %c0_i32_1 = arith.constant 0 : i32
    return %c0_i32, %c0_i32_0 : i32, i32
  }
  func.func @transform_7(%arg0: i32) -> (i32, i32) {
    %c0_i32 = arith.constant 0 : i32
    %c0_i32_0 = arith.constant 0 : i32
    %c0_i32_1 = arith.constant 0 : i32
    return %c0_i32, %c0_i32_0 : i32, i32
  }
  func.func @transform_8(%arg0: i32) -> (i32, i32) {
    %c0_i32 = arith.constant 0 : i32
    %c0_i32_0 = arith.constant 0 : i32
    %c0_i32_1 = arith.constant 0 : i32
    return %c0_i32, %c0_i32_0 : i32, i32
  }
  func.func @transform_9(%arg0: i32) -> (i32, i32) {
    %c0_i32 = arith.constant 0 : i32
    %c0_i32_0 = arith.constant 0 : i32
    return %arg0, %c0_i32 : i32, i32
  }
}

</mosaic_0001>

<bundles_post_ra>
// kernel: net_forward.1
= control target key start
LH: loop header
LB: loop body
LE: loop exit
PB: predicated region body
PF: predicated region fallthrough
CT: control target
= control target key end

     0   :  { %vm38_vm0 = vcmask 228352   ;;  %s2873_s15 = smov 84   ;;  %s2874_s16 = smov 28   ;;  %vm849_vm1 = vcmask 1043456   ;;  %vm2877_vm2 = vmmov 1   ;;  %vm76_vm4 = vcmask 457952   ;;  %s4496_s0 = inlined_call_operand.vmem [shape: f32[4,7,8,28], index: 0, kind: input, shape index: {}]   ;;  %s4497_s1 = inlined_call_operand.vmem [shape: f32[140,240], index: 1, kind: input, shape index: {}]   ;;  %s4498_s3 = inlined_call_operand.vmem [shape: f32[600,160], index: 3, kind: input, shape index: {}]   ;;  %s4499_s2 = inlined_call_operand.vmem [shape: f32[1,120], index: 2, kind: input, shape index: {}]   ;;  %s4500_s5 = inlined_call_operand.vmem [shape: f32[320,50], index: 5, kind: input, shape index: {}]   ;;  %s4501_s4 = inlined_call_operand.vmem [shape: f32[1,80], index: 4, kind: input, shape index: {}]   ;;  %s4502_s7 = inlined_call_operand.vmem [shape: f32[50,10], index: 7, kind: input, shape index: {}]   ;;  %s4503_s6 = inlined_call_operand.vmem [shape: f32[1,50], index: 6, kind: input, shape index: {}]   ;;  %s4504_s8 = inlined_call_operand.vmem [shape: f32[1,10], index: 8, kind: input, shape index: {}]   ;;  %s4505_s9 = inlined_call_operand.vmem [shape: f32[8,10], index: 9, kind: output, shape index: {}]  }
   0x1   :  { %v2941_v0 = vld [vmem:[%s4496_s0 + $0xa8] sm:$0xff]  ;;  %v2344_v1 = vld [vmem:[%s4496_s0 + $0x38] sm:$0xff]  ;;  %v2957_v3 = vld [vmem:[%s4496_s0 + $0x70] sm:$0xff]  ;;  %s2875_s14 = smov 112   ;;  %s2876_s17 = smov 56   ;;  %vm192_vm5 = vcmask 97280  }
   0x2   :  { %v2949_v2 = vld [vmem:[%s4496_s0 + $0x8] sm:$0xff]  ;;  %134 = vrot.lane.b32.xlu1 %v2941_v0, %s2873_s15  ;;  %58 = vrot.lane.b32.xlu0 %v2344_v1, %s2874_s16  ;;  %v2962_v4 = vld [vmem:[%s4496_s0 + $0x78] sm:$0xff]  ;;  %374 = vst.msk [vmem:[#allocation2 + $0xc0] sm:$0xff] %vm38_vm0, %v2344_v1  ;;  %210 = vst.msk [vmem:[#allocation2 + $0x60] sm:$0xff] %vm38_vm0, %v2957_v3  ;;  %vm114_vm6 = vcmask 687552   ;;  %vm152_vm7 = vcmask 917152  }
   0x3   :  { %40 = vst.msk [vmem:[#allocation2 + $0x10] sm:$0xff] %vm38_vm0, %v2949_v2  ;;  %v2970_v5 = vld [vmem:[%s4496_s0 + $0x40] sm:$0xff]  ;;  %v2975_v6 = vld [vmem:[%s4496_s0 + $0x10] sm:$0xff]  ;;  %211 = vst.msk [vmem:[#allocation2 + $0x70] sm:$0xff] %vm38_vm0, %v2962_v4  ;;  %vm190_vm8 = vcmask 1048448   ;;  %vm1161_vm9 = vcmask 64512  }
   0x4   :  { %v2984_v7 = vld [vmem:[%s4496_s0 + $0x80] sm:$0xff]  ;;  %v2989_v8 = vld [vmem:[%s4496_s0 + $0x48] sm:$0xff]  ;;  %v2994_v9 = vld [vmem:[%s4496_s0 + $0x18] sm:$0xff]  ;;  %41 = vst.msk [vmem:[#allocation2 + $0x20] sm:$0xff] %vm38_vm0, %v2975_v6  ;;  %vm1229_vm10 = vcmask 982016   ;;  %s2879_s13 = smov 120  }
   0x5   :  { %375 = vst.msk [vmem:[#allocation2 + $0xd0] sm:$0xff] %vm38_vm0, %v2970_v5  ;;  %v3003_v10 = vld [vmem:[%s4496_s0 + $0x88] sm:$0xff]  ;;  %v3008_v11 = vld [vmem:[%s4496_s0 + $0x50] sm:$0xff]  ;;  %42 = vst.msk [vmem:[#allocation2 + $0x30] sm:$0xff] %vm38_vm0, %v2994_v9  ;;  %s2881_s18 = smov 96   ;;  %vm1250_vm11 = vcmask 1048512  }
   0x6   :  { %212 = vst.msk [vmem:[#allocation2 + $0x80] sm:$0xff] %vm38_vm0, %v2984_v7  ;;  %376 = vst.msk [vmem:[#allocation2 + $0xe0] sm:$0xff] %vm38_vm0, %v2989_v8  ;;  %172 = vrot.lane.b32.xlu1 %v2949_v2, %s2875_s14  ;;  %96 = vrot.lane.b32.xlu0 %v2957_v3, %s2876_s17  ;;  %v3023_v12 = vld [vmem:[%s4496_s0 + $0x20] sm:$0xff]  ;;  %v3032_v13 = vld [vmem:[%s4496_s0 + $0x90] sm:$0xff]  ;;  %vm1252_vm12 = vcmask 916480   ;;  %vm1277_vm13 = vcmask 850944  }
   0x7   :  { %213 = vst.msk [vmem:[#allocation2 + $0x90] sm:$0xff] %vm38_vm0, %v3003_v10  ;;  %377 = vst.msk [vmem:[#allocation2 + $0xf0] sm:$0xff] %vm38_vm0, %v3008_v11  ;;  %v3037_v14 = vld [vmem:[%s4496_s0 + $0x58] sm:$0xff]  ;;  %v3042_v15 = vld [vmem:[%s4496_s0 + $0x28] sm:$0xff]  ;;  %vm1298_vm14 = vcmask 1048384   ;;  %vm1300_vm15 = vcmask 785408  }
   0x8   :  { %43 = vst.msk [vmem:[#allocation2 + $0x40] sm:$0xff] %vm38_vm0, %v3023_v12  ;;  %v3049_v16 = vld [vmem:[%s4496_s0 + $0x98] sm:$0xff]  ;;  %v3054_v17 = vld [vmem:[%s4496_s0 + $0x60] sm:$0xff]  ;;  %44 = vst.msk [vmem:[#allocation2 + $0x50] sm:$0xff] %vm38_vm0, %v3042_v15  ;;  %s2884_s23 = smov 80  }
   0x9   :  { %214 = vst.msk [vmem:[#allocation2 + $0xa0] sm:$0xff] %vm38_vm0, %v3032_v13  ;;  %378 = vst.msk [vmem:[#allocation2 + $0x100] sm:$0xff] %vm38_vm0, %v3037_v14  ;;  %v3073_v18 = vld [vmem:[%s4496_s0 + $0xb0] sm:$0xff]  ;;  %v742_v19 = vld [vmem:[%s4497_s1 + $0x8] sm:$0xff] }
   0xa   :  { %215 = vst.msk [vmem:[#allocation2 + $0xb0] sm:$0xff] %vm38_vm0, %v3049_v16  ;;  %379 = vst.msk [vmem:[#allocation2 + $0x110] sm:$0xff] %vm38_vm0, %v3054_v17  ;;  %98 = vrot.lane.b32.xlu1 %v2962_v4, %s2876_s17  ;;  %60 = vrot.lane.b32.xlu0 %v2970_v5, %s2874_s16  ;;  %v744_v20 = vld [vmem:[%s4497_s1 + $0x18] sm:$0xff]  ;;  %v741_v21 = vld [vmem:[%s4497_s1] sm:$0xff] }
   0xb   :  { %v743_v22 = vld [vmem:[%s4497_s1 + $0x10] sm:$0xff]  ;;  %v2587_v23 = vpack.c.bf16 %v744_v20, %v742_v19  ;;  %v746_v25 = vld [vmem:[%s4497_s1 + $0x28] sm:$0xff]  ;;  %v748_v26 = vld [vmem:[%s4497_s1 + $0x38] sm:$0xff] }
   0xc   :  { %v2589_v24 = vpack.c.bf16 %v743_v22, %v741_v21  ;;  %v2591_v27 = vpack.c.bf16 %v748_v26, %v746_v25  ;;  %v745_v28 = vld [vmem:[%s4497_s1 + $0x20] sm:$0xff]  ;;  %v747_v29 = vld [vmem:[%s4497_s1 + $0x30] sm:$0xff]  ;;  %v750_v30 = vld [vmem:[%s4497_s1 + $0x48] sm:$0xff] }
   0xd   :  { %v752_v31 = vld [vmem:[%s4497_s1 + $0x58] sm:$0xff]  ;;  %2588 = vmatprep.subr.bf16.mxu0 %v2587_v23  ;;  %v2593_v32 = vpack.c.bf16 %v747_v29, %v745_v28  ;;  %v749_v34 = vld [vmem:[%s4497_s1 + $0x40] sm:$0xff]  ;;  %v751_v35 = vld [vmem:[%s4497_s1 + $0x50] sm:$0xff] }
   0xe   :  { %174 = vrot.lane.b32.xlu1 %v2975_v6, %s2875_s14  ;;  %136 = vrot.lane.b32.xlu0 %v3073_v18, %s2873_s15  ;;  %v2595_v33 = vpack.c.bf16 %v752_v31, %v750_v30  ;;  %v754_v36 = vld [vmem:[%s4497_s1 + $0x68] sm:$0xff]  ;;  %v756_v37 = vld [vmem:[%s4497_s1 + $0x78] sm:$0xff]  ;;  %v2597_v40 = vpack.c.bf16 %v751_v35, %v749_v34  ;;  %vm2620_vm3 = vmpackc.low %vm849_vm1, %vm2877_vm2  ;;  %vm1323_vm1 = vcmask 719872   ;;  %vm2001_vm2 = vcmask 392192  }
   0xf   :  { %2590 = vmatpush1.bf16.msra.mxu0 %v2589_v24  ;;  %v3128_v38 = vld [vmem:[%s4496_s0 + $0xb8] sm:$0xff]  ;;  %v32_v39 = vld [vmem:[%s4496_s0] sm:$0xff]  ;;  %v2599_v41 = vpack.c.bf16 %v756_v37, %v754_v36  ;;  %v755_v43 = vld [vmem:[%s4497_s1 + $0x70] sm:$0xff] }
  0x10   :  { %2592 = vmatprep.subr.bf16.mxu0 %v2591_v27  ;;  %39 = vst.msk [vmem:[#allocation2] sm:$0xff] %vm38_vm0, %v32_v39  ;;  %v753_v42 = vld [vmem:[%s4497_s1 + $0x60] sm:$0xff]  ;;  %v758_v44 = vld [vmem:[%s4497_s1 + $0x88] sm:$0xff]  ;;  %v760_v45 = vld [vmem:[%s4497_s1 + $0x98] sm:$0xff] }
  0x11   :  { %v2601_v46 = vpack.c.bf16 %v755_v43, %v753_v42  ;;  %v2603_v47 = vpack.c.bf16 %v760_v45, %v758_v44  ;;  %v757_v48 = vld [vmem:[%s4497_s1 + $0x80] sm:$0xff]  ;;  %v759_v49 = vld [vmem:[%s4497_s1 + $0x90] sm:$0xff]  ;;  %v762_v50 = vld [vmem:[%s4497_s1 + $0xa8] sm:$0xff] }
  0x12   :  { %100 = vrot.lane.b32.xlu1 %v2984_v7, %s2876_s17  ;;  %62 = vrot.lane.b32.xlu0 %v2989_v8, %s2874_s16  ;;  %v764_v51 = vld [vmem:[%s4497_s1 + $0xb8] sm:$0xff]  ;;  %v3169_v52 = vld [vmem:[%s4496_s0 + $0xc0] sm:$0xff]  ;;  %v2605_v53 = vpack.c.bf16 %v759_v49, %v757_v48 }
  0x13   :  { %2594 = vmatpush1.bf16.msra.mxu0 %v2593_v32  ;;  %v2607_v54 = vpack.c.bf16 %v764_v51, %v762_v50  ;;  %v761_v55 = vld [vmem:[%s4497_s1 + $0xa0] sm:$0xff]  ;;  %v763_v56 = vld [vmem:[%s4497_s1 + $0xb0] sm:$0xff]  ;;  %v766_v57 = vld [vmem:[%s4497_s1 + $0xc8] sm:$0xff] }
  0x14   :  { %2596 = vmatprep.subr.bf16.mxu0 %v2595_v33  ;;  %v768_v58 = vld [vmem:[%s4497_s1 + $0xd8] sm:$0xff]  ;;  %v2609_v59 = vpack.c.bf16 %v763_v56, %v761_v55  ;;  %v765_v61 = vld [vmem:[%s4497_s1 + $0xc0] sm:$0xff]  ;;  %v767_v62 = vld [vmem:[%s4497_s1 + $0xd0] sm:$0xff] }
  0x15   :  { %v2611_v60 = vpack.c.bf16 %v768_v58, %v766_v57  ;;  %v770_v63 = vld [vmem:[%s4497_s1 + $0xe8] sm:$0xff]  ;;  %v772_v1 = vld [vmem:[%s4497_s1 + $0xf8] sm:$0xff]  ;;  %v2613_v20 = vpack.c.bf16 %v767_v62, %v765_v61  ;;  %v769_v22 = vld [vmem:[%s4497_s1 + $0xe0] sm:$0xff] }
  0x16   :  { %176 = vrot.lane.b32.xlu1 %v2994_v9, %s2875_s14  ;;  %138 = vrot.lane.b32.xlu0 %v3128_v38, %s2873_s15  ;;  %v3206_v19 = vld [vmem:[%s4496_s0 + $0xc8] sm:$0xff]  ;;  %v2615_v21 = vpack.c.bf16 %v772_v1, %v770_v63  ;;  %v771_v23 = vld [vmem:[%s4497_s1 + $0xf0] sm:$0xff] }
  0x17   :  { %2598 = vmatpush1.bf16.msra.mxu0 %v2597_v40  ;;  %v774_v24 = vld [vmem:[%s4497_s1 + $0x108] sm:$0xff]  ;;  %v776_v25 = vld [vmem:[%s4497_s1 + $0x118] sm:$0xf]  ;;  %v2617_v26 = vpack.c.bf16 %v771_v23, %v769_v22  ;;  %v773_v28 = vld [vmem:[%s4497_s1 + $0x100] sm:$0xff] }
  0x18   :  { %2600 = vmatprep.subr.bf16.mxu0 %v2599_v41  ;;  %v2619_v27 = vpack.c.bf16 %v776_v25, %v774_v24  ;;  %v775_v29 = vld [vmem:[%s4497_s1 + $0x110] sm:$0xf]  ;;  %v3295_v33 = vld [vmem:[%s4496_s0 + $0xa0] sm:$0xff]  ;;  %v3300_v34 = vld [vmem:[%s4496_s0 + $0x68] sm:$0xff] }
  0x19   :  { %v3237_v30 = vld [vmem:[%s4496_s0 + $0x30] sm:$0xff]  ;;  %v2622_v32 = vpack.c.bf16 %v775_v29, %v773_v28  ;;  %v2430_v61 = vld [vmem:[%s4496_s0 + $0xb8] sm:$0xff]  ;;  %v2431_v1 = vld [vmem:[%s4496_s0 + $0xc0] sm:$0xff] }
  0x1a   :  { %102 = vrot.lane.b32.xlu1 %v3003_v10, %s2876_s17  ;;  %64 = vrot.lane.b32.xlu0 %v3008_v11, %s2874_s16  ;;  %v3242_v31 = vld [vmem:[%s4496_s0 + $0xd0] sm:$0xff]  ;;  %538 = vst.msk [vmem:[#allocation2 + $0x140] sm:$0xff] %vm38_vm0, %v2430_v61  ;;  %539 = vst.msk [vmem:[#allocation2 + $0x150] sm:$0xff] %vm38_vm0, %v2431_v1  ;;  %v2432_v22 = vld [vmem:[%s4496_s0 + $0xc8] sm:$0xff] }
  0x1b   :  { %2602 = vmatpush1.bf16.msra.mxu0 %v2601_v46  ;;  %v2428_v46 = vld [vmem:[%s4496_s0 + $0xa8] sm:$0xff]  ;;  %540 = vst.msk [vmem:[#allocation2 + $0x160] sm:$0xff] %vm38_vm0, %v2432_v22  ;;  %v2433_v25 = vld [vmem:[%s4496_s0 + $0xd0] sm:$0xff] }
  0x1c   :  { %2604 = vmatprep.subr.bf16.mxu0 %v2603_v47  ;;  %536 = vst.msk [vmem:[#allocation2 + $0x120] sm:$0xff] %vm38_vm0, %v2428_v46  ;;  %541 = vst.msk [vmem:[#allocation2 + $0x170] sm:$0xff] %vm38_vm0, %v2433_v25 }
  0x1e   :  { %178 = vrot.lane.b32.xlu1 %v3023_v12, %s2875_s14  ;;  %140 = vrot.lane.b32.xlu0 %v3169_v52, %s2873_s15 }
  0x1f   :  { %2606 = vmatpush1.bf16.msra.mxu0 %v2605_v53 }
  0x20   :  { %2608 = vmatprep.subr.bf16.mxu0 %v2607_v54  ;;  %v2429_v54 = vld [vmem:[%s4496_s0 + $0xb0] sm:$0xff] }
  0x21   :  { %537 = vst.msk [vmem:[#allocation2 + $0x130] sm:$0xff] %vm38_vm0, %v2429_v54  ;;  %vm1321_vm0 = vcmask 1048320  }
  0x22   :  { %104 = vrot.lane.b32.xlu1 %v3032_v13, %s2876_s17  ;;  %66 = vrot.lane.b32.xlu0 %v3037_v14, %s2874_s16 }
  0x23   :  { %2610 = vmatpush1.bf16.msra.mxu0 %v2609_v59 }
  0x24   :  { %2612 = vmatprep.subr.bf16.mxu0 %v2611_v60 }
  0x26   :  { %180 = vrot.lane.b32.xlu1 %v3042_v15, %s2875_s14  ;;  %142 = vrot.lane.b32.xlu0 %v3206_v19, %s2873_s15 }
  0x27   :  { %2614 = vmatpush1.bf16.msra.mxu0 %v2613_v20 }
  0x28   :  { %2616 = vmatprep.subr.bf16.mxu0 %v2615_v21 }
  0x2a   :  { %106 = vrot.lane.b32.xlu1 %v3049_v16, %s2876_s17  ;;  %68 = vrot.lane.b32.xlu0 %v3054_v17, %s2874_s16 }
  0x2b   :  { %2618 = vmatpush1.bf16.msra.mxu0 %v2617_v26 }
  0x2c   :  { %2621 = vmatprep.subr.msk.bf16.mxu0 %vm2620_vm3, %v2619_v27 }
  0x2e   :  { %182 = vrot.lane.b32.xlu1 %v3237_v30, %s2875_s14  ;;  %144 = vrot.lane.b32.xlu0 %v3242_v31, %s2873_s15 }
  0x2f   :  { %2624 = vmatpush1.bf16.msk.msra.mxu0 %vm2620_vm3, %v2622_v32  ;;  %vm2029_vm3 = vcmask 654336  }
  0x32   :  { %264 = vrot.lane.b32.xlu1 %v2949_v2, %s2876_s17  ;;  %228 = vrot.lane.b32.xlu0 %v2941_v0, %s2874_s16 }
  0x36   :  { %338 = vrot.lane.b32.xlu1 %v2962_v4, %s2875_s14  ;;  %301 = vrot.lane.b32.xlu0 %v2970_v5, %s2873_s15 }
  0x3a   :  { %266 = vrot.lane.b32.xlu1 %v2975_v6, %s2876_s17  ;;  %230 = vrot.lane.b32.xlu0 %v3073_v18, %s2874_s16 }
  0x3e   :  { %340 = vrot.lane.b32.xlu1 %v2984_v7, %s2875_s14  ;;  %303 = vrot.lane.b32.xlu0 %v2989_v8, %s2873_s15 }
  0x42   :  { %268 = vrot.lane.b32.xlu1 %v2994_v9, %s2876_s17  ;;  %232 = vrot.lane.b32.xlu0 %v3128_v38, %s2874_s16 }
  0x46   :  { %342 = vrot.lane.b32.xlu1 %v3003_v10, %s2875_s14  ;;  %305 = vrot.lane.b32.xlu0 %v3008_v11, %s2873_s15 }
  0x4a   :  { %270 = vrot.lane.b32.xlu1 %v3023_v12, %s2876_s17  ;;  %234 = vrot.lane.b32.xlu0 %v3169_v52, %s2874_s16 }
  0x4e   :  { %344 = vrot.lane.b32.xlu1 %v3032_v13, %s2875_s14  ;;  %307 = vrot.lane.b32.xlu0 %v3037_v14, %s2873_s15 }
  0x52   :  { %272 = vrot.lane.b32.xlu1 %v3042_v15, %s2876_s17  ;;  %236 = vrot.lane.b32.xlu0 %v3206_v19, %s2874_s16 }
  0x56   :  { %346 = vrot.lane.b32.xlu1 %v3049_v16, %s2875_s14  ;;  %309 = vrot.lane.b32.xlu0 %v3054_v17, %s2873_s15 }
  0x5a   :  { %274 = vrot.lane.b32.xlu1 %v3237_v30, %s2876_s17  ;;  %238 = vrot.lane.b32.xlu0 %v3242_v31, %s2874_s16 }
  0x5e   :  { %348 = vrot.lane.b32.xlu1 %v3295_v33, %s2875_s14  ;;  %311 = vrot.lane.b32.xlu0 %v3300_v34, %s2873_s15 }
  0x62   :  { %428 = vrot.lane.b32.xlu1 %v2941_v0, %s2876_s17  ;;  %392 = vrot.lane.b32.xlu0 %v2957_v3, %s2874_s16 }
  0x66   :  { %500 = vrot.lane.b32.xlu1 %v2970_v5, %s2875_s14  ;;  %464 = vrot.lane.b32.xlu0 %v2949_v2, %s2873_s15 }
  0x6a   :  { %430 = vrot.lane.b32.xlu1 %v3073_v18, %s2876_s17  ;;  %394 = vrot.lane.b32.xlu0 %v2962_v4, %s2874_s16 }
  0x6e   :  { %502 = vrot.lane.b32.xlu1 %v2989_v8, %s2875_s14  ;;  %466 = vrot.lane.b32.xlu0 %v2975_v6, %s2873_s15 }
  0x72   :  { %432 = vrot.lane.b32.xlu1 %v3128_v38, %s2876_s17  ;;  %396 = vrot.lane.b32.xlu0 %v2984_v7, %s2874_s16 }
  0x74   :  { %v135_v0 = vpop.permute.xlu1 %134  ;;  %v59_v3 = vpop.permute.xlu0 %58 }
  0x75   :  { %77 = vst.msk [vmem:[#allocation2] sm:$0xff] %vm76_vm4, %v59_v3 }
  0x76   :  { %504 = vrot.lane.b32.xlu1 %v3008_v11, %s2875_s14  ;;  %468 = vrot.lane.b32.xlu0 %v2994_v9, %s2873_s15 }
  0x78   :  { %v173_v35 = vpop.permute.xlu1 %172  ;;  %v97_v36 = vpop.permute.xlu0 %96 }
  0x79   :  { %193 = vst.msk [vmem:[#allocation2 + $0x8] sm:$0xff] %vm192_vm5, %v173_v35 }
  0x7a   :  { %115 = vst.msk [vmem:[#allocation2] sm:$0xff] %vm114_vm6, %v97_v36  ;;  %434 = vrot.lane.b32.xlu1 %v3169_v52, %s2876_s17  ;;  %398 = vrot.lane.b32.xlu0 %v3003_v10, %s2874_s16 }
  0x7b   :  { %153 = vst.msk [vmem:[#allocation2] sm:$0xff] %vm152_vm7, %v135_v0 }
  0x7c   :  { %191 = vst.msk [vmem:[#allocation2] sm:$0xff] %vm190_vm8, %v173_v35  ;;  %v99_v37 = vpop.permute.xlu1 %98  ;;  %v61_v39 = vpop.permute.xlu0 %60 }
  0x7d   :  { %78 = vst.msk [vmem:[#allocation2 + $0x10] sm:$0xff] %vm76_vm4, %v61_v39 }
  0x7e   :  { %116 = vst.msk [vmem:[#allocation2 + $0x10] sm:$0xff] %vm114_vm6, %v99_v37  ;;  %506 = vrot.lane.b32.xlu1 %v3037_v14, %s2875_s14  ;;  %470 = vrot.lane.b32.xlu0 %v3023_v12, %s2873_s15 }
  0x80   :  { %v175_v40 = vpop.permute.xlu1 %174  ;;  %v137_v41 = vpop.permute.xlu0 %136  ;;  %v694_v42 = vld [vmem:[#allocation2 + $0x8] sm:$0xff] }
  0x81   :  { %195 = vst.msk [vmem:[#allocation2 + $0x18] sm:$0xff] %vm192_vm5, %v175_v40  ;;  %2460 = vmatprep.mubr.msk.f32.mxu0 %vm192_vm5, %v694_v42 }
  0x82   :  { %154 = vst.msk [vmem:[#allocation2 + $0x10] sm:$0xff] %vm152_vm7, %v137_v41  ;;  %436 = vrot.lane.b32.xlu1 %v3206_v19, %s2876_s17  ;;  %400 = vrot.lane.b32.xlu0 %v3032_v13, %s2874_s16 }
  0x83   :  { %194 = vst.msk [vmem:[#allocation2 + $0x10] sm:$0xff] %vm190_vm8, %v175_v40  ;;  %v693_v43 = vld [vmem:[#allocation2] sm:$0xff] }
  0x84   :  { %921 = vmatmul.mubr.f32.vlgmr.msra.gmra.mrb[0].mxu0 %v693_v43  ;;  %v101_v44 = vpop.permute.xlu1 %100  ;;  %v63_v45 = vpop.permute.xlu0 %62 }
  0x85   :  { %79 = vst.msk [vmem:[#allocation2 + $0x20] sm:$0xff] %vm76_vm4, %v63_v45 }
  0x86   :  { %117 = vst.msk [vmem:[#allocation2 + $0x20] sm:$0xff] %vm114_vm6, %v101_v44  ;;  %508 = vrot.lane.b32.xlu1 %v3054_v17, %s2875_s14  ;;  %472 = vrot.lane.b32.xlu0 %v3042_v15, %s2873_s15 }
  0x88   :  { %v177_v47 = vpop.permute.xlu1 %176  ;;  %v139_v48 = vpop.permute.xlu0 %138  ;;  %v696_v49 = vld [vmem:[#allocation2 + $0x18] sm:$0xff] }
  0x89   :  { %197 = vst.msk [vmem:[#allocation2 + $0x28] sm:$0xff] %vm192_vm5, %v177_v47  ;;  %2461 = vmatprep.mubr.msk.f32.mxu0 %vm192_vm5, %v696_v49 }
  0x8a   :  { %155 = vst.msk [vmem:[#allocation2 + $0x20] sm:$0xff] %vm152_vm7, %v139_v48  ;;  %v695_v50 = vld [vmem:[#allocation2 + $0x10] sm:$0xff]  ;;  %438 = vrot.lane.b32.xlu1 %v3242_v31, %s2876_s17  ;;  %402 = vrot.lane.b32.xlu0 %v3049_v16, %s2874_s16 }
  0x8b   :  { %196 = vst.msk [vmem:[#allocation2 + $0x20] sm:$0xff] %vm190_vm8, %v177_v47  ;;  %927 = vmatmul.mubr.f32.gmra.mrb[2].mxu0 %v695_v50 }
  0x8c   :  { %v103_v51 = vpop.permute.xlu1 %102  ;;  %v65_v53 = vpop.permute.xlu0 %64 }
  0x8d   :  { %80 = vst.msk [vmem:[#allocation2 + $0x30] sm:$0xff] %vm76_vm4, %v65_v53 }
  0x8e   :  { %118 = vst.msk [vmem:[#allocation2 + $0x30] sm:$0xff] %vm114_vm6, %v103_v51  ;;  %510 = vrot.lane.b32.xlu1 %v3300_v34, %s2875_s14  ;;  %474 = vrot.lane.b32.xlu0 %v3237_v30, %s2873_s15 }
  0x90   :  { %v179_v55 = vpop.permute.xlu1 %178  ;;  %v141_v56 = vpop.permute.xlu0 %140  ;;  %v698_v57 = vld [vmem:[#allocation2 + $0x28] sm:$0xff] }
  0x91   :  { %199 = vst.msk [vmem:[#allocation2 + $0x38] sm:$0xff] %vm192_vm5, %v179_v55  ;;  %2462 = vmatprep.mubr.msk.f32.mxu0 %vm192_vm5, %v698_v57 }
  0x92   :  { %156 = vst.msk [vmem:[#allocation2 + $0x30] sm:$0xff] %vm152_vm7, %v141_v56  ;;  %v697_v58 = vld [vmem:[#allocation2 + $0x20] sm:$0xff]  ;;  %590 = vrot.lane.b32.xlu1 %v2970_v5, %s2876_s17  ;;  %554 = vrot.lane.b32.xlu0 %v2949_v2, %s2874_s16 }
  0x93   :  { %198 = vst.msk [vmem:[#allocation2 + $0x30] sm:$0xff] %vm190_vm8, %v179_v55  ;;  %933 = vmatmul.mubr.f32.gmra.mrb[4].mxu0 %v697_v58 }
  0x94   :  { %v105_v59 = vpop.permute.xlu1 %104  ;;  %v67_v60 = vpop.permute.xlu0 %66 }
  0x95   :  { %81 = vst.msk [vmem:[#allocation2 + $0x40] sm:$0xff] %vm76_vm4, %v67_v60 }
  0x96   :  { %119 = vst.msk [vmem:[#allocation2 + $0x40] sm:$0xff] %vm114_vm6, %v105_v59  ;;  %663 = vrot.lane.b32.xlu1 %v3073_v18, %s2875_s14  ;;  %626 = vrot.lane.b32.xlu0 %v2962_v4, %s2873_s15 }
  0x98   :  { %v181_v2 = vpop.permute.xlu1 %180  ;;  %v143_v5 = vpop.permute.xlu0 %142  ;;  %v700_v62 = vld [vmem:[#allocation2 + $0x38] sm:$0xff] }
  0x99   :  { %201 = vst.msk [vmem:[#allocation2 + $0x48] sm:$0xff] %vm192_vm5, %v181_v2  ;;  %2463 = vmatprep.mubr.msk.f32.mxu0 %vm192_vm5, %v700_v62 }
  0x9a   :  { %157 = vst.msk [vmem:[#allocation2 + $0x40] sm:$0xff] %vm152_vm7, %v143_v5  ;;  %v699_v63 = vld [vmem:[#allocation2 + $0x30] sm:$0xff]  ;;  %592 = vrot.lane.b32.xlu1 %v2989_v8, %s2876_s17  ;;  %556 = vrot.lane.b32.xlu0 %v2975_v6, %s2874_s16 }
  0x9b   :  { %200 = vst.msk [vmem:[#allocation2 + $0x40] sm:$0xff] %vm190_vm8, %v181_v2  ;;  %939 = vmatmul.mubr.f32.gmra.mrb[6].mxu0 %v699_v63 }
  0x9c   :  { %v107_v4 = vpop.permute.xlu1 %106  ;;  %v69_v18 = vpop.permute.xlu0 %68 }
  0x9d   :  { %82 = vst.msk [vmem:[#allocation2 + $0x50] sm:$0xff] %vm76_vm4, %v69_v18 }
  0x9e   :  { %120 = vst.msk [vmem:[#allocation2 + $0x50] sm:$0xff] %vm114_vm6, %v107_v4  ;;  %665 = vrot.lane.b32.xlu1 %v3128_v38, %s2875_s14  ;;  %628 = vrot.lane.b32.xlu0 %v2984_v7, %s2873_s15 }
  0xa0   :  { %v183_v6 = vpop.permute.xlu1 %182  ;;  %v145_v8 = vpop.permute.xlu0 %144  ;;  %v702_v20 = vld [vmem:[#allocation2 + $0x48] sm:$0xff] }
  0xa1   :  { %203 = vst.msk [vmem:[#allocation2 + $0x58] sm:$0xff] %vm192_vm5, %v183_v6  ;;  %2464 = vmatprep.mubr.msk.f32.mxu0 %vm192_vm5, %v702_v20 }
  0xa2   :  { %158 = vst.msk [vmem:[#allocation2 + $0x50] sm:$0xff] %vm152_vm7, %v145_v8  ;;  %v701_v21 = vld [vmem:[#allocation2 + $0x40] sm:$0xff]  ;;  %594 = vrot.lane.b32.xlu1 %v3008_v11, %s2876_s17  ;;  %558 = vrot.lane.b32.xlu0 %v2994_v9, %s2874_s16 }
  0xa3   :  { %202 = vst.msk [vmem:[#allocation2 + $0x50] sm:$0xff] %vm190_vm8, %v183_v6  ;;  %945 = vmatmul.mubr.f32.gmra.mrb[8].mxu0 %v701_v21 }
  0xa4   :  { %v265_v7 = vpop.permute.xlu1 %264  ;;  %v229_v38 = vpop.permute.xlu0 %228 }
  0xa5   :  { %246 = vst.msk [vmem:[#allocation2 + $0x60] sm:$0xff] %vm76_vm4, %v229_v38 }
  0xa6   :  { %282 = vst.msk [vmem:[#allocation2 + $0x60] sm:$0xff] %vm114_vm6, %v265_v7  ;;  %667 = vrot.lane.b32.xlu1 %v3169_v52, %s2875_s14  ;;  %630 = vrot.lane.b32.xlu0 %v3003_v10, %s2873_s15 }
  0xa8   :  { %v339_v9 = vpop.permute.xlu1 %338  ;;  %v302_v11 = vpop.permute.xlu0 %301  ;;  %v704_v23 = vld [vmem:[#allocation2 + $0x58] sm:$0xff] }
  0xa9   :  { %357 = vst.msk [vmem:[#allocation2 + $0x68] sm:$0xff] %vm192_vm5, %v339_v9  ;;  %2465 = vmatprep.mubr.msk.f32.mxu0 %vm192_vm5, %v704_v23 }
  0xaa   :  { %319 = vst.msk [vmem:[#allocation2 + $0x60] sm:$0xff] %vm152_vm7, %v302_v11  ;;  %v703_v24 = vld [vmem:[#allocation2 + $0x50] sm:$0xff]  ;;  %596 = vrot.lane.b32.xlu1 %v3037_v14, %s2876_s17  ;;  %560 = vrot.lane.b32.xlu0 %v3023_v12, %s2874_s16 }
  0xab   :  { %356 = vst.msk [vmem:[#allocation2 + $0x60] sm:$0xff] %vm190_vm8, %v339_v9  ;;  %951 = vmatmul.mubr.f32.gmra.mrb[10].mxu0 %v703_v24 }
  0xac   :  { %v267_v10 = vpop.permute.xlu1 %266  ;;  %v231_v52 = vpop.permute.xlu0 %230 }
  0xad   :  { %247 = vst.msk [vmem:[#allocation2 + $0x70] sm:$0xff] %vm76_vm4, %v231_v52 }
  0xae   :  { %283 = vst.msk [vmem:[#allocation2 + $0x70] sm:$0xff] %vm114_vm6, %v267_v10  ;;  %669 = vrot.lane.b32.xlu1 %v3206_v19, %s2875_s14  ;;  %632 = vrot.lane.b32.xlu0 %v3032_v13, %s2873_s15 }
  0xb0   :  { %v341_v12 = vpop.permute.xlu1 %340  ;;  %v304_v14 = vpop.permute.xlu0 %303  ;;  %v706_v26 = vld [vmem:[#allocation2 + $0x68] sm:$0xff] }
  0xb1   :  { %359 = vst.msk [vmem:[#allocation2 + $0x78] sm:$0xff] %vm192_vm5, %v341_v12  ;;  %2466 = vmatprep.mubr.msk.f32.mxu0 %vm192_vm5, %v706_v26 }
  0xb2   :  { %320 = vst.msk [vmem:[#allocation2 + $0x70] sm:$0xff] %vm152_vm7, %v304_v14  ;;  %v705_v27 = vld [vmem:[#allocation2 + $0x60] sm:$0xff]  ;;  %598 = vrot.lane.b32.xlu1 %v3054_v17, %s2876_s17  ;;  %562 = vrot.lane.b32.xlu0 %v3042_v15, %s2874_s16 }
  0xb3   :  { %358 = vst.msk [vmem:[#allocation2 + $0x70] sm:$0xff] %vm190_vm8, %v341_v12  ;;  %957 = vmatmul.mubr.f32.gmra.mrb[12].mxu0 %v705_v27 }
  0xb4   :  { %v269_v13 = vpop.permute.xlu1 %268  ;;  %v233_v19 = vpop.permute.xlu0 %232 }
  0xb5   :  { %248 = vst.msk [vmem:[#allocation2 + $0x80] sm:$0xff] %vm76_vm4, %v233_v19 }
  0xb6   :  { %284 = vst.msk [vmem:[#allocation2 + $0x80] sm:$0xff] %vm114_vm6, %v269_v13  ;;  %671 = vrot.lane.b32.xlu1 %v3242_v31, %s2875_s14  ;;  %634 = vrot.lane.b32.xlu0 %v3049_v16, %s2873_s15  ;;  %v2457_v16 = vld [vmem:[%s4496_s0 + $0xd8] sm:$0xff]  ;;  %s2878_s0 = smov 8  }
  0xb8   :  { %v343_v28 = vpop.permute.xlu1 %342  ;;  %v306_v29 = vpop.permute.xlu0 %305  ;;  %v708_v32 = vld [vmem:[#allocation2 + $0x78] sm:$0xff] }
  0xb9   :  { %361 = vst.msk [vmem:[#allocation2 + $0x88] sm:$0xff] %vm192_vm5, %v343_v28  ;;  %2467 = vmatprep.mubr.msk.f32.mxu0 %vm192_vm5, %v708_v32 }
  0xba   :  { %321 = vst.msk [vmem:[#allocation2 + $0x80] sm:$0xff] %vm152_vm7, %v306_v29  ;;  %v707_v15 = vld [vmem:[#allocation2 + $0x70] sm:$0xff]  ;;  %600 = vrot.lane.b32.xlu1 %v3300_v34, %s2876_s17  ;;  %564 = vrot.lane.b32.xlu0 %v3237_v30, %s2874_s16 }
  0xbb   :  { %360 = vst.msk [vmem:[#allocation2 + $0x80] sm:$0xff] %vm190_vm8, %v343_v28  ;;  %963 = vmatmul.mubr.f32.gmra.mrb[14].mxu0 %v707_v15 }
  0xbc   :  { %v271_v17 = vpop.permute.xlu1 %270  ;;  %v235_v31 = vpop.permute.xlu0 %234 }
  0xbd   :  { %249 = vst.msk [vmem:[#allocation2 + $0x90] sm:$0xff] %vm76_vm4, %v235_v31 }
  0xbe   :  { %285 = vst.msk [vmem:[#allocation2 + $0x90] sm:$0xff] %vm114_vm6, %v271_v17  ;;  %673 = vrot.lane.b32.xlu1 %v2457_v16, %s2875_s14  ;;  %636 = vrot.lane.b32.xlu0 %v3295_v33, %s2873_s15 }
  0xc0   :  { %v345_v34 = vpop.permute.xlu1 %344  ;;  %v308_v0 = vpop.permute.xlu0 %307  ;;  %v710_v3 = vld [vmem:[#allocation2 + $0x88] sm:$0xff] }
  0xc1   :  { %363 = vst.msk [vmem:[#allocation2 + $0x98] sm:$0xff] %vm192_vm5, %v345_v34  ;;  %2468 = vmatprep.mubr.msk.f32.mxu0 %vm192_vm5, %v710_v3 }
  0xc2   :  { %322 = vst.msk [vmem:[#allocation2 + $0x90] sm:$0xff] %vm152_vm7, %v308_v0  ;;  %v709_v30 = vld [vmem:[#allocation2 + $0x80] sm:$0xff] }
  0xc3   :  { %362 = vst.msk [vmem:[#allocation2 + $0x90] sm:$0xff] %vm190_vm8, %v345_v34  ;;  %969 = vmatmul.mubr.f32.gmra.mrb[16].mxu0 %v709_v30 }
  0xc4   :  { %v273_v35 = vpop.permute.xlu1 %272  ;;  %v237_v36 = vpop.permute.xlu0 %236 }
  0xc5   :  { %250 = vst.msk [vmem:[#allocation2 + $0xa0] sm:$0xff] %vm76_vm4, %v237_v36 }
  0xc6   :  { %286 = vst.msk [vmem:[#allocation2 + $0xa0] sm:$0xff] %vm114_vm6, %v273_v35 }
  0xc8   :  { %v347_v33 = vpop.permute.xlu1 %346  ;;  %v310_v37 = vpop.permute.xlu0 %309  ;;  %v712_v39 = vld [vmem:[#allocation2 + $0x98] sm:$0xff] }
  0xc9   :  { %365 = vst.msk [vmem:[#allocation2 + $0xa8] sm:$0xff] %vm192_vm5, %v347_v33  ;;  %2469 = vmatprep.mubr.msk.f32.mxu0 %vm192_vm5, %v712_v39 }
  0xca   :  { %323 = vst.msk [vmem:[#allocation2 + $0xa0] sm:$0xff] %vm152_vm7, %v310_v37  ;;  %v711_v40 = vld [vmem:[#allocation2 + $0x90] sm:$0xff] }
  0xcb   :  { %364 = vst.msk [vmem:[#allocation2 + $0xa0] sm:$0xff] %vm190_vm8, %v347_v33  ;;  %975 = vmatmul.mubr.f32.gmra.mrb[18].mxu0 %v711_v40 }
  0xcc   :  { %v275_v41 = vpop.permute.xlu1 %274  ;;  %v239_v42 = vpop.permute.xlu0 %238 }
  0xcd   :  { %251 = vst.msk [vmem:[#allocation2 + $0xb0] sm:$0xff] %vm76_vm4, %v239_v42 }
  0xce   :  { %287 = vst.msk [vmem:[#allocation2 + $0xb0] sm:$0xff] %vm114_vm6, %v275_v41 }
  0xd0   :  { %v349_v43 = vpop.permute.xlu1 %348  ;;  %v312_v44 = vpop.permute.xlu0 %311  ;;  %v714_v45 = vld [vmem:[#allocation2 + $0xa8] sm:$0xff] }
  0xd1   :  { %367 = vst.msk [vmem:[#allocation2 + $0xb8] sm:$0xff] %vm192_vm5, %v349_v43  ;;  %2470 = vmatprep.mubr.msk.f32.mxu0 %vm192_vm5, %v714_v45 }
  0xd2   :  { %324 = vst.msk [vmem:[#allocation2 + $0xb0] sm:$0xff] %vm152_vm7, %v312_v44  ;;  %v713_v46 = vld [vmem:[#allocation2 + $0xa0] sm:$0xff] }
  0xd3   :  { %366 = vst.msk [vmem:[#allocation2 + $0xb0] sm:$0xff] %vm190_vm8, %v349_v43  ;;  %981 = vmatmul.mubr.f32.gmra.mrb[20].mxu0 %v713_v46 }
  0xd4   :  { %v429_v47 = vpop.permute.xlu1 %428  ;;  %v393_v48 = vpop.permute.xlu0 %392 }
  0xd5   :  { %410 = vst.msk [vmem:[#allocation2 + $0xc0] sm:$0xff] %vm76_vm4, %v393_v48 }
  0xd6   :  { %446 = vst.msk [vmem:[#allocation2 + $0xc0] sm:$0xff] %vm114_vm6, %v429_v47 }
  0xd8   :  { %v501_v49 = vpop.permute.xlu1 %500  ;;  %v465_v50 = vpop.permute.xlu0 %464  ;;  %v716_v51 = vld [vmem:[#allocation2 + $0xb8] sm:$0xff] }
  0xd9   :  { %519 = vst.msk [vmem:[#allocation2 + $0xc8] sm:$0xff] %vm192_vm5, %v501_v49  ;;  %2471 = vmatprep.mubr.msk.f32.mxu0 %vm192_vm5, %v716_v51 }
  0xda   :  { %482 = vst.msk [vmem:[#allocation2 + $0xc0] sm:$0xff] %vm152_vm7, %v465_v50  ;;  %v715_v53 = vld [vmem:[#allocation2 + $0xb0] sm:$0xff] }
  0xdb   :  { %518 = vst.msk [vmem:[#allocation2 + $0xc0] sm:$0xff] %vm190_vm8, %v501_v49  ;;  %987 = vmatmul.mubr.f32.gmra.mrb[22].mxu0 %v715_v53 }
  0xdc   :  { %v431_v54 = vpop.permute.xlu1 %430  ;;  %v395_v55 = vpop.permute.xlu0 %394 }
  0xdd   :  { %411 = vst.msk [vmem:[#allocation2 + $0xd0] sm:$0xff] %vm76_vm4, %v395_v55 }
  0xde   :  { %447 = vst.msk [vmem:[#allocation2 + $0xd0] sm:$0xff] %vm114_vm6, %v431_v54 }
  0xe0   :  { %v503_v56 = vpop.permute.xlu1 %502  ;;  %v467_v57 = vpop.permute.xlu0 %466  ;;  %v718_v58 = vld [vmem:[#allocation2 + $0xc8] sm:$0xff] }
  0xe1   :  { %521 = vst.msk [vmem:[#allocation2 + $0xd8] sm:$0xff] %vm192_vm5, %v503_v56  ;;  %2472 = vmatprep.mubr.msk.f32.mxu0 %vm192_vm5, %v718_v58 }
  0xe2   :  { %483 = vst.msk [vmem:[#allocation2 + $0xd0] sm:$0xff] %vm152_vm7, %v467_v57  ;;  %v717_v59 = vld [vmem:[#allocation2 + $0xc0] sm:$0xff] }
  0xe3   :  { %520 = vst.msk [vmem:[#allocation2 + $0xd0] sm:$0xff] %vm190_vm8, %v503_v56  ;;  %993 = vmatmul.mubr.f32.gmra.mrb[24].mxu0 %v717_v59 }
  0xe4   :  { %v433_v60 = vpop.permute.xlu1 %432  ;;  %v397_v61 = vpop.permute.xlu0 %396 }
  0xe5   :  { %412 = vst.msk [vmem:[#allocation2 + $0xe0] sm:$0xff] %vm76_vm4, %v397_v61 }
  0xe6   :  { %448 = vst.msk [vmem:[#allocation2 + $0xe0] sm:$0xff] %vm114_vm6, %v433_v60 }
  0xe8   :  { %v505_v2 = vpop.permute.xlu1 %504  ;;  %v469_v5 = vpop.permute.xlu0 %468  ;;  %v720_v62 = vld [vmem:[#allocation2 + $0xd8] sm:$0xff] }
  0xe9   :  { %523 = vst.msk [vmem:[#allocation2 + $0xe8] sm:$0xff] %vm192_vm5, %v505_v2  ;;  %2473 = vmatprep.mubr.msk.f32.mxu0 %vm192_vm5, %v720_v62 }
  0xea   :  { %484 = vst.msk [vmem:[#allocation2 + $0xe0] sm:$0xff] %vm152_vm7, %v469_v5  ;;  %v719_v63 = vld [vmem:[#allocation2 + $0xd0] sm:$0xff] }
  0xeb   :  { %522 = vst.msk [vmem:[#allocation2 + $0xe0] sm:$0xff] %vm190_vm8, %v505_v2  ;;  %999 = vmatmul.mubr.f32.gmra.mrb[26].mxu0 %v719_v63 }
  0xec   :  { %v435_v4 = vpop.permute.xlu1 %434  ;;  %v399_v18 = vpop.permute.xlu0 %398 }
  0xed   :  { %413 = vst.msk [vmem:[#allocation2 + $0xf0] sm:$0xff] %vm76_vm4, %v399_v18 }
  0xee   :  { %449 = vst.msk [vmem:[#allocation2 + $0xf0] sm:$0xff] %vm114_vm6, %v435_v4 }
  0xf0   :  { %v507_v1 = vpop.permute.xlu1 %506  ;;  %v471_v6 = vpop.permute.xlu0 %470  ;;  %v722_v8 = vld [vmem:[#allocation2 + $0xe8] sm:$0xff] }
  0xf1   :  { %525 = vst.msk [vmem:[#allocation2 + $0xf8] sm:$0xff] %vm192_vm5, %v507_v1  ;;  %2474 = vmatprep.mubr.msk.f32.mxu0 %vm192_vm5, %v722_v8 }
  0xf2   :  { %485 = vst.msk [vmem:[#allocation2 + $0xf0] sm:$0xff] %vm152_vm7, %v471_v6  ;;  %v721_v20 = vld [vmem:[#allocation2 + $0xe0] sm:$0xff] }
  0xf3   :  { %524 = vst.msk [vmem:[#allocation2 + $0xf0] sm:$0xff] %vm190_vm8, %v507_v1  ;;  %1005 = vmatmul.mubr.f32.gmra.mrb[28].mxu0 %v721_v20 }
  0xf4   :  { %v437_v21 = vpop.permute.xlu1 %436  ;;  %v401_v7 = vpop.permute.xlu0 %400 }
  0xf5   :  { %414 = vst.msk [vmem:[#allocation2 + $0x100] sm:$0xff] %vm76_vm4, %v401_v7 }
  0xf6   :  { %450 = vst.msk [vmem:[#allocation2 + $0x100] sm:$0xff] %vm114_vm6, %v437_v21 }
  0xf8   :  { %v509_v38 = vpop.permute.xlu1 %508  ;;  %v473_v22 = vpop.permute.xlu0 %472  ;;  %v724_v9 = vld [vmem:[#allocation2 + $0xf8] sm:$0xff] }
  0xf9   :  { %527 = vst.msk [vmem:[#allocation2 + $0x108] sm:$0xff] %vm192_vm5, %v509_v38  ;;  %2475 = vmatprep.mubr.msk.f32.mxu0 %vm192_vm5, %v724_v9 }
  0xfa   :  { %486 = vst.msk [vmem:[#allocation2 + $0x100] sm:$0xff] %vm152_vm7, %v473_v22  ;;  %v723_v11 = vld [vmem:[#allocation2 + $0xf0] sm:$0xff] }
  0xfb   :  { %526 = vst.msk [vmem:[#allocation2 + $0x100] sm:$0xff] %vm190_vm8, %v509_v38  ;;  %1011 = vmatmul.mubr.f32.gmra.mrb[30].mxu0 %v723_v11 }
  0xfc   :  { %v439_v23 = vpop.permute.xlu1 %438  ;;  %v403_v24 = vpop.permute.xlu0 %402 }
  0xfd   :  { %415 = vst.msk [vmem:[#allocation2 + $0x110] sm:$0xff] %vm76_vm4, %v403_v24 }
  0xfe   :  { %451 = vst.msk [vmem:[#allocation2 + $0x110] sm:$0xff] %vm114_vm6, %v439_v23 }
 0x100   :  { %v511_v10 = vpop.permute.xlu1 %510  ;;  %v475_v52 = vpop.permute.xlu0 %474  ;;  %v726_v25 = vld [vmem:[#allocation2 + $0x108] sm:$0xff] }
 0x101   :  { %529 = vst.msk [vmem:[#allocation2 + $0x118] sm:$0xff] %vm192_vm5, %v511_v10  ;;  %2476 = vmatprep.mubr.msk.f32.mxu0 %vm192_vm5, %v726_v25 }
 0x102   :  { %487 = vst.msk [vmem:[#allocation2 + $0x110] sm:$0xff] %vm152_vm7, %v475_v52  ;;  %v725_v12 = vld [vmem:[#allocation2 + $0x100] sm:$0xff] }
 0x103   :  { %528 = vst.msk [vmem:[#allocation2 + $0x110] sm:$0xff] %vm190_vm8, %v511_v10  ;;  %1017 = vmatmul.mubr.f32.gmra.mrb[32].mxu0 %v725_v12 }
 0x104   :  { %v591_v14 = vpop.permute.xlu1 %590  ;;  %v555_v26 = vpop.permute.xlu0 %554 }
 0x105   :  { %572 = vst.msk [vmem:[#allocation2 + $0x120] sm:$0xff] %vm76_vm4, %v555_v26 }
 0x106   :  { %608 = vst.msk [vmem:[#allocation2 + $0x120] sm:$0xff] %vm114_vm6, %v591_v14 }
 0x108   :  { %v664_v27 = vpop.permute.xlu1 %663  ;;  %v627_v13 = vpop.permute.xlu0 %626  ;;  %v728_v19 = vld [vmem:[#allocation2 + $0x118] sm:$0xff] }
 0x109   :  { %682 = vst.msk [vmem:[#allocation2 + $0x128] sm:$0xff] %vm192_vm5, %v664_v27  ;;  %2477 = vmatprep.mubr.msk.f32.mxu0 %vm192_vm5, %v728_v19 }
 0x10a   :  { %644 = vst.msk [vmem:[#allocation2 + $0x120] sm:$0xff] %vm152_vm7, %v627_v13  ;;  %v727_v28 = vld [vmem:[#allocation2 + $0x110] sm:$0xff] }
 0x10b   :  { %681 = vst.msk [vmem:[#allocation2 + $0x120] sm:$0xff] %vm190_vm8, %v664_v27  ;;  %1023 = vmatmul.mubr.f32.gmra.mrb[34].mxu0 %v727_v28 }
 0x10c   :  { %v593_v29 = vpop.permute.xlu1 %592  ;;  %v557_v32 = vpop.permute.xlu0 %556 }
 0x10d   :  { %573 = vst.msk [vmem:[#allocation2 + $0x130] sm:$0xff] %vm76_vm4, %v557_v32 }
 0x10e   :  { %609 = vst.msk [vmem:[#allocation2 + $0x130] sm:$0xff] %vm114_vm6, %v593_v29 }
 0x110   :  { %v666_v15 = vpop.permute.xlu1 %665  ;;  %v629_v16 = vpop.permute.xlu0 %628  ;;  %v730_v17 = vld [vmem:[#allocation2 + $0x128] sm:$0xff] }
 0x111   :  { %684 = vst.msk [vmem:[#allocation2 + $0x138] sm:$0xff] %vm192_vm5, %v666_v15  ;;  %2478 = vmatprep.mubr.msk.f32.mxu0 %vm192_vm5, %v730_v17 }
 0x112   :  { %645 = vst.msk [vmem:[#allocation2 + $0x130] sm:$0xff] %vm152_vm7, %v629_v16  ;;  %v729_v31 = vld [vmem:[#allocation2 + $0x120] sm:$0xff] }
 0x113   :  { %683 = vst.msk [vmem:[#allocation2 + $0x130] sm:$0xff] %vm190_vm8, %v666_v15  ;;  %1029 = vmatmul.mubr.f32.gmra.mrb[36].mxu0 %v729_v31 }
 0x114   :  { %v595_v34 = vpop.permute.xlu1 %594  ;;  %v559_v0 = vpop.permute.xlu0 %558 }
 0x115   :  { %574 = vst.msk [vmem:[#allocation2 + $0x140] sm:$0xff] %vm76_vm4, %v559_v0 }
 0x116   :  { %610 = vst.msk [vmem:[#allocation2 + $0x140] sm:$0xff] %vm114_vm6, %v595_v34 }
 0x118   :  { %v668_v3 = vpop.permute.xlu1 %667  ;;  %v631_v30 = vpop.permute.xlu0 %630  ;;  %v732_v35 = vld [vmem:[#allocation2 + $0x138] sm:$0xff] }
 0x119   :  { %686 = vst.msk [vmem:[#allocation2 + $0x148] sm:$0xff] %vm192_vm5, %v668_v3  ;;  %2479 = vmatprep.mubr.msk.f32.mxu0 %vm192_vm5, %v732_v35 }
 0x11a   :  { %646 = vst.msk [vmem:[#allocation2 + $0x140] sm:$0xff] %vm152_vm7, %v631_v30  ;;  %v731_v36 = vld [vmem:[#allocation2 + $0x130] sm:$0xff] }
 0x11b   :  { %685 = vst.msk [vmem:[#allocation2 + $0x140] sm:$0xff] %vm190_vm8, %v668_v3  ;;  %1035 = vmatmul.mubr.f32.gmra.mrb[38].mxu0 %v731_v36 }
 0x11c   :  { %v597_v33 = vpop.permute.xlu1 %596  ;;  %v561_v37 = vpop.permute.xlu0 %560 }
 0x11d   :  { %575 = vst.msk [vmem:[#allocation2 + $0x150] sm:$0xff] %vm76_vm4, %v561_v37 }
 0x11e   :  { %611 = vst.msk [vmem:[#allocation2 + $0x150] sm:$0xff] %vm114_vm6, %v597_v33 }
 0x120   :  { %v670_v39 = vpop.permute.xlu1 %669  ;;  %v633_v40 = vpop.permute.xlu0 %632  ;;  %v734_v41 = vld [vmem:[#allocation2 + $0x148] sm:$0xff] }
 0x121   :  { %688 = vst.msk [vmem:[#allocation2 + $0x158] sm:$0xff] %vm192_vm5, %v670_v39  ;;  %2480 = vmatprep.mubr.msk.f32.mxu0 %vm192_vm5, %v734_v41 }
 0x122   :  { %647 = vst.msk [vmem:[#allocation2 + $0x150] sm:$0xff] %vm152_vm7, %v633_v40  ;;  %v733_v42 = vld [vmem:[#allocation2 + $0x140] sm:$0xff] }
 0x123   :  { %687 = vst.msk [vmem:[#allocation2 + $0x150] sm:$0xff] %vm190_vm8, %v670_v39  ;;  %1041 = vmatmul.mubr.f32.gmra.mrb[40].mxu0 %v733_v42 }
 0x124   :  { %v599_v43 = vpop.permute.xlu1 %598  ;;  %v563_v44 = vpop.permute.xlu0 %562 }
 0x125   :  { %576 = vst.msk [vmem:[#allocation2 + $0x160] sm:$0xff] %vm76_vm4, %v563_v44 }
 0x126   :  { %612 = vst.msk [vmem:[#allocation2 + $0x160] sm:$0xff] %vm114_vm6, %v599_v43 }
 0x128   :  { %v672_v45 = vpop.permute.xlu1 %671  ;;  %v635_v46 = vpop.permute.xlu0 %634  ;;  %v736_v47 = vld [vmem:[#allocation2 + $0x158] sm:$0xff] }
 0x129   :  { %690 = vst.msk [vmem:[#allocation2 + $0x168] sm:$0xff] %vm192_vm5, %v672_v45  ;;  %2481 = vmatprep.mubr.msk.f32.mxu0 %vm192_vm5, %v736_v47 }
 0x12a   :  { %648 = vst.msk [vmem:[#allocation2 + $0x160] sm:$0xff] %vm152_vm7, %v635_v46  ;;  %v735_v48 = vld [vmem:[#allocation2 + $0x150] sm:$0xff] }
 0x12b   :  { %689 = vst.msk [vmem:[#allocation2 + $0x160] sm:$0xff] %vm190_vm8, %v672_v45  ;;  %1047 = vmatmul.mubr.f32.gmra.mrb[42].mxu0 %v735_v48 }
 0x12c   :  { %v601_v49 = vpop.permute.xlu1 %600  ;;  %v565_v50 = vpop.permute.xlu0 %564 }
 0x12d   :  { %577 = vst.msk [vmem:[#allocation2 + $0x170] sm:$0xff] %vm76_vm4, %v565_v50  ;;  %vm2035_vm4 = vcmask 1048192  }
 0x12e   :  { %613 = vst.msk [vmem:[#allocation2 + $0x170] sm:$0xff] %vm114_vm6, %v601_v49  ;;  %vm2043_vm6 = vcmask 916736  }
 0x130   :  { %v674_v51 = vpop.permute.xlu1 %673  ;;  %v637_v53 = vpop.permute.xlu0 %636  ;;  %v738_v54 = vld [vmem:[#allocation2 + $0x168] sm:$0xff] }
 0x131   :  { %692 = vst.msk [vmem:[#allocation2 + $0x178] sm:$0xff] %vm192_vm5, %v674_v51  ;;  %2482 = vmatprep.mubr.msk.f32.mxu0 %vm192_vm5, %v738_v54 }
 0x132   :  { %649 = vst.msk [vmem:[#allocation2 + $0x170] sm:$0xff] %vm152_vm7, %v637_v53  ;;  %v737_v55 = vld [vmem:[#allocation2 + $0x160] sm:$0xff]  ;;  %vm2050_vm7 = vcmask 523264  }
 0x133   :  { %691 = vst.msk [vmem:[#allocation2 + $0x170] sm:$0xff] %vm190_vm8, %v674_v51  ;;  %1053 = vmatmul.mubr.f32.gmra.mrb[44].mxu0 %v737_v55 }
 0x138   :  { %v740_v56 = vld [vmem:[#allocation2 + $0x178] sm:$0xff] }
 0x139   :  { %2483 = vmatprep.mubr.msk.f32.mxu0 %vm192_vm5, %v740_v56  ;;  %vm2037_vm5 = vcmask 261120  }
 0x13a   :  { %v739_v57 = vld [vmem:[#allocation2 + $0x170] sm:$0xff] }
 0x13b   :  { %1059 = vmatmul.mubr.f32.gmra.mrb[46].mxu0 %v739_v57 }
 0x157   :  { %v922_v58 = vpop.f32.mrb[0].mxu0 }
 0x158   :  { %v3572_v59 = vpop.f32.mrb[1].mxu0 }
 0x15e   :  { %v928_v60 = vpop.f32.mrb[2].mxu0 }
 0x15f   :  { %v930_v61 = vpop.f32.mrb[3].mxu0 }
 0x166   :  { %v934_v2 = vpop.f32.mrb[4].mxu0 }
 0x167   :  { %v936_v5 = vpop.f32.mrb[5].mxu0 }
 0x16e   :  { %v940_v62 = vpop.f32.mrb[6].mxu0 }
 0x16f   :  { %v942_v63 = vpop.f32.mrb[7].mxu0 }
 0x176   :  { %v946_v4 = vpop.f32.mrb[8].mxu0 }
 0x177   :  { %v3574_v18 = vpop.f32.mrb[9].mxu0 }
 0x17e   :  { %v952_v1 = vpop.f32.mrb[10].mxu0 }
 0x17f   :  { %v3576_v6 = vpop.f32.mrb[11].mxu0 }
 0x186   :  { %v958_v8 = vpop.f32.mrb[12].mxu0 }
 0x187   :  { %v960_v20 = vpop.f32.mrb[13].mxu0 }
 0x18e   :  { %v964_v21 = vpop.f32.mrb[14].mxu0 }
 0x18f   :  { %v966_v7 = vpop.f32.mrb[15].mxu0 }
 0x196   :  { %v970_v38 = vpop.f32.mrb[16].mxu0 }
 0x197   :  { %v972_v22 = vpop.f32.mrb[17].mxu0 }
 0x19e   :  { %v976_v9 = vpop.f32.mrb[18].mxu0 }
 0x19f   :  { %v978_v11 = vpop.f32.mrb[19].mxu0 }
 0x1a6   :  { %v982_v23 = vpop.f32.mrb[20].mxu0 }
 0x1a7   :  { %v3578_v24 = vpop.f32.mrb[21].mxu0 }
 0x1ae   :  { %v3580_v10 = vpop.f32.mrb[22].mxu0 }
 0x1af   :  { %v3582_v52 = vpop.f32.mrb[23].mxu0 }
 0x1b6   :  { %v994_v25 = vpop.f32.mrb[24].mxu0 }
 0x1b7   :  { %v3584_v12 = vmax.f32 %v922_v58, %v994_v25  ;;  %v996_v14 = vpop.f32.mrb[25].mxu0  ;;  %v1464_v25 = vld [vmem:[%s4498_s3 + $0x40] sm:$0xff] }
 0x1b8   :  { %v1066_v26 = vmax.f32 %v3572_v59, %v996_v14 }
 0x1be   :  { %v1000_v27 = vpop.f32.mrb[26].mxu0 }
 0x1bf   :  { %v3587_v13 = vmax.f32 %v928_v60, %v1000_v27  ;;  %v1002_v19 = vpop.f32.mrb[27].mxu0  ;;  %v1469_v27 = vld [vmem:[%s4498_s3 + $0x68] sm:$0xff] }
 0x1c0   :  { %v1068_v28 = vmax.f32 %v930_v61, %v1002_v19  ;;  %v1471_v19 = vld [vmem:[%s4498_s3 + $0x78] sm:$0xff] }
 0x1c6   :  { %v1006_v29 = vpop.f32.mrb[28].mxu0 }
 0x1c7   :  { %v3589_v32 = vmax.f32 %v934_v2, %v1006_v29  ;;  %v1008_v15 = vpop.f32.mrb[29].mxu0  ;;  %v2637_v29 = vpack.c.bf16 %v1471_v19, %v1469_v27  ;;  %v1496_v27 = vld [vmem:[%s4498_s3 + $0x140] sm:$0xff]  ;;  %v1498_v19 = vld [vmem:[%s4498_s3 + $0x150] sm:$0xff] }
 0x1c8   :  { %v1070_v16 = vmax.f32 %v936_v5, %v1008_v15  ;;  %v1468_v15 = vld [vmem:[%s4498_s3 + $0x60] sm:$0xff] }
 0x1ce   :  { %v1012_v17 = vpop.f32.mrb[30].mxu0 }
 0x1cf   :  { %v3591_v31 = vmax.f32 %v940_v62, %v1012_v17  ;;  %v1014_v34 = vpop.f32.mrb[31].mxu0  ;;  %v1473_v17 = vld [vmem:[%s4498_s3 + $0x88] sm:$0xff] }
 0x1d0   :  { %v1072_v0 = vmax.f32 %v942_v63, %v1014_v34  ;;  %v1475_v34 = vld [vmem:[%s4498_s3 + $0x98] sm:$0xff] }
 0x1d6   :  { %v1018_v3 = vpop.f32.mrb[32].mxu0 }
 0x1d7   :  { %v3593_v30 = vmax.f32 %v946_v4, %v1018_v3  ;;  %v1020_v35 = vpop.f32.mrb[33].mxu0  ;;  %v1457_v4 = vld [vmem:[%s4498_s3 + $0x8] sm:$0xff]  ;;  %v2641_v3 = vpack.c.bf16 %v1475_v34, %v1473_v17  ;;  %v1500_v17 = vld [vmem:[%s4498_s3 + $0x160] sm:$0xff]  ;;  %v1502_v34 = vld [vmem:[%s4498_s3 + $0x170] sm:$0xff] }
 0x1d8   :  { %v1074_v36 = vmax.f32 %v3574_v18, %v1020_v35  ;;  %v1459_v18 = vld [vmem:[%s4498_s3 + $0x18] sm:$0xff]  ;;  %v1472_v35 = vld [vmem:[%s4498_s3 + $0x80] sm:$0xff] }
 0x1de   :  { %v1024_v33 = vpop.f32.mrb[34].mxu0 }
 0x1df   :  { %v3596_v37 = vmax.f32 %v952_v1, %v1024_v33  ;;  %v3598_v39 = vpop.f32.mrb[35].mxu0  ;;  %v1456_v1 = vld [vmem:[%s4498_s3] sm:$0xff]  ;;  %v1477_v33 = vld [vmem:[%s4498_s3 + $0xa8] sm:$0xff] }
 0x1e0   :  { %v1076_v40 = vmax.f32 %v3576_v6, %v3598_v39 }
 0x1e6   :  { %v1030_v41 = vpop.f32.mrb[36].mxu0 }
 0x1e7   :  { %v3602_v42 = vmax.f32 %v958_v8, %v1030_v41  ;;  %v1032_v43 = vpop.f32.mrb[37].mxu0  ;;  %v2625_v8 = vpack.c.bf16 %v1459_v18, %v1457_v4  ;;  %v1479_v41 = vld [vmem:[%s4498_s3 + $0xb8] sm:$0xff]  ;;  %v1486_v4 = vld [vmem:[%s4498_s3 + $0xf0] sm:$0xff]  ;;  %v1489_v18 = vld [vmem:[%s4498_s3 + $0x108] sm:$0xff] }
 0x1e8   :  { %v1078_v44 = vmax.f32 %v960_v20, %v1032_v43  ;;  %v1458_v20 = vld [vmem:[%s4498_s3 + $0x10] sm:$0xff] }
 0x1e9   :  { %1137 = vrot.lane.b32.xlu0 %v3602_v42, %s2878_s0  ;;  %2626 = vmatprep.subr.bf16.mxu1 %v2625_v8 }
 0x1ea   :  { %1139 = vrot.lane.b32.xlu1 %v1078_v44, %s2878_s0  ;;  %v2645_v44 = vpack.c.bf16 %v1479_v41, %v1477_v33  ;;  %v1504_v33 = vld [vmem:[%s4498_s3 + $0x180] sm:$0xff]  ;;  %v1506_v41 = vld [vmem:[%s4498_s3 + $0x190] sm:$0xff] }
 0x1ed   :  { %1117 = vrot.lane.b32.xlu0 %v3587_v13, %s2878_s0 }
 0x1ee   :  { %1119 = vrot.lane.b32.xlu1 %v1068_v28, %s2878_s0  ;;  %v1036_v45 = vpop.f32.mrb[38].mxu0 }
 0x1ef   :  { %v3610_v46 = vmax.f32 %v964_v21, %v1036_v45  ;;  %v1038_v47 = vpop.f32.mrb[39].mxu0  ;;  %v2627_v21 = vpack.c.bf16 %v1458_v20, %v1456_v1  ;;  %v1476_v45 = vld [vmem:[%s4498_s3 + $0xa0] sm:$0xff]  ;;  %v1491_v1 = vld [vmem:[%s4498_s3 + $0x118] sm:$0xff] }
 0x1f0   :  { %v1080_v48 = vmax.f32 %v966_v7, %v1038_v47  ;;  %v1461_v7 = vld [vmem:[%s4498_s3 + $0x28] sm:$0xff]  ;;  %v1478_v47 = vld [vmem:[%s4498_s3 + $0xb0] sm:$0xff]  ;;  %v2657_v20 = vpack.c.bf16 %v1491_v1, %v1489_v18 }
 0x1f1   :  { %1121 = vrot.lane.b32.xlu0 %v3589_v32, %s2878_s0  ;;  %2628 = vmatpush1.bf16.msra.mxu1 %v2627_v21  ;;  %v1488_v21 = vld [vmem:[%s4498_s3 + $0x100] sm:$0xff]  ;;  %v1517_v1 = vld [vmem:[%s4498_s3 + $0x1e8] sm:$0xff] }
 0x1f2   :  { %1123 = vrot.lane.b32.xlu1 %v1070_v16, %s2878_s0  ;;  %v1470_v16 = vld [vmem:[%s4498_s3 + $0x70] sm:$0xff] }
 0x1f5   :  { %1125 = vrot.lane.b32.xlu0 %v3591_v31, %s2878_s0 }
 0x1f6   :  { %1127 = vrot.lane.b32.xlu1 %v1072_v0, %s2878_s0  ;;  %v1042_v49 = vpop.f32.mrb[40].mxu0  ;;  %v2639_v0 = vpack.c.bf16 %v1470_v16, %v1468_v15  ;;  %v2667_v15 = vpack.c.bf16 %v1498_v19, %v1496_v27 }
 0x1f7   :  { %v3618_v50 = vmax.f32 %v970_v38, %v1042_v49  ;;  %v1044_v51 = vpop.f32.mrb[41].mxu0  ;;  %v1463_v38 = vld [vmem:[%s4498_s3 + $0x38] sm:$0xff] }
 0x1f8   :  { %v1082_v53 = vmax.f32 %v972_v22, %v1044_v51  ;;  %v1460_v22 = vld [vmem:[%s4498_s3 + $0x20] sm:$0xff]  ;;  %v1483_v49 = vld [vmem:[%s4498_s3 + $0xd8] sm:$0xff]  ;;  %v2647_v51 = vpack.c.bf16 %v1478_v47, %v1476_v45 }
 0x1f9   :  { %1141 = vrot.lane.b32.xlu0 %v3610_v46, %s2878_s0  ;;  %v1511_v45 = vld [vmem:[%s4498_s3 + $0x1b8] sm:$0xff] }
 0x1fa   :  { %1143 = vrot.lane.b32.xlu1 %v1080_v48, %s2878_s0  ;;  %v1481_v48 = vld [vmem:[%s4498_s3 + $0xc8] sm:$0xff] }
 0x1fd   :  { %1145 = vrot.lane.b32.xlu0 %v3618_v50, %s2878_s0 }
 0x1fe   :  { %1147 = vrot.lane.b32.xlu1 %v1082_v53, %s2878_s0  ;;  %v1048_v54 = vpop.f32.mrb[42].mxu0  ;;  %v2649_v53 = vpack.c.bf16 %v1483_v49, %v1481_v48  ;;  %v1508_v48 = vld [vmem:[%s4498_s3 + $0x1a0] sm:$0xff]  ;;  %v1510_v49 = vld [vmem:[%s4498_s3 + $0x1b0] sm:$0xff] }
 0x1ff   :  { %v3626_v55 = vmax.f32 %v976_v9, %v1048_v54  ;;  %v1050_v56 = vpop.f32.mrb[43].mxu0  ;;  %v2629_v9 = vpack.c.bf16 %v1463_v38, %v1461_v7  ;;  %v1480_v54 = vld [vmem:[%s4498_s3 + $0xc0] sm:$0xff]  ;;  %v1490_v7 = vld [vmem:[%s4498_s3 + $0x110] sm:$0xff]  ;;  %v1493_v38 = vld [vmem:[%s4498_s3 + $0x128] sm:$0xff] }
 0x200   :  { %v1084_v57 = vmax.f32 %v978_v11, %v1050_v56  ;;  %v1462_v11 = vld [vmem:[%s4498_s3 + $0x30] sm:$0xff] }
 0x201   :  { %1149 = vrot.lane.b32.xlu0 %v3626_v55, %s2878_s0  ;;  %2630 = vmatprep.subr.bf16.mxu1 %v2629_v9  ;;  %v1482_v56 = vld [vmem:[%s4498_s3 + $0xd0] sm:$0xff]  ;;  %v2659_v9 = vpack.c.bf16 %v1490_v7, %v1488_v21  ;;  %v1516_v7 = vld [vmem:[%s4498_s3 + $0x1e0] sm:$0xff] }
 0x202   :  { %1151 = vrot.lane.b32.xlu1 %v1084_v57, %s2878_s0  ;;  %v1485_v57 = vld [vmem:[%s4498_s3 + $0xe8] sm:$0xff] }
 0x205   :  { %1129 = vrot.lane.b32.xlu0 %v3593_v30, %s2878_s0 }
 0x206   :  { %1131 = vrot.lane.b32.xlu1 %v1074_v36, %s2878_s0  ;;  %v1054_v58 = vpop.f32.mrb[44].mxu0  ;;  %v1474_v36 = vld [vmem:[%s4498_s3 + $0x90] sm:$0xff] }
 0x207   :  { %v3634_v59 = vmax.f32 %v982_v23, %v1054_v58  ;;  %v1056_v60 = vpop.f32.mrb[45].mxu0  ;;  %v2631_v23 = vpack.c.bf16 %v1462_v11, %v1460_v22  ;;  %v2643_v43 = vpack.c.bf16 %v1474_v36, %v1472_v35  ;;  %v1487_v58 = vld [vmem:[%s4498_s3 + $0xf8] sm:$0xff]  ;;  %v2671_v35 = vpack.c.bf16 %v1502_v34, %v1500_v17 }
 0x208   :  { %v1086_v61 = vmax.f32 %v3578_v24, %v1056_v60  ;;  %v1465_v24 = vld [vmem:[%s4498_s3 + $0x48] sm:$0xff]  ;;  %v2651_v60 = vpack.c.bf16 %v1482_v56, %v1480_v54  ;;  %v1495_v22 = vld [vmem:[%s4498_s3 + $0x138] sm:$0xff] }
 0x209   :  { %1113 = vrot.lane.b32.xlu0 %v3584_v12, %s2878_s0  ;;  %2632 = vmatpush1.bf16.msra.mxu1 %v2631_v23  ;;  %v2661_v11 = vpack.c.bf16 %v1495_v22, %v1493_v38  ;;  %v1492_v23 = vld [vmem:[%s4498_s3 + $0x120] sm:$0xff]  ;;  %v1515_v54 = vld [vmem:[%s4498_s3 + $0x1d8] sm:$0xff]  ;;  %v1518_v38 = vld [vmem:[%s4498_s3 + $0x1f0] sm:$0xff] }
 0x20a   :  { %1115 = vrot.lane.b32.xlu1 %v1066_v26, %s2878_s0  ;;  %v1466_v26 = vld [vmem:[%s4498_s3 + $0x50] sm:$0xff] }
 0x20b   :  { %v2635_v28 = vpack.c.bf16 %v1466_v26, %v1464_v25  ;;  %v1499_v25 = vld [vmem:[%s4498_s3 + $0x158] sm:$0xff] }
 0x20d   :  { %1153 = vrot.lane.b32.xlu0 %v3634_v59, %s2878_s0 }
 0x20e   :  { %1155 = vrot.lane.b32.xlu1 %v1086_v61, %s2878_s0  ;;  %v1060_v2 = vpop.f32.mrb[46].mxu0  ;;  %v2653_v61 = vpack.c.bf16 %v1487_v58, %v1485_v57  ;;  %v1512_v57 = vld [vmem:[%s4498_s3 + $0x1c0] sm:$0xff]  ;;  %v1514_v58 = vld [vmem:[%s4498_s3 + $0x1d0] sm:$0xff] }
 0x20f   :  { %v3644_v5 = vmax.f32 %v3580_v10, %v1060_v2  ;;  %v3646_v62 = vpop.f32.mrb[47].mxu0  ;;  %v1467_v10 = vld [vmem:[%s4498_s3 + $0x58] sm:$0xff]  ;;  %v1484_v2 = vld [vmem:[%s4498_s3 + $0xe0] sm:$0xff] }
 0x210   :  { %v1088_v63 = vmax.f32 %v3582_v52, %v3646_v62  ;;  %v2633_v14 = vpack.c.bf16 %v1467_v10, %v1465_v24  ;;  %v2655_v8 = vpack.c.bf16 %v1486_v4, %v1484_v2  ;;  %v1494_v24 = vld [vmem:[%s4498_s3 + $0x130] sm:$0xff]  ;;  %v1497_v10 = vld [vmem:[%s4498_s3 + $0x148] sm:$0xff]  ;;  %v3833_v4 = vld [vmem:[%s4499_s2] ss:$0 sm:$0xff] }
 0x211   :  { %v2665_v26 = vpack.c.bf16 %v1499_v25, %v1497_v10  ;;  %v1523_v10 = vld [vmem:[%s4498_s3 + $0x218] sm:$0xff] }
 0x212   :  { %2634 = vmatprep.subr.bf16.mxu1 %v2633_v14  ;;  %v2663_v14 = vpack.c.bf16 %v1494_v24, %v1492_v23 }
 0x213   :  { %2636 = vmatpush1.bf16.msra.mxu1 %v2635_v28  ;;  %v1501_v28 = vld [vmem:[%s4498_s3 + $0x168] sm:$0xff] }
 0x214   :  { %2638 = vmatprep.subr.bf16.mxu1 %v2637_v29  ;;  %v1503_v29 = vld [vmem:[%s4498_s3 + $0x178] sm:$0xff] }
 0x215   :  { %v2669_v16 = vpack.c.bf16 %v1503_v29, %v1501_v28 }
 0x217   :  { %2640 = vmatpush1.bf16.msra.mxu1 %v2639_v0  ;;  %v1505_v0 = vld [vmem:[%s4498_s3 + $0x188] sm:$0xff] }
 0x218   :  { %2642 = vmatprep.subr.bf16.mxu1 %v2641_v3  ;;  %v1507_v3 = vld [vmem:[%s4498_s3 + $0x198] sm:$0xff] }
 0x219   :  { %v2673_v36 = vpack.c.bf16 %v1507_v3, %v1505_v0 }
 0x21b   :  { %2644 = vmatpush1.bf16.msra.mxu1 %v2643_v43  ;;  %v2675_v43 = vpack.c.bf16 %v1506_v41, %v1504_v33 }
 0x21c   :  { %2646 = vmatprep.subr.bf16.mxu1 %v2645_v44  ;;  %v1509_v44 = vld [vmem:[%s4498_s3 + $0x1a8] sm:$0xff] }
 0x21d   :  { %v2677_v47 = vpack.c.bf16 %v1511_v45, %v1509_v44 }
 0x21f   :  { %2648 = vmatpush1.bf16.msra.mxu1 %v2647_v51  ;;  %v2679_v51 = vpack.c.bf16 %v1510_v49, %v1508_v48 }
 0x220   :  { %2650 = vmatprep.subr.bf16.mxu1 %v2649_v53  ;;  %v1513_v53 = vld [vmem:[%s4498_s3 + $0x1c8] sm:$0xff] }
 0x221   :  { %v2681_v56 = vpack.c.bf16 %v1515_v54, %v1513_v53 }
 0x223   :  { %2652 = vmatpush1.bf16.msra.mxu1 %v2651_v60 }
 0x224   :  { %2654 = vmatprep.subr.bf16.mxu1 %v2653_v61  ;;  %v2683_v61 = vpack.c.bf16 %v1514_v58, %v1512_v57 }
 0x227   :  { %2656 = vmatpush1.bf16.msra.mxu1 %v2655_v8  ;;  %v1519_v8 = vld [vmem:[%s4498_s3 + $0x1f8] sm:$0xff] }
 0x228   :  { %2658 = vmatprep.subr.bf16.mxu1 %v2657_v20  ;;  %v2685_v21 = vpack.c.bf16 %v1519_v8, %v1517_v1 }
 0x22b   :  { %2660 = vmatpush1.bf16.msra.mxu1 %v2659_v9  ;;  %v2687_v9 = vpack.c.bf16 %v1518_v38, %v1516_v7 }
 0x22c   :  { %2662 = vmatprep.subr.bf16.mxu1 %v2661_v11 }
 0x22f   :  { %2664 = vmatpush1.bf16.msra.mxu1 %v2663_v14 }
 0x230   :  { %2666 = vmatprep.subr.bf16.mxu1 %v2665_v26 }
 0x233   :  { %2668 = vmatpush1.bf16.msra.mxu1 %v2667_v15 }
 0x234   :  { %2670 = vmatprep.subr.bf16.mxu1 %v2669_v16 }
 0x237   :  { %2672 = vmatpush1.bf16.msra.mxu1 %v2671_v35 }
 0x238   :  { %2674 = vmatprep.subr.bf16.mxu1 %v2673_v36 }
 0x23b   :  { %2676 = vmatpush1.bf16.msra.mxu1 %v2675_v43 }
 0x23c   :  { %2678 = vmatprep.subr.bf16.mxu1 %v2677_v47 }
 0x23f   :  { %2680 = vmatpush1.bf16.msra.mxu1 %v2679_v51 }
 0x240   :  { %2682 = vmatprep.subr.bf16.mxu1 %v2681_v56 }
 0x243   :  { %2684 = vmatpush1.bf16.msra.mxu1 %v2683_v61 }
 0x244   :  { %2686 = vmatprep.subr.bf16.mxu1 %v2685_v21 }
 0x247   :  { %2688 = vmatpush1.bf16.msra.mxu1 %v2687_v9 }
 0x25b   :  { %v1138_v60 = vpop.permute.xlu0 %1137 }
 0x25c   :  { %v1140_v2 = vpop.permute.xlu1 %1139 }
 0x25d   :  { %v1168_v18 = vsel %vm1161_vm9, %v1138_v60, %v1140_v2 }
 0x25e   :  { %v1192_v20 = vmax.f32 %v3602_v42, %v1168_v18  ;;  %v1521_v42 = vld [vmem:[%s4498_s3 + $0x208] sm:$0xff] }
 0x25f   :  { %v1118_v22 = vpop.permute.xlu0 %1117  ;;  %v2689_v26 = vpack.c.bf16 %v1523_v10, %v1521_v42 }
 0x260   :  { %v1211_v11 = vadd.f32 %v3833_v4, %v1192_v20  ;;  %v1120_v23 = vpop.permute.xlu1 %1119 }
 0x261   :  { %v1163_v24 = vsel %vm1161_vm9, %v1118_v22, %v1120_v23  ;;  %2690 = vmatprep.subr.bf16.mxu1 %v2689_v26  ;;  %v1520_v23 = vld [vmem:[%s4498_s3 + $0x200] sm:$0xff] }
 0x262   :  { %v1223_v25 = vmax.f32 %v1211_v11, 0.0  ;;  %v1187_v14 = vmax.f32 %v3587_v13, %v1163_v24  ;;  %v1522_v24 = vld [vmem:[%s4498_s3 + $0x210] sm:$0xff] }
 0x263   :  { %v1122_v27 = vpop.permute.xlu0 %1121  ;;  %v2691_v26 = vpack.c.bf16 %v1522_v24, %v1520_v23  ;;  %v1551_v23 = vld [vmem:[%s4498_s3 + $0x2f8] sm:$0xff] }
 0x264   :  { %v1206_v19 = vadd.f32 %v3833_v4, %v1187_v14  ;;  %v1124_v28 = vpop.permute.xlu1 %1123  ;;  %1238 = vrot.lane.b32.xlu0 %v1223_v25, %s2879_s13  ;;  %1331 = vst.msk [vmem:[#allocation3 + $0xa0] sm:$0xff] %vm1229_vm10, %v1223_v25  ;;  %v1525_v25 = vld [vmem:[%s4498_s3 + $0x228] sm:$0xff]  ;;  %v1527_v14 = vld [vmem:[%s4498_s3 + $0x238] sm:$0xff] }
 0x265   :  { %v1164_v29 = vsel %vm1161_vm9, %v1122_v27, %v1124_v28 }
 0x266   :  { %v1218_v15 = vmax.f32 %v1206_v19, 0.0  ;;  %v1188_v16 = vmax.f32 %v3589_v32, %v1164_v29 }
 0x267   :  { %v1126_v17 = vpop.permute.xlu0 %1125 }
 0x268   :  { %v1207_v34 = vadd.f32 %v3833_v4, %v1188_v16  ;;  %v1128_v13 = vpop.permute.xlu1 %1127  ;;  %1133 = vrot.lane.b32.xlu0 %v3596_v37, %s2878_s0  ;;  %1264 = vrot.lane.b32.xlu1 %v1218_v15, %s2875_s14  ;;  %1231 = vst.msk [vmem:[#allocation3 + $0x28] sm:$0xff] %vm1229_vm10, %v1218_v15 }
 0x269   :  { %v1165_v0 = vsel %vm1161_vm9, %v1126_v17, %v1128_v13  ;;  %v2693_v17 = vpack.c.bf16 %v1527_v14, %v1525_v25  ;;  %v1531_v13 = vld [vmem:[%s4498_s3 + $0x258] sm:$0xff] }
 0x26a   :  { %v3869_v3 = vmax.f32 %v1207_v34, 0.0  ;;  %v1189_v35 = vmax.f32 %v3591_v31, %v1165_v0  ;;  %v1529_v34 = vld [vmem:[%s4498_s3 + $0x248] sm:$0xff] }
 0x26b   :  { %v1142_v36 = vpop.permute.xlu0 %1141 }
 0x26c   :  { %v1208_v32 = vadd.f32 %v3833_v4, %v1189_v35  ;;  %v1144_v33 = vpop.permute.xlu1 %1143  ;;  %1135 = vrot.lane.b32.xlu1 %v1076_v40, %s2878_s0  ;;  %1157 = vrot.lane.b32.xlu0 %v3644_v5, %s2878_s0  ;;  %1232 = vst.msk [vmem:[#allocation3 + $0x50] sm:$0xff] %vm1229_vm10, %v3869_v3 }
 0x26d   :  { %v1169_v41 = vsel %vm1161_vm9, %v1142_v36, %v1144_v33  ;;  %v1528_v33 = vld [vmem:[%s4498_s3 + $0x240] sm:$0xff] }
 0x26e   :  { %v3882_v43 = vmax.f32 %v1208_v32, 0.0  ;;  %v1193_v31 = vmax.f32 %v3610_v46, %v1169_v41  ;;  %v2697_v32 = vpack.c.bf16 %v1531_v13, %v1529_v34  ;;  %v1530_v41 = vld [vmem:[%s4498_s3 + $0x250] sm:$0xff]  ;;  %v1552_v13 = vld [vmem:[%s4498_s3 + $0x300] sm:$0xff] }
 0x26f   :  { %v1146_v44 = vpop.permute.xlu0 %1145 }
 0x270   :  { %v1212_v45 = vadd.f32 %v3833_v4, %v1193_v31  ;;  %v1148_v47 = vpop.permute.xlu1 %1147  ;;  %1159 = vrot.lane.b32.xlu1 %v1088_v63, %s2878_s0  ;;  %1233 = vst.msk [vmem:[#allocation3 + $0x78] sm:$0xff] %vm1229_vm10, %v3882_v43  ;;  %s2880_s0 = smov 104   ;;  %v1535_v31 = vld [vmem:[%s4498_s3 + $0x278] sm:$0xff] }
 0x271   :  { %v1170_v6 = vsel %vm1161_vm9, %v1146_v44, %v1148_v47 }
 0x272   :  { %v1224_v39 = vmax.f32 %v1212_v45, 0.0  ;;  %v1194_v40 = vmax.f32 %v3618_v50, %v1170_v6  ;;  %v2699_v45 = vpack.c.bf16 %v1530_v41, %v1528_v33 }
 0x273   :  { %v1150_v48 = vpop.permute.xlu0 %1149 }
 0x274   :  { %v1213_v46 = vadd.f32 %v3833_v4, %v1194_v40  ;;  %v1152_v49 = vpop.permute.xlu1 %1151  ;;  %1240 = vrot.lane.b32.xlu0 %v1224_v39, %s2879_s13  ;;  %1266 = vrot.lane.b32.xlu1 %v3869_v3, %s2875_s14  ;;  %1332 = vst.msk [vmem:[#allocation3 + $0xc8] sm:$0xff] %vm1229_vm10, %v1224_v39  ;;  %v1532_v40 = vld [vmem:[%s4498_s3 + $0x260] sm:$0xff] }
 0x275   :  { %v1171_v52 = vsel %vm1161_vm9, %v1150_v48, %v1152_v49  ;;  %v1534_v48 = vld [vmem:[%s4498_s3 + $0x270] sm:$0xff]  ;;  %v1537_v49 = vld [vmem:[%s4498_s3 + $0x288] sm:$0xff] }
 0x276   :  { %v3900_v62 = vmax.f32 %v1213_v46, 0.0  ;;  %v1195_v63 = vmax.f32 %v3626_v55, %v1171_v52  ;;  %v1539_v52 = vld [vmem:[%s4498_s3 + $0x298] sm:$0xff] }
 0x277   :  { %v1130_v51 = vpop.permute.xlu0 %1129 }
 0x278   :  { %v1214_v50 = vadd.f32 %v3833_v4, %v1195_v63  ;;  %v1132_v53 = vpop.permute.xlu1 %1131  ;;  %1242 = vrot.lane.b32.xlu0 %v3900_v62, %s2879_s13  ;;  %1268 = vrot.lane.b32.xlu1 %v3882_v43, %s2875_s14  ;;  %1333 = vst.msk [vmem:[#allocation3 + $0xf0] sm:$0xff] %vm1229_vm10, %v3900_v62 }
 0x279   :  { %v1166_v54 = vsel %vm1161_vm9, %v1130_v51, %v1132_v53  ;;  %v1538_v51 = vld [vmem:[%s4498_s3 + $0x290] sm:$0xff]  ;;  %v2705_v53 = vpack.c.bf16 %v1539_v52, %v1537_v49 }
 0x27a   :  { %v3911_v56 = vmax.f32 %v1214_v50, 0.0  ;;  %v1190_v57 = vmax.f32 %v3593_v30, %v1166_v54 }
 0x27b   :  { %v1114_v55 = vpop.permute.xlu0 %1113 }
 0x27c   :  { %v1209_v58 = vadd.f32 %v3833_v4, %v1190_v57  ;;  %v1116_v60 = vpop.permute.xlu1 %1115  ;;  %1244 = vrot.lane.b32.xlu0 %v3911_v56, %s2879_s13  ;;  %1334 = vst.msk [vmem:[#allocation3 + $0x118] sm:$0xff] %vm1229_vm10, %v3911_v56  ;;  %v1543_v57 = vld [vmem:[%s4498_s3 + $0x2b8] sm:$0xff] }
 0x27d   :  { %v1162_v61 = vsel %vm1161_vm9, %v1114_v55, %v1116_v60 }
 0x27e   :  { %v1221_v2 = vmax.f32 %v1209_v58, 0.0  ;;  %v1186_v18 = vmax.f32 %v3584_v12, %v1162_v61 }
 0x27f   :  { %v1154_v8 = vpop.permute.xlu0 %1153 }
 0x280   :  { %v1205_v1 = vadd.f32 %v3833_v4, %v1186_v18  ;;  %v1156_v20 = vpop.permute.xlu1 %1155  ;;  %1335 = vrot.lane.b32.xlu0 %v1218_v15, %s2879_s13  ;;  %1270 = vrot.lane.b32.xlu1 %v1221_v2, %s2875_s14  ;;  %v1524_v15 = vld [vmem:[%s4498_s3 + $0x220] sm:$0xff] }
 0x281   :  { %v1172_v21 = vsel %vm1161_vm9, %v1154_v8, %v1156_v20  ;;  %v1545_v8 = vld [vmem:[%s4498_s3 + $0x2c8] sm:$0xff]  ;;  %v1547_v20 = vld [vmem:[%s4498_s3 + $0x2d8] sm:$0xff] }
 0x282   :  { %v1217_v30 = vmax.f32 %v1205_v1, 0.0  ;;  %v1196_v12 = vmax.f32 %v3634_v59, %v1172_v21 }
 0x284   :  { %1337 = vrot.lane.b32.xlu0 %v3869_v3, %s2879_s13  ;;  %1355 = vrot.lane.b32.xlu1 %v1224_v39, %s2875_s14  ;;  %1230 = vst.msk [vmem:[#allocation3] sm:$0xff] %vm1229_vm10, %v1217_v30  ;;  %v1215_v7 = vadd.f32 %v3833_v4, %v1196_v12  ;;  %vm2260_vm10 = vcmask 408576  }
 0x286   :  { %v3938_v38 = vmax.f32 %v1215_v7, 0.0 }
 0x288   :  { %1339 = vrot.lane.b32.xlu0 %v3882_v43, %s2879_s13  ;;  %1357 = vrot.lane.b32.xlu1 %v3900_v62, %s2875_s14 }
 0x28c   :  { %1341 = vrot.lane.b32.xlu0 %v1221_v2, %s2879_s13  ;;  %1359 = vrot.lane.b32.xlu1 %v3911_v56, %s2875_s14 }
 0x290   :  { %1286 = vrot.lane.b32.xlu0 %v1224_v39, %s2880_s0  ;;  %1361 = vrot.lane.b32.xlu1 %v3938_v38, %s2875_s14 }
 0x294   :  { %1288 = vrot.lane.b32.xlu0 %v3900_v62, %s2880_s0  ;;  %1309 = vrot.lane.b32.xlu1 %v3869_v3, %s2881_s18 }
 0x298   :  { %1290 = vrot.lane.b32.xlu0 %v3911_v56, %s2880_s0  ;;  %1311 = vrot.lane.b32.xlu1 %v3882_v43, %s2881_s18 }
 0x29c   :  { %1292 = vrot.lane.b32.xlu0 %v3938_v38, %s2880_s0  ;;  %1313 = vrot.lane.b32.xlu1 %v1221_v2, %s2881_s18 }
 0x2a0   :  { %1375 = vrot.lane.b32.xlu0 %v3869_v3, %s2880_s0 }
 0x2a4   :  { %1377 = vrot.lane.b32.xlu0 %v3882_v43, %s2880_s0  ;;  %v1533_v43 = vld [vmem:[%s4498_s3 + $0x268] sm:$0xff] }
 0x2a5   :  { %v2701_v39 = vpack.c.bf16 %v1535_v31, %v1533_v43 }
 0x2a8   :  { %1379 = vrot.lane.b32.xlu0 %v1221_v2, %s2880_s0  ;;  %v1542_v2 = vld [vmem:[%s4498_s3 + $0x2b0] sm:$0xff] }
 0x2d6   :  { %v1239_v59 = vpop.permute.xlu0 %1238 }
 0x2d7   :  { %1251 = vst.msk [vmem:[#allocation3] sm:$0xff] %vm1250_vm11, %v1239_v59 }
 0x2d8   :  { %1253 = vst.msk [vmem:[#allocation3 + $0x8] sm:$0xff] %vm1252_vm12, %v1239_v59  ;;  %v2713_v59 = vpack.c.bf16 %v1547_v20, %v1545_v8 }
 0x2da   :  { %v1265_v22 = vpop.permute.xlu1 %1264  ;;  %v1134_v9 = vpop.permute.xlu0 %1133 }
 0x2db   :  { %1276 = vst.msk [vmem:[#allocation3 + $0x8] sm:$0xff] %vm190_vm8, %v1265_v22 }
 0x2dc   :  { %1278 = vst.msk [vmem:[#allocation3 + $0x10] sm:$0xff] %vm1277_vm13, %v1265_v22  ;;  %v1544_v22 = vld [vmem:[%s4498_s3 + $0x2c0] sm:$0xff] }
 0x2de   :  { %v1136_v11 = vpop.permute.xlu1 %1135  ;;  %v1158_v19 = vpop.permute.xlu0 %1157  ;;  %v1416_v16 = vld [vmem:[#allocation3] sm:$0xff] }
 0x2df   :  { %v1167_v42 = vsel %vm1161_vm9, %v1134_v9, %v1136_v11  ;;  %v1546_v9 = vld [vmem:[%s4498_s3 + $0x2d0] sm:$0xff]  ;;  %v1549_v11 = vld [vmem:[%s4498_s3 + $0x2e8] sm:$0xff] }
 0x2e0   :  { %v1191_v10 = vmax.f32 %v3596_v37, %v1167_v42  ;;  %v1526_v37 = vld [vmem:[%s4498_s3 + $0x230] sm:$0xff]  ;;  %v2715_v24 = vpack.c.bf16 %v1546_v9, %v1544_v22  ;;  %v2717_v14 = vpack.c.bf16 %v1551_v23, %v1549_v11  ;;  %v1572_v11 = vld [vmem:[%s4498_s3 + $0x3a0] sm:$0xff] }
 0x2e1   :  { %v2695_v3 = vpack.c.bf16 %v1526_v37, %v1524_v15  ;;  %v1574_v23 = vld [vmem:[%s4498_s3 + $0x3b0] sm:$0xff] }
 0x2e2   :  { %v1210_v27 = vadd.f32 %v3833_v4, %v1191_v10  ;;  %v1160_v28 = vpop.permute.xlu1 %1159  ;;  %v1417_v29 = vld [vmem:[#allocation3 + $0x8] sm:$0xff] }
 0x2e3   :  { %1694 = vmatprep.mubr.f32.mxu1 %v1417_v29  ;;  %v1173_v44 = vsel %vm1161_vm9, %v1158_v19, %v1160_v28  ;;  %v1553_v28 = vld [vmem:[%s4498_s3 + $0x308] sm:$0xff]  ;;  %v1555_v29 = vld [vmem:[%s4498_s3 + $0x318] sm:$0xff]  ;;  %vm2264_vm9 = vcmask 1041408  }
 0x2e4   :  { %v1222_v0 = vmax.f32 %v1210_v27, 0.0  ;;  %1695 = vmatmul.mubr.f32.vlgmr.msra.gmra.mrb[0].mxu1 %v1416_v16  ;;  %v1197_v46 = vmax.f32 %v3644_v5, %v1173_v44  ;;  %v1536_v5 = vld [vmem:[%s4498_s3 + $0x280] sm:$0xff]  ;;  %v1550_v27 = vld [vmem:[%s4498_s3 + $0x2f0] sm:$0xff]  ;;  %v2721_v34 = vpack.c.bf16 %v1555_v29, %v1553_v28  ;;  %v1583_v28 = vld [vmem:[%s4498_s3 + $0x3f8] sm:$0xff] }
 0x2e5   :  { %2692 = vmatpush1.bf16.msra.mxu1 %v2691_v26  ;;  %v2707_v58 = vpack.c.bf16 %v1538_v51, %v1536_v5  ;;  %v1548_v26 = vld [vmem:[%s4498_s3 + $0x2e0] sm:$0xff]  ;;  %v1565_v51 = vld [vmem:[%s4498_s3 + $0x368] sm:$0xff] }
 0x2e6   :  { %1381 = vrot.lane.b32.xlu0 %v1222_v0, %s2880_s0  ;;  %v1241_v35 = vpop.permute.xlu0 %1240  ;;  %1315 = vrot.lane.b32.xlu1 %v1222_v0, %s2881_s18  ;;  %v1267_v36 = vpop.permute.xlu1 %1266  ;;  %v1216_v54 = vadd.f32 %v3833_v4, %v1197_v46  ;;  %v1540_v4 = vld [vmem:[%s4498_s3 + $0x2a0] sm:$0xff]  ;;  %v2719_v15 = vpack.c.bf16 %v1550_v27, %v1548_v26  ;;  %v1554_v0 = vld [vmem:[%s4498_s3 + $0x310] sm:$0xff] }
 0x2e7   :  { %1254 = vst.msk [vmem:[#allocation3 + $0x28] sm:$0xff] %vm1250_vm11, %v1241_v35  ;;  %2694 = vmatprep.subr.bf16.mxu1 %v2693_v17  ;;  %v2711_v12 = vpack.c.bf16 %v1542_v2, %v1540_v4  ;;  %v1556_v44 = vld [vmem:[%s4498_s3 + $0x320] sm:$0xff]  ;;  %v1569_v4 = vld [vmem:[%s4498_s3 + $0x388] sm:$0xff]  ;;  %v1571_v2 = vld [vmem:[%s4498_s3 + $0x398] sm:$0xff] }
 0x2e8   :  { %1255 = vst.msk [vmem:[#allocation3 + $0x30] sm:$0xff] %vm1252_vm12, %v1241_v35  ;;  %v1228_v30 = vmax.f32 %v1216_v54, 0.0  ;;  %v1557_v35 = vld [vmem:[%s4498_s3 + $0x328] sm:$0xff]  ;;  %v1576_v26 = vld [vmem:[%s4498_s3 + $0x3c0] sm:$0xff]  ;;  %v1578_v27 = vld [vmem:[%s4498_s3 + $0x3d0] sm:$0xff] }
 0x2e9   :  { %1280 = vst.msk [vmem:[#allocation3 + $0x38] sm:$0xff] %vm1277_vm13, %v1267_v36  ;;  %2696 = vmatpush1.bf16.msra.mxu1 %v2695_v3  ;;  %v2747_v29 = vpack.c.bf16 %v1578_v27, %v1576_v26 }
 0x2ea   :  { %1279 = vst.msk [vmem:[#allocation3 + $0x30] sm:$0xff] %vm190_vm8, %v1267_v36  ;;  %v1243_v47 = vpop.permute.xlu0 %1242  ;;  %1396 = vrot.lane.b32.xlu1 %v3900_v62, %s2881_s18  ;;  %v1269_v6 = vpop.permute.xlu1 %1268  ;;  %2698 = vmatprep.subr.bf16.mxu1 %v2697_v32  ;;  %v2703_v62 = vpack.c.bf16 %v1534_v48, %v1532_v40  ;;  %v1559_v36 = vld [vmem:[%s4498_s3 + $0x338] sm:$0xff]  ;;  %v2723_v32 = vpack.c.bf16 %v1554_v0, %v1552_v13 }
 0x2eb   :  { %1256 = vst.msk [vmem:[#allocation3 + $0x50] sm:$0xff] %vm1250_vm11, %v1243_v47  ;;  %v2725_v31 = vpack.c.bf16 %v1559_v36, %v1557_v35  ;;  %v1587_v13 = vld [vmem:[%s4498_s3 + $0x418] sm:$0xff]  ;;  %v1584_v35 = vld [vmem:[%s4498_s3 + $0x400] sm:$0xff]  ;;  %v1586_v36 = vld [vmem:[%s4498_s3 + $0x410] sm:$0xff] }
 0x2ec   :  { %1257 = vst.msk [vmem:[#allocation3 + $0x58] sm:$0xff] %vm1252_vm12, %v1243_v47 }
 0x2ed   :  { %1282 = vst.msk [vmem:[#allocation3 + $0x60] sm:$0xff] %vm1277_vm13, %v1269_v6  ;;  %2700 = vmatpush1.bf16.msra.mxu1 %v2699_v45  ;;  %v1558_v45 = vld [vmem:[%s4498_s3 + $0x330] sm:$0xff] }
 0x2ee   :  { %1281 = vst.msk [vmem:[#allocation3 + $0x58] sm:$0xff] %vm190_vm8, %v1269_v6  ;;  %v1245_v63 = vpop.permute.xlu0 %1244  ;;  %1398 = vrot.lane.b32.xlu1 %v3911_v56, %s2881_s18  ;;  %2702 = vmatprep.subr.bf16.mxu1 %v2701_v39  ;;  %v1541_v56 = vld [vmem:[%s4498_s3 + $0x2a8] sm:$0xff]  ;;  %v1421_v55 = vld [vmem:[#allocation3 + $0x28] sm:$0xff]  ;;  %v1563_v39 = vld [vmem:[%s4498_s3 + $0x358] sm:$0xff]  ;;  %v2727_v40 = vpack.c.bf16 %v1558_v45, %v1556_v44 }
 0x2ef   :  { %1258 = vst.msk [vmem:[#allocation3 + $0x78] sm:$0xff] %vm1250_vm11, %v1245_v63  ;;  %v2709_v1 = vpack.c.bf16 %v1543_v57, %v1541_v56  ;;  %v1561_v6 = vld [vmem:[%s4498_s3 + $0x348] sm:$0xff]  ;;  %v1590_v44 = vld [vmem:[%s4498_s3 + $0x430] sm:$0xff] }
 0x2f0   :  { %1259 = vst.msk [vmem:[#allocation3 + $0x80] sm:$0xff] %vm1252_vm12, %v1245_v63  ;;  %v2729_v52 = vpack.c.bf16 %v1563_v39, %v1561_v6  ;;  %v1562_v63 = vld [vmem:[%s4498_s3 + $0x350] sm:$0xff]  ;;  %v1595_v6 = vld [vmem:[%s4498_s3 + $0x458] sm:$0xff] }
 0x2f1   :  { %v1422_v50 = vld [vmem:[#allocation3 + $0x30] sm:$0xff]  ;;  %2704 = vmatpush1.bf16.msra.mxu1 %v2703_v62  ;;  %v1560_v62 = vld [vmem:[%s4498_s3 + $0x340] sm:$0xff] }
 0x2f2   :  { %1700 = vmatprep.mubr.f32.mxu1 %v1422_v50  ;;  %v1336_v60 = vpop.permute.xlu0 %1335  ;;  %1400 = vrot.lane.b32.xlu1 %v3938_v38, %s2881_s18  ;;  %v1271_v61 = vpop.permute.xlu1 %1270  ;;  %v1426_v21 = vld [vmem:[#allocation3 + $0x50] sm:$0xff]  ;;  %v1567_v50 = vld [vmem:[%s4498_s3 + $0x378] sm:$0xff] }
 0x2f3   :  { %1701 = vmatmul.mubr.f32.gmra.mrb[2].mxu1 %v1421_v55  ;;  %1347 = vst.msk [vmem:[#allocation3 + $0xa0] sm:$0xff] %vm1250_vm11, %v1336_v60  ;;  %2706 = vmatprep.subr.bf16.mxu1 %v2705_v53  ;;  %v2731_v53 = vpack.c.bf16 %v1562_v63, %v1560_v62  ;;  %v2733_v55 = vpack.c.bf16 %v1567_v50, %v1565_v51  ;;  %v1597_v62 = vld [vmem:[%s4498_s3 + $0x468] sm:$0xff]  ;;  %v1599_v63 = vld [vmem:[%s4498_s3 + $0x478] sm:$0xff] }
 0x2f4   :  { %1348 = vst.msk [vmem:[#allocation3 + $0xa8] sm:$0xff] %vm1252_vm12, %v1336_v60  ;;  %v1566_v60 = vld [vmem:[%s4498_s3 + $0x370] sm:$0xff]  ;;  %v2765_v50 = vpack.c.bf16 %v1599_v63, %v1597_v62  ;;  %v2071_v63 = vld [vmem:[%s4500_s5 + $0x80] sm:$0xff] }
 0x2f5   :  { %1283 = vst.msk [vmem:[#allocation3 + $0x80] sm:$0xff] %vm190_vm8, %v1271_v61  ;;  %v1427_v18 = vld [vmem:[#allocation3 + $0x58] sm:$0xff]  ;;  %2708 = vmatpush1.bf16.msra.mxu1 %v2707_v58  ;;  %v1564_v58 = vld [vmem:[%s4498_s3 + $0x360] sm:$0xff] }
 0x2f6   :  { %1284 = vst.msk [vmem:[#allocation3 + $0x88] sm:$0xff] %vm1277_vm13, %v1271_v61  ;;  %1706 = vmatprep.mubr.f32.mxu1 %v1427_v18  ;;  %v1338_v7 = vpop.permute.xlu0 %1337  ;;  %1402 = vrot.lane.b32.xlu1 %v1228_v30, %s2881_s18  ;;  %v1356_v38 = vpop.permute.xlu1 %1355  ;;  %v1431_v19 = vld [vmem:[#allocation3 + $0x78] sm:$0xff]  ;;  %v2735_v18 = vpack.c.bf16 %v1566_v60, %v1564_v58  ;;  %v2737_v30 = vpack.c.bf16 %v1571_v2, %v1569_v4 }
 0x2f7   :  { %1707 = vmatmul.mubr.f32.gmra.mrb[4].mxu1 %v1426_v21  ;;  %1349 = vst.msk [vmem:[#allocation3 + $0xc8] sm:$0xff] %vm1250_vm11, %v1338_v7  ;;  %2710 = vmatprep.subr.bf16.mxu1 %v2709_v1  ;;  %v1568_v21 = vld [vmem:[%s4498_s3 + $0x380] sm:$0xff]  ;;  %v1602_v4 = vld [vmem:[%s4498_s3 + $0x490] sm:$0xff] }
 0x2f8   :  { %1350 = vst.msk [vmem:[#allocation3 + $0xd0] sm:$0xff] %vm1252_vm12, %v1338_v7  ;;  %v1573_v7 = vld [vmem:[%s4498_s3 + $0x3a8] sm:$0xff] }
 0x2f9   :  { %1367 = vst.msk [vmem:[#allocation3 + $0xa8] sm:$0xff] %vm190_vm8, %v1356_v38  ;;  %2712 = vmatpush1.bf16.msra.mxu1 %v2711_v12  ;;  %v1570_v12 = vld [vmem:[%s4498_s3 + $0x390] sm:$0xff] }
 0x2fa   :  { %1368 = vst.msk [vmem:[#allocation3 + $0xb0] sm:$0xff] %vm1277_vm13, %v1356_v38  ;;  %v1340_v42 = vpop.permute.xlu0 %1339  ;;  %v1358_v10 = vpop.permute.xlu1 %1357  ;;  %2714 = vmatprep.subr.bf16.mxu1 %v2713_v59  ;;  %v1436_v3 = vld [vmem:[#allocation3 + $0xa0] sm:$0xff]  ;;  %v2739_v59 = vpack.c.bf16 %v1570_v12, %v1568_v21 }
 0x2fb   :  { %1351 = vst.msk [vmem:[#allocation3 + $0xf0] sm:$0xff] %vm1250_vm11, %v1340_v42  ;;  %v1575_v38 = vld [vmem:[%s4498_s3 + $0x3b8] sm:$0xff] }
 0x2fc   :  { %v1432_v25 = vld [vmem:[#allocation3 + $0x80] sm:$0xff]  ;;  %1352 = vst.msk [vmem:[#allocation3 + $0xf8] sm:$0xff] %vm1252_vm12, %v1340_v42  ;;  %v2741_v9 = vpack.c.bf16 %v1575_v38, %v1573_v7 }
 0x2fd   :  { %1369 = vst.msk [vmem:[#allocation3 + $0xd0] sm:$0xff] %vm190_vm8, %v1358_v10  ;;  %1712 = vmatprep.mubr.f32.mxu1 %v1432_v25  ;;  %2716 = vmatpush1.bf16.msra.mxu1 %v2715_v24  ;;  %v1577_v24 = vld [vmem:[%s4498_s3 + $0x3c8] sm:$0xff]  ;;  %v1579_v42 = vld [vmem:[%s4498_s3 + $0x3d8] sm:$0xff] }
 0x2fe   :  { %1370 = vst.msk [vmem:[#allocation3 + $0xd8] sm:$0xff] %vm1277_vm13, %v1358_v10  ;;  %1713 = vmatmul.mubr.f32.gmra.mrb[6].mxu1 %v1431_v19  ;;  %v1342_v37 = vpop.permute.xlu0 %1341  ;;  %v1360_v16 = vpop.permute.xlu1 %1359  ;;  %2718 = vmatprep.subr.bf16.mxu1 %v2717_v14  ;;  %v1441_v47 = vld [vmem:[#allocation3 + $0xc8] sm:$0xff]  ;;  %v2743_v10 = vpack.c.bf16 %v1574_v23, %v1572_v11  ;;  %v2745_v14 = vpack.c.bf16 %v1579_v42, %v1577_v24  ;;  %v1581_v19 = vld [vmem:[%s4498_s3 + $0x3e8] sm:$0xff] }
 0x2ff   :  { %1353 = vst.msk [vmem:[#allocation3 + $0x118] sm:$0xff] %vm1250_vm11, %v1342_v37  ;;  %vm2338_vm11 = vcmask 80896  }
 0x300   :  { %v1437_v17 = vld [vmem:[#allocation3 + $0xa8] sm:$0xff]  ;;  %1354 = vst.msk [vmem:[#allocation3 + $0x120] sm:$0xff] %vm1252_vm12, %v1342_v37  ;;  %v2749_v37 = vpack.c.bf16 %v1583_v28, %v1581_v19 }
 0x301   :  { %1371 = vst.msk [vmem:[#allocation3 + $0xf8] sm:$0xff] %vm190_vm8, %v1360_v16  ;;  %1718 = vmatprep.mubr.f32.mxu1 %v1437_v17  ;;  %2720 = vmatpush1.bf16.msra.mxu1 %v2719_v15  ;;  %v1582_v17 = vld [vmem:[%s4498_s3 + $0x3f0] sm:$0xff] }
 0x302   :  { %1372 = vst.msk [vmem:[#allocation3 + $0x100] sm:$0xff] %vm1277_vm13, %v1360_v16  ;;  %1719 = vmatmul.mubr.f32.gmra.mrb[8].mxu1 %v1436_v3  ;;  %v1287_v33 = vpop.permute.xlu0 %1286  ;;  %v1362_v41 = vpop.permute.xlu1 %1361  ;;  %2722 = vmatprep.subr.bf16.mxu1 %v2721_v34  ;;  %v1446_v5 = vld [vmem:[#allocation3 + $0xf0] sm:$0xff]  ;;  %v1580_v16 = vld [vmem:[%s4498_s3 + $0x3e0] sm:$0xff] }
 0x303   :  { %1299 = vst.msk [vmem:[#allocation3 + $0x10] sm:$0xff] %vm1298_vm14, %v1287_v33  ;;  %v1585_v34 = vld [vmem:[%s4498_s3 + $0x408] sm:$0xff]  ;;  %v2751_v0 = vpack.c.bf16 %v1582_v17, %v1580_v16 }
 0x304   :  { %v1442_v43 = vld [vmem:[#allocation3 + $0xd0] sm:$0xff]  ;;  %1301 = vst.msk [vmem:[#allocation3 + $0x18] sm:$0xff] %vm1300_vm15, %v1287_v33  ;;  %v2753_v3 = vpack.c.bf16 %v1587_v13, %v1585_v34  ;;  %v1591_v33 = vld [vmem:[%s4498_s3 + $0x438] sm:$0xff] }
 0x305   :  { %1373 = vst.msk [vmem:[#allocation3 + $0x120] sm:$0xff] %vm190_vm8, %v1362_v41  ;;  %1724 = vmatprep.mubr.f32.mxu1 %v1442_v43  ;;  %2724 = vmatpush1.bf16.msra.mxu1 %v2723_v32  ;;  %v1589_v32 = vld [vmem:[%s4498_s3 + $0x428] sm:$0xff] }
 0x306   :  { %1374 = vst.msk [vmem:[#allocation3 + $0x128] sm:$0xff] %vm1277_vm13, %v1362_v41  ;;  %1725 = vmatmul.mubr.f32.gmra.mrb[10].mxu1 %v1441_v47  ;;  %v1289_v48 = vpop.permute.xlu0 %1288  ;;  %v1310_v46 = vpop.permute.xlu1 %1309  ;;  %2726 = vmatprep.subr.bf16.mxu1 %v2725_v31  ;;  %v1451_v61 = vld [vmem:[#allocation3 + $0x118] sm:$0xff]  ;;  %v2755_v41 = vpack.c.bf16 %v1586_v36, %v1584_v35  ;;  %v2757_v43 = vpack.c.bf16 %v1591_v33, %v1589_v32  ;;  %v1588_v31 = vld [vmem:[%s4498_s3 + $0x420] sm:$0xff]  ;;  %v1593_v47 = vld [vmem:[%s4498_s3 + $0x448] sm:$0xff] }
 0x307   :  { %1302 = vst.msk [vmem:[#allocation3 + $0x38] sm:$0xff] %vm1298_vm14, %v1289_v48 }
 0x308   :  { %v1447_v49 = vld [vmem:[#allocation3 + $0xf8] sm:$0xff]  ;;  %1303 = vst.msk [vmem:[#allocation3 + $0x40] sm:$0xff] %vm1300_vm15, %v1289_v48  ;;  %v2761_v48 = vpack.c.bf16 %v1595_v6, %v1593_v47 }
 0x309   :  { %1322 = vst.msk [vmem:[#allocation3 + $0x18] sm:$0xff] %vm1321_vm0, %v1310_v46  ;;  %1730 = vmatprep.mubr.f32.mxu1 %v1447_v49  ;;  %2728 = vmatpush1.bf16.msra.mxu1 %v2727_v40  ;;  %v2759_v40 = vpack.c.bf16 %v1590_v44, %v1588_v31  ;;  %v1594_v49 = vld [vmem:[%s4498_s3 + $0x450] sm:$0xff] }
 0x30a   :  { %1324 = vst.msk [vmem:[#allocation3 + $0x20] sm:$0xff] %vm1323_vm1, %v1310_v46  ;;  %1731 = vmatmul.mubr.f32.gmra.mrb[12].mxu1 %v1446_v5  ;;  %v1291_v54 = vpop.permute.xlu0 %1290  ;;  %v1312_v56 = vpop.permute.xlu1 %1311  ;;  %2730 = vmatprep.subr.bf16.mxu1 %v2729_v52  ;;  %v1418_v45 = vld [vmem:[#allocation3 + $0x10] sm:$0xff]  ;;  %v1592_v46 = vld [vmem:[%s4498_s3 + $0x440] sm:$0xff] }
 0x30b   :  { %1304 = vst.msk [vmem:[#allocation3 + $0x60] sm:$0xff] %vm1298_vm14, %v1291_v54  ;;  %v2763_v51 = vpack.c.bf16 %v1594_v49, %v1592_v46 }
 0x30c   :  { %v1452_v57 = vld [vmem:[#allocation3 + $0x120] sm:$0xff]  ;;  %1305 = vst.msk [vmem:[#allocation3 + $0x68] sm:$0xff] %vm1300_vm15, %v1291_v54  ;;  %v1598_v54 = vld [vmem:[%s4498_s3 + $0x470] sm:$0xff] }
 0x30d   :  { %1325 = vst.msk [vmem:[#allocation3 + $0x40] sm:$0xff] %vm1321_vm0, %v1312_v56  ;;  %1736 = vmatprep.mubr.f32.mxu1 %v1452_v57  ;;  %2732 = vmatpush1.bf16.msra.mxu1 %v2731_v53  ;;  %v1596_v53 = vld [vmem:[%s4498_s3 + $0x460] sm:$0xff]  ;;  %v1601_v57 = vld [vmem:[%s4498_s3 + $0x488] sm:$0xff] }
 0x30e   :  { %1326 = vst.msk [vmem:[#allocation3 + $0x48] sm:$0xff] %vm1323_vm1, %v1312_v56  ;;  %1737 = vmatmul.mubr.f32.gmra.mrb[14].mxu1 %v1451_v61  ;;  %v1293_v1 = vpop.permute.xlu0 %1292  ;;  %v1314_v8 = vpop.permute.xlu1 %1313  ;;  %2734 = vmatprep.subr.bf16.mxu1 %v2733_v55  ;;  %v1423_v52 = vld [vmem:[#allocation3 + $0x38] sm:$0xff]  ;;  %v1603_v55 = vld [vmem:[%s4498_s3 + $0x498] sm:$0xff]  ;;  %v2767_v58 = vpack.c.bf16 %v1598_v54, %v1596_v53  ;;  %v1600_v61 = vld [vmem:[%s4498_s3 + $0x480] sm:$0xff] }
 0x30f   :  { %1306 = vst.msk [vmem:[#allocation3 + $0x88] sm:$0xff] %vm1298_vm14, %v1293_v1  ;;  %v2769_v60 = vpack.c.bf16 %v1603_v55, %v1601_v57  ;;  %v2771_v2 = vpack.c.bf16 %v1602_v4, %v1600_v61  ;;  %v2056_v54 = vld [vmem:[%s4500_s5 + $0x8] sm:$0xff]  ;;  %v2074_v57 = vld [vmem:[%s4500_s5 + $0x98] sm:$0xff]  ;;  %v2075_v4 = vld [vmem:[%s4500_s5 + $0xa0] sm:$0xff] }
 0x310   :  { %v1419_v20 = vld [vmem:[#allocation3 + $0x18] sm:$0xff]  ;;  %1307 = vst.msk [vmem:[#allocation3 + $0x90] sm:$0xff] %vm1300_vm15, %v1293_v1  ;;  %v1604_v1 = vld [vmem:[%s4498_s3 + $0x4a0] sm:$0xff]  ;;  %v2058_v61 = vld [vmem:[%s4500_s5 + $0x18] sm:$0xff] }
 0x311   :  { %1327 = vst.msk [vmem:[#allocation3 + $0x68] sm:$0xff] %vm1321_vm0, %v1314_v8  ;;  %1807 = vmatprep.mubr.f32.mxu1 %v1419_v20  ;;  %2736 = vmatpush1.bf16.msra.mxu1 %v2735_v18  ;;  %v1605_v18 = vld [vmem:[%s4498_s3 + $0x4a8] sm:$0xff]  ;;  %v1420_v26 = vld [vmem:[#allocation3 + $0x20] sm:$0xff]  ;;  %s2883_s3 = smov 48  }
 0x312   :  { %1328 = vst.msk [vmem:[#allocation3 + $0x70] sm:$0xff] %vm1323_vm1, %v1314_v8  ;;  %v1376_v22 = vpop.permute.xlu0 %1375  ;;  %2738 = vmatprep.subr.bf16.mxu1 %v2737_v30  ;;  %v1428_v56 = vld [vmem:[#allocation3 + $0x60] sm:$0xff] }
 0x313   :  { %1387 = vst.msk [vmem:[#allocation3 + $0xb0] sm:$0xff] %vm1298_vm14, %v1376_v22 }
 0x314   :  { %1388 = vst.msk [vmem:[#allocation3 + $0xb8] sm:$0xff] %vm1300_vm15, %v1376_v22  ;;  %v1424_v39 = vld [vmem:[#allocation3 + $0x40] sm:$0xff] }
 0x315   :  { %2740 = vmatpush1.bf16.msra.mxu1 %v2739_v59  ;;  %v1425_v27 = vld [vmem:[#allocation3 + $0x48] sm:$0xff] }
 0x316   :  { %v1378_v25 = vpop.permute.xlu0 %1377  ;;  %2742 = vmatprep.subr.bf16.mxu1 %v2741_v9  ;;  %v1433_v7 = vld [vmem:[#allocation3 + $0x88] sm:$0xff] }
 0x317   :  { %1389 = vst.msk [vmem:[#allocation3 + $0xd8] sm:$0xff] %vm1298_vm14, %v1378_v25 }
 0x318   :  { %1390 = vst.msk [vmem:[#allocation3 + $0xe0] sm:$0xff] %vm1300_vm15, %v1378_v25  ;;  %v1429_v5 = vld [vmem:[#allocation3 + $0x68] sm:$0xff] }
 0x319   :  { %2744 = vmatpush1.bf16.msra.mxu1 %v2743_v10  ;;  %v1430_v19 = vld [vmem:[#allocation3 + $0x70] sm:$0xff] }
 0x31a   :  { %v1380_v15 = vpop.permute.xlu0 %1379  ;;  %2746 = vmatprep.subr.bf16.mxu1 %v2745_v14  ;;  %v1438_v22 = vld [vmem:[#allocation3 + $0xb0] sm:$0xff]  ;;  %v2882_v14 = vmov 0.0  }
 0x31b   :  { %1391 = vst.msk [vmem:[#allocation3 + $0x100] sm:$0xff] %vm1298_vm14, %v1380_v15 }
 0x31c   :  { %1392 = vst.msk [vmem:[#allocation3 + $0x108] sm:$0xff] %vm1300_vm15, %v1380_v15 }
 0x31d   :  { %2748 = vmatpush1.bf16.msra.mxu1 %v2747_v29 }
 0x31e   :  { %2750 = vmatprep.subr.bf16.mxu1 %v2749_v37  ;;  %v1443_v23 = vld [vmem:[#allocation3 + $0xd8] sm:$0xff] }
 0x321   :  { %2752 = vmatpush1.bf16.msra.mxu1 %v2751_v0 }
 0x322   :  { %2754 = vmatprep.subr.bf16.mxu1 %v2753_v3  ;;  %v1448_v42 = vld [vmem:[#allocation3 + $0x100] sm:$0xff] }
 0x324   :  { %1808 = vmatmul.mubr.f32.vlgmr.msra.gmra.mrb[0].mxu1 %v1418_v45 }
 0x325   :  { %1813 = vmatprep.mubr.f32.mxu1 %v1424_v39  ;;  %2756 = vmatpush1.bf16.msra.mxu1 %v2755_v41 }
 0x326   :  { %2758 = vmatprep.subr.bf16.mxu1 %v2757_v43 }
 0x328   :  { %1814 = vmatmul.mubr.f32.gmra.mrb[2].mxu1 %v1423_v52 }
 0x329   :  { %1819 = vmatprep.mubr.f32.mxu1 %v1429_v5  ;;  %2760 = vmatpush1.bf16.msra.mxu1 %v2759_v40  ;;  %v2072_v5 = vld [vmem:[%s4500_s5 + $0x88] sm:$0xff] }
 0x32a   :  { %2762 = vmatprep.subr.bf16.mxu1 %v2761_v48  ;;  %v2773_v53 = vpack.c.bf16 %v2072_v5, %v2071_v63 }
 0x32c   :  { %1820 = vmatmul.mubr.f32.gmra.mrb[4].mxu1 %v1428_v56  ;;  %v2073_v56 = vld [vmem:[%s4500_s5 + $0x90] sm:$0xff]  ;;  %2774 = vmatprep.subr.bf16.mxu0 %v2773_v53 }
 0x32d   :  { %2764 = vmatpush1.bf16.msra.mxu1 %v2763_v51  ;;  %v2055_v51 = vld [vmem:[%s4500_s5] sm:$0xff] }
 0x32e   :  { %2766 = vmatprep.subr.bf16.mxu1 %v2765_v50  ;;  %v2775_v55 = vpack.c.bf16 %v2056_v54, %v2055_v51 }
 0x330   :  { %2776 = vmatpush3.bf16.msra.mxu0 %v2775_v55 }
 0x331   :  { %2768 = vmatpush1.bf16.msra.mxu1 %v2767_v58  ;;  %v2777_v58 = vpack.c.bf16 %v2074_v57, %v2073_v56 }
 0x332   :  { %2770 = vmatprep.subr.bf16.mxu1 %v2769_v60  ;;  %v2057_v60 = vld [vmem:[%s4500_s5 + $0x10] sm:$0xff] }
 0x333   :  { %2778 = vmatprep.subr.bf16.mxu0 %v2777_v58  ;;  %v2886_v58 = vmov 0.0|0.0  }
 0x335   :  { %2772 = vmatpush1.bf16.msra.mxu1 %v2771_v2  ;;  %v2076_v2 = vld [vmem:[%s4500_s5 + $0xa8] sm:$0xff] }
 0x336   :  { %1876 = vmatprep.subr.mxu1 %v1605_v18  ;;  %v2779_v18 = vpack.c.bf16 %v2058_v61, %v2057_v60 }
 0x338   :  { %2780 = vmatpush3.bf16.msra.mxu0 %v2779_v18 }
 0x339   :  { %1877 = vmatpush1.msra.mxu1 %v1604_v1  ;;  %v2781_v1 = vpack.c.bf16 %v2076_v2, %v2075_v4 }
 0x33b   :  { %2782 = vmatprep.subr.bf16.mxu0 %v2781_v1 }
 0x358   :  { %v1382_v8 = vpop.permute.xlu0 %1381  ;;  %v1316_v20 = vpop.permute.xlu1 %1315 }
 0x359   :  { %1393 = vst.msk [vmem:[#allocation3 + $0x128] sm:$0xff] %vm1298_vm14, %v1382_v8 }
 0x35a   :  { %1394 = vst.msk [vmem:[#allocation3 + $0x130] sm:$0xff] %vm1300_vm15, %v1382_v8  ;;  %v2059_v8 = vld [vmem:[%s4500_s5 + $0x20] sm:$0xff] }
 0x35b   :  { %1329 = vst.msk [vmem:[#allocation3 + $0x90] sm:$0xff] %vm1321_vm0, %v1316_v20 }
 0x35c   :  { %1330 = vst.msk [vmem:[#allocation3 + $0x98] sm:$0xff] %vm1323_vm1, %v1316_v20  ;;  %v1397_v30 = vpop.permute.xlu1 %1396  ;;  %v2060_v20 = vld [vmem:[%s4500_s5 + $0x28] sm:$0xff] }
 0x35d   :  { %1408 = vst.msk [vmem:[#allocation3 + $0xb8] sm:$0xff] %vm1321_vm0, %v1397_v30 }
 0x35e   :  { %1409 = vst.msk [vmem:[#allocation3 + $0xc0] sm:$0xff] %vm1323_vm1, %v1397_v30  ;;  %v2077_v30 = vld [vmem:[%s4500_s5 + $0xb0] sm:$0xff] }
 0x360   :  { %v1399_v21 = vpop.permute.xlu1 %1398  ;;  %v1453_v25 = vld [vmem:[#allocation3 + $0x128] sm:$0xff] }
 0x361   :  { %1410 = vst.msk [vmem:[#allocation3 + $0xe0] sm:$0xff] %vm1321_vm0, %v1399_v21 }
 0x362   :  { %v1434_v12 = vld [vmem:[#allocation3 + $0x90] sm:$0xff]  ;;  %1411 = vst.msk [vmem:[#allocation3 + $0xe8] sm:$0xff] %vm1323_vm1, %v1399_v21  ;;  %v2078_v21 = vld [vmem:[%s4500_s5 + $0xb8] sm:$0xff] }
 0x363   :  { %1825 = vmatprep.mubr.f32.mxu1 %v1434_v12  ;;  %v1435_v28 = vld [vmem:[#allocation3 + $0x98] sm:$0xff]  ;;  %v2783_v12 = vpack.c.bf16 %v2060_v20, %v2059_v8  ;;  %v2088_v8 = vld [vmem:[%s4500_s5 + $0x108] sm:$0xff] }
 0x364   :  { %1826 = vmatmul.mubr.f32.gmra.mrb[6].mxu1 %v1433_v7  ;;  %v1401_v38 = vpop.permute.xlu1 %1400  ;;  %v1439_v59 = vld [vmem:[#allocation3 + $0xb8] sm:$0xff]  ;;  %v2785_v7 = vpack.c.bf16 %v2078_v21, %v2077_v30 }
 0x365   :  { %1412 = vst.msk [vmem:[#allocation3 + $0x108] sm:$0xff] %vm1321_vm0, %v1401_v38  ;;  %1831 = vmatprep.mubr.f32.mxu1 %v1439_v59  ;;  %v1440_v29 = vld [vmem:[#allocation3 + $0xc0] sm:$0xff]  ;;  %2784 = vmatpush3.bf16.msra.mxu0 %v2783_v12  ;;  %v2089_v21 = vld [vmem:[%s4500_s5 + $0x110] sm:$0xff] }
 0x366   :  { %1413 = vst.msk [vmem:[#allocation3 + $0x110] sm:$0xff] %vm1323_vm1, %v1401_v38  ;;  %v2061_v38 = vld [vmem:[%s4500_s5 + $0x30] sm:$0xff]  ;;  %v2062_v59 = vld [vmem:[%s4500_s5 + $0x38] sm:$0xff]  ;;  %2786 = vmatprep.subr.bf16.mxu0 %v2785_v7 }
 0x367   :  { %v2090_v12 = vld [vmem:[%s4500_s5 + $0x118] sm:$0xff] }
 0x368   :  { %1832 = vmatmul.mubr.f32.gmra.mrb[8].mxu1 %v1438_v22  ;;  %v1403_v9 = vpop.permute.xlu1 %1402  ;;  %v1444_v11 = vld [vmem:[#allocation3 + $0xe0] sm:$0xff]  ;;  %v2079_v22 = vld [vmem:[%s4500_s5 + $0xc0] sm:$0xff] }
 0x369   :  { %1414 = vst.msk [vmem:[#allocation3 + $0x130] sm:$0xff] %vm1321_vm0, %v1403_v9  ;;  %1837 = vmatprep.mubr.f32.mxu1 %v1444_v11  ;;  %v1445_v15 = vld [vmem:[#allocation3 + $0xe8] sm:$0xff]  ;;  %v2787_v11 = vpack.c.bf16 %v2062_v59, %v2061_v38  ;;  %v2809_v38 = vpack.c.bf16 %v2090_v12, %v2089_v21 }
 0x36a   :  { %1415 = vst.msk [vmem:[#allocation3 + $0x138] sm:$0xff] %vm1323_vm1, %v1403_v9  ;;  %v2080_v9 = vld [vmem:[%s4500_s5 + $0xc8] sm:$0xff]  ;;  %v2091_v59 = vld [vmem:[%s4500_s5 + $0x120] sm:$0xff] }
 0x36b   :  { %2788 = vmatpush3.bf16.msra.mxu0 %v2787_v11  ;;  %v2093_v11 = vld [vmem:[%s4500_s5 + $0x130] sm:$0xff] }
 0x36c   :  { %1838 = vmatmul.mubr.f32.gmra.mrb[10].mxu1 %v1443_v23  ;;  %v1449_v24 = vld [vmem:[#allocation3 + $0x108] sm:$0xff]  ;;  %v2789_v23 = vpack.c.bf16 %v2080_v9, %v2079_v22  ;;  %v2092_v22 = vld [vmem:[%s4500_s5 + $0x128] sm:$0xff] }
 0x36d   :  { %1843 = vmatprep.mubr.f32.mxu1 %v1449_v24  ;;  %v1450_v37 = vld [vmem:[#allocation3 + $0x110] sm:$0xff]  ;;  %v2063_v24 = vld [vmem:[%s4500_s5 + $0x40] sm:$0xff]  ;;  %v2812_v9 = vpack.c.bf16 %v2092_v22, %v2091_v59 }
 0x36e   :  { %2790 = vmatprep.subr.bf16.mxu0 %v2789_v23  ;;  %v2094_v23 = vld [vmem:[%s4500_s5 + $0x138] sm:$0xff] }
 0x370   :  { %1844 = vmatmul.mubr.f32.gmra.mrb[12].mxu1 %v1448_v42  ;;  %v1454_v10 = vld [vmem:[#allocation3 + $0x130] sm:$0xff] }
 0x371   :  { %1849 = vmatprep.mubr.f32.mxu1 %v1454_v10  ;;  %v1455_v16 = vld [vmem:[#allocation3 + $0x138] sm:$0xff]  ;;  %v2064_v42 = vld [vmem:[%s4500_s5 + $0x48] sm:$0xff] }
 0x372   :  { %v2081_v10 = vld [vmem:[%s4500_s5 + $0xd0] sm:$0xff] }
 0x374   :  { %1850 = vmatmul.mubr.f32.gmra.mrb[14].mxu1 %v1453_v25  ;;  %v2082_v25 = vld [vmem:[%s4500_s5 + $0xd8] sm:$0xff] }
 0x375   :  { %1920 = vmatprep.mubr.f32.mxu1 %v2882_v14 }
 0x378   :  { %2485 = vmatmul.mubr.msk.f32.vlgmr.msra.gmra.mrb[0].mxu1 %vm1323_vm1, %v1420_v26  ;;  %v2791_v26 = vpack.c.bf16 %v2064_v42, %v2063_v24  ;;  %v2815_v24 = vpack.c.bf16 %v2094_v23, %v2093_v11 }
 0x379   :  { %1926 = vmatprep.mubr.f32.mxu1 %v2882_v14 }
 0x37a   :  { %2792 = vmatpush3.bf16.msra.mxu0 %v2791_v26  ;;  %v2248_v26 = vld [vmem:[%s4502_s7 + $0x10] sm:$0xff] }
 0x37c   :  { %2486 = vmatmul.mubr.msk.f32.gmra.mrb[2].mxu1 %vm1323_vm1, %v1425_v27  ;;  %v2793_v27 = vpack.c.bf16 %v2082_v25, %v2081_v10  ;;  %v2246_v10 = vld [vmem:[%s4502_s7] sm:$0xff]  ;;  %v2247_v25 = vld [vmem:[%s4502_s7 + $0x8] sm:$0xff] }
 0x37d   :  { %1932 = vmatprep.mubr.f32.mxu1 %v2882_v14 }
 0x37e   :  { %2794 = vmatprep.subr.bf16.mxu0 %v2793_v27  ;;  %v2818_v27 = vpack.c.bf16 %v2247_v25, %v2246_v10 }
 0x380   :  { %2487 = vmatmul.mubr.msk.f32.gmra.mrb[4].mxu1 %vm1323_vm1, %v1430_v19  ;;  %v2065_v19 = vld [vmem:[%s4500_s5 + $0x50] sm:$0xff] }
 0x381   :  { %1938 = vmatprep.mubr.f32.mxu1 %v2882_v14 }
 0x384   :  { %2488 = vmatmul.mubr.msk.f32.gmra.mrb[6].mxu1 %vm1323_vm1, %v1435_v28  ;;  %v2066_v28 = vld [vmem:[%s4500_s5 + $0x58] sm:$0xff] }
 0x385   :  { %1944 = vmatprep.mubr.f32.mxu1 %v2882_v14 }
 0x388   :  { %2489 = vmatmul.mubr.msk.f32.gmra.mrb[8].mxu1 %vm1323_vm1, %v1440_v29  ;;  %v2083_v29 = vld [vmem:[%s4500_s5 + $0xe0] sm:$0xff] }
 0x389   :  { %1950 = vmatprep.mubr.f32.mxu1 %v2882_v14 }
 0x38c   :  { %2490 = vmatmul.mubr.msk.f32.gmra.mrb[10].mxu1 %vm1323_vm1, %v1445_v15  ;;  %v2084_v15 = vld [vmem:[%s4500_s5 + $0xe8] sm:$0xff] }
 0x38d   :  { %1956 = vmatprep.mubr.f32.mxu1 %v2882_v14 }
 0x390   :  { %2491 = vmatmul.mubr.msk.f32.gmra.mrb[12].mxu1 %vm1323_vm1, %v1450_v37  ;;  %v2795_v37 = vpack.c.bf16 %v2066_v28, %v2065_v19  ;;  %v2249_v19 = vld [vmem:[%s4502_s7 + $0x18] sm:$0xff] }
 0x391   :  { %1962 = vmatprep.mubr.f32.mxu1 %v2882_v14  ;;  %v2821_v28 = vpack.c.bf16 %v2249_v19, %v2248_v26 }
 0x392   :  { %2796 = vmatpush3.bf16.msra.mxu0 %v2795_v37 }
 0x394   :  { %2492 = vmatmul.mubr.msk.f32.gmra.mrb[14].mxu1 %vm1323_vm1, %v1455_v16  ;;  %v2797_v16 = vpack.c.bf16 %v2084_v15, %v2083_v29  ;;  %v2250_v29 = vld [vmem:[%s4502_s7 + $0x20] sm:$0xff]  ;;  %v2251_v15 = vld [vmem:[%s4502_s7 + $0x28] sm:$0xff] }
 0x395   :  { %v2824_v37 = vpack.c.bf16 %v2251_v15, %v2250_v29 }
 0x396   :  { %2798 = vmatprep.subr.bf16.mxu0 %v2797_v16  ;;  %v2252_v16 = vld [vmem:[%s4502_s7 + $0x30] sm:$0x3] }
 0x44b   :  { %v1922_v17 = vpop.f32.mrb[0].mxu1 }
 0x44c   :  { %v1924_v34 = vpop.f32.mrb[1].mxu1 }
 0x44f   :  { %v1928_v13 = vpop.f32.mrb[2].mxu1 }
 0x450   :  { %v1930_v0 = vpop.f32.mrb[3].mxu1 }
 0x453   :  { %v1934_v3 = vpop.f32.mrb[4].mxu1 }
 0x454   :  { %v1936_v35 = vpop.f32.mrb[5].mxu1 }
 0x457   :  { %v1940_v36 = vpop.f32.mrb[6].mxu1 }
 0x458   :  { %v1942_v32 = vpop.f32.mrb[7].mxu1 }
 0x45b   :  { %v1946_v33 = vpop.f32.mrb[8].mxu1 }
 0x45c   :  { %v4306_v41 = vmax.f32 %v1922_v17, %v1946_v33  ;;  %v1948_v43 = vpop.f32.mrb[9].mxu1  ;;  %v2067_v17 = vld [vmem:[%s4500_s5 + $0x60] sm:$0xff] }
 0x45d   :  { %v1970_v31 = vmax.f32 %v1924_v34, %v1948_v43  ;;  %v2068_v34 = vld [vmem:[%s4500_s5 + $0x68] sm:$0xff]  ;;  %v2070_v43 = vld [vmem:[%s4500_s5 + $0x78] sm:$0xff] }
 0x45f   :  { %v1952_v44 = vpop.f32.mrb[10].mxu1 }
 0x460   :  { %v4308_v45 = vmax.f32 %v1928_v13, %v1952_v44  ;;  %v1954_v47 = vpop.f32.mrb[11].mxu1  ;;  %v2799_v13 = vpack.c.bf16 %v2068_v34, %v2067_v17 }
 0x461   :  { %v1972_v6 = vmax.f32 %v1930_v0, %v1954_v47 }
 0x462   :  { %1989 = vrot.lane.b32.xlu0 %v4308_v45, %s2883_s3  ;;  %2800 = vmatpush3.bf16.msra.mxu0 %v2799_v13 }
 0x463   :  { %1991 = vrot.lane.b32.xlu1 %v1972_v6, %s2883_s3  ;;  %v1958_v39 = vpop.f32.mrb[12].mxu1 }
 0x464   :  { %v4313_v40 = vmax.f32 %v1934_v3, %v1958_v39  ;;  %v1960_v48 = vpop.f32.mrb[13].mxu1  ;;  %v2085_v3 = vld [vmem:[%s4500_s5 + $0xf0] sm:$0xff] }
 0x465   :  { %v1974_v46 = vmax.f32 %v1936_v35, %v1960_v48  ;;  %v2086_v35 = vld [vmem:[%s4500_s5 + $0xf8] sm:$0xff] }
 0x466   :  { %1993 = vrot.lane.b32.xlu0 %v4313_v40, %s2883_s3  ;;  %v2801_v33 = vpack.c.bf16 %v2086_v35, %v2085_v3 }
 0x467   :  { %1995 = vrot.lane.b32.xlu1 %v1974_v46, %s2883_s3  ;;  %v1964_v49 = vpop.f32.mrb[14].mxu1 }
 0x468   :  { %v4318_v52 = vmax.f32 %v1940_v36, %v1964_v49  ;;  %v1966_v62 = vpop.f32.mrb[15].mxu1  ;;  %v2069_v36 = vld [vmem:[%s4500_s5 + $0x70] sm:$0xff]  ;;  %2802 = vmatprep.subr.bf16.mxu0 %v2801_v33 }
 0x469   :  { %v1976_v50 = vmax.f32 %v1942_v32, %v1966_v62  ;;  %v2803_v47 = vpack.c.bf16 %v2070_v43, %v2069_v36 }
 0x46a   :  { %1997 = vrot.lane.b32.xlu0 %v4318_v52, %s2883_s3 }
 0x46b   :  { %1999 = vrot.lane.b32.xlu1 %v1976_v50, %s2883_s3  ;;  %2804 = vmatpush3.bf16.msra.mxu0 %v2803_v47 }
 0x46c   :  { %2805 = vmatprep.subr.bf16.mxu0 %v2886_v58 }
 0x46e   :  { %1985 = vrot.lane.b32.xlu0 %v4306_v41, %s2883_s3 }
 0x46f   :  { %1987 = vrot.lane.b32.xlu1 %v1970_v31, %s2883_s3  ;;  %v2493_v31 = vld [vmem:[%s4501_s4] ss:$0 sm:$0xff]  ;;  %s2885_s4 = smov 32  }
 0x4d4   :  { %v1990_v0 = vpop.permute.xlu0 %1989 }
 0x4d5   :  { %v1992_v32 = vpop.permute.xlu1 %1991 }
 0x4d6   :  { %v2003_v44 = vsel %vm2001_vm2, %v1990_v0, %v1992_v32  ;;  %v2494_v0 = vld [vmem:[%s4503_s6] ss:$0 sm:$0xff] }
 0x4d7   :  { %v2011_v6 = vmax.f32 %v4308_v45, %v2003_v44 }
 0x4d8   :  { %v1994_v39 = vpop.permute.xlu0 %1993 }
 0x4d9   :  { %v2022_v48 = vadd.f32 %v2493_v31, %v2011_v6  ;;  %v1996_v46 = vpop.permute.xlu1 %1995 }
 0x4da   :  { %v2004_v49 = vsel %vm2001_vm2, %v1994_v39, %v1996_v46 }
 0x4db   :  { %v2026_v62 = vmax.f32 %v2022_v48, 0.0  ;;  %v2012_v63 = vmax.f32 %v4313_v40, %v2004_v49 }
 0x4dc   :  { %v1998_v5 = vpop.permute.xlu0 %1997 }
 0x4dd   :  { %v2023_v51 = vadd.f32 %v2493_v31, %v2012_v63  ;;  %2032 = vrot.lane.b32.xlu0 %v2026_v62, %s2884_s23  ;;  %v2000_v50 = vpop.permute.xlu1 %1999 }
 0x4de   :  { %v2005_v53 = vsel %vm2001_vm2, %v1998_v5, %v2000_v50 }
 0x4df   :  { %v2027_v54 = vmax.f32 %v2023_v51, 0.0  ;;  %v2013_v45 = vmax.f32 %v4318_v52, %v2005_v53 }
 0x4e0   :  { %v1986_v56 = vpop.permute.xlu0 %1985 }
 0x4e1   :  { %v2024_v57 = vadd.f32 %v2493_v31, %v2013_v45  ;;  %2040 = vrot.lane.b32.xlu1 %v2027_v54, %s2885_s4  ;;  %v1988_v55 = vpop.permute.xlu1 %1987 }
 0x4e2   :  { %v2002_v60 = vsel %vm2001_vm2, %v1986_v56, %v1988_v55 }
 0x4e3   :  { %v2028_v40 = vmax.f32 %v2024_v57, 0.0  ;;  %v2010_v61 = vmax.f32 %v4306_v41, %v2002_v60  ;;  %v2087_v41 = vld [vmem:[%s4500_s5 + $0x100] sm:$0xff] }
 0x4e4   :  { %v2806_v20 = vpack.c.bf16 %v2088_v8, %v2087_v41 }
 0x4e5   :  { %v2021_v4 = vadd.f32 %v2493_v31, %v2010_v61  ;;  %2046 = vrot.lane.b32.xlu0 %v2028_v40, %s2875_s14 }
 0x4e7   :  { %v2025_v2 = vmax.f32 %v2021_v4, 0.0 }
 0x4e9   :  { %2030 = vst.msk [vmem:[#allocation4] sm:$0xff] %vm2029_vm3, %v2025_v2 }
 0x54f   :  { %v2033_v52 = vpop.permute.xlu0 %2032 }
 0x550   :  { %2036 = vst.msk [vmem:[#allocation4] sm:$0xff] %vm2035_vm4, %v2033_v52 }
 0x551   :  { %2038 = vst.msk [vmem:[#allocation4 + $0x8] sm:$0xff] %vm2037_vm5, %v2033_v52 }
 0x553   :  { %v2041_v18 = vpop.permute.xlu1 %2040 }
 0x554   :  { %2044 = vst.msk [vmem:[#allocation4 + $0x8] sm:$0xff] %vm2043_vm6, %v2041_v18 }
 0x557   :  { %v2047_v1 = vpop.permute.xlu0 %2046  ;;  %v2052_v7 = vld [vmem:[#allocation4] sm:$0xff] }
 0x558   :  { %2049 = vst.msk [vmem:[#allocation4 + $0x8] sm:$0xff] %vm190_vm8, %v2047_v1  ;;  %vm2887_vm8 = vmmov 0  }
 0x559   :  { %2051 = vst.msk [vmem:[#allocation4 + $0x10] sm:$0xff] %vm2050_vm7, %v2047_v1 }
 0x55f   :  { %v2053_v30 = vld [vmem:[#allocation4 + $0x8] sm:$0xff] }
 0x560   :  { %2169 = vmatprep.mubr.f32.mxu0 %v2053_v30  ;;  %v2054_v42 = vld [vmem:[#allocation4 + $0x10] sm:$0xff] }
 0x561   :  { %2170 = vmatmul.mubr.f32.vlgmr.msra.gmra.mrb[48].mxu0 %v2052_v7 }
 0x562   :  { %2807 = vmatpush3.bf16.msra.mxu0 %v2806_v20  ;;  %2567 = vmatprep.mubr.msk.f32.mxu0 %vm2887_vm8, %v2882_v14 }
 0x563   :  { %2808 = vmatprep.subr.bf16.mxu0 %v2886_v58 }
 0x566   :  { %2810 = vmatpush3.bf16.msra.mxu0 %v2809_v38 }
 0x567   :  { %2811 = vmatprep.subr.bf16.mxu0 %v2886_v58 }
 0x56a   :  { %2813 = vmatpush3.bf16.msra.mxu0 %v2812_v9 }
 0x56b   :  { %2814 = vmatprep.subr.bf16.mxu0 %v2886_v58 }
 0x56e   :  { %2816 = vmatpush3.bf16.msra.mxu0 %v2815_v24 }
 0x56f   :  { %2817 = vmatprep.subr.bf16.mxu0 %v2886_v58 }
 0x571   :  { %2568 = vmatmul.mubr.msk.f32.vlgmr.msra.gmra.mrb[50].mxu0 %vm2050_vm7, %v2054_v42 }
 0x572   :  { %2584 = vmatprep.mubr.msk.f32.mxu0 %vm2887_vm8, %v2882_v14  ;;  %2819 = vmatpush3.bf16.msra.mxu0 %v2818_v27 }
 0x573   :  { %2820 = vmatprep.subr.bf16.mxu0 %v2886_v58 }
 0x576   :  { %2822 = vmatpush3.bf16.msra.mxu0 %v2821_v28 }
 0x577   :  { %2823 = vmatprep.subr.bf16.mxu0 %v2886_v58 }
 0x57a   :  { %2825 = vmatpush3.bf16.msra.mxu0 %v2824_v37 }
 0x57b   :  { %2582 = vmatprep.subr.mxu0 %v2882_v14  ;;  %v2496_v14 = vld [vmem:[%s4504_s8] ss:$0 sm:$0xff] }
 0x57e   :  { %2583 = vmatpush3.msk.msra.mxu0 %vm2264_vm9, %v2252_v16 }
 0x634   :  { %v2531_v17 = vpop.f32.mrb[48].mxu0 }
 0x635   :  { %v2532_v34 = vpop.f32.mrb[49].mxu0 }
 0x636   :  { %v2533_v13 = vadd.f32 %v2532_v34, %v2531_v17 }
 0x638   :  { %v2172_v3 = vadd.f32 %v2533_v13, %v2494_v0 }
 0x644   :  { %v2241_v35 = vpop.f32.mrb[50].mxu0 }
 0x645   :  { %v2242_v36 = vadd.f32 %v2241_v35, %v2172_v3  ;;  %v2569_v32 = vpop.f32.mrb[51].mxu0 }
 0x647   :  { %v2245_v33 = vmax.f32 %v2242_v36, 0.0 }
 0x649   :  { %2585 = vmatmul.mubr.msk.f32.vlgmr.msra.gmra.mrb[52].mxu0 %vm2260_vm10, %v2245_v33 }
 0x71c   :  { %v2334_v43 = vpop.f32.mrb[52].mxu0 }
 0x71d   :  { %v2335_v31 = vadd.f32 %v2496_v14, %v2334_v43  ;;  %v2586_v44 = vpop.f32.mrb[53].mxu0 }
 0x71f   :  { %2339 = vst.msk [vmem:[%s4505_s9] sm:$0xff] %vm2338_vm11, %v2335_v31 }

</bundles_post_ra>
